<compile_context>
chip_gen: v7x
topology: tpu7x:2x2x1
jax: 0.10.0
libtpu: 0.0.40
codegen_flags: <defaults>
</compile_context>

<pallas_src>
import jax
import jax.numpy as jnp
from jax import lax
from jax.experimental import pallas as pl
from jax.experimental.pallas import tpu as pltpu

LANE = 128  # lane-dense padded width for input/hidden/output feature dims


def _pad_to(a, target_shape):
    """Zero-pad `a` up to `target_shape` (per-dim, trailing pad only)."""
    pads = [(0, t - s) for s, t in zip(a.shape, target_shape)]
    return jnp.pad(a, pads)


def _make_rnn_kernel(n_layers, seq, batch, hidden_p):
    """Builds the kernel body for fixed (n_layers, seq, batch, padded hidden)."""

    prec = lax.Precision.HIGHEST

    def kernel(*refs):
        # refs = [x, (wih_t, whh_t, bias) * n_layers,
        #         fc1_wt, fc1_b, fc2_wt, fc2_b, out, scratch_a, scratch_b]
        x_ref = refs[0]
        idx = 1
        layer_params = []
        for _ in range(n_layers):
            layer_params.append(refs[idx:idx + 3])
            idx += 3
        fc1w_ref, fc1b_ref, fc2w_ref, fc2b_ref = refs[idx:idx + 4]
        idx += 4
        out_ref = refs[idx]
        scratch = (refs[idx + 1], refs[idx + 2])   # ping-pong (S,B,HP) VMEM

        in_dim = x_ref.shape[-1]                    # already lane-padded
        h_last = jnp.zeros((batch, hidden_p), jnp.float32)

        for l, (wih_ref, whh_ref, bias_ref) in enumerate(layer_params):
            wih_t = wih_ref[...]                    # (in_p or HP, HP) pre-transposed
            whh_t = whh_ref[...]                    # (HP, HP)         pre-transposed
            bias = bias_ref[...]                    # (1, HP)          b_ih + b_hh fused

            dst = scratch[l & 1]                    # this layer's sequence buffer
            if l == 0:
                src = x_ref[...].reshape(seq * batch, in_dim)
            else:
                # Previous layer's full hidden sequence lives in the OTHER
                # buffer (ping-pong), so this read has no WAR hazard with the
                # writeback below.
                src = scratch[(l - 1) & 1][...].reshape(seq * batch, hidden_p)

            # ---- Hoisted input projection: one big lane-dense MXU GEMM over
            # the whole sequence, removed from the serial recurrence. ----
            pre = jnp.dot(src, wih_t, preferred_element_type=jnp.float32,
                          precision=prec) + bias
            dst[...] = pre.reshape(seq, batch, hidden_p)

            is_last = (l == n_layers - 1)

            # ---- Serial recurrence: one small matmul + tanh per step. ----
            def step(t, h, whh_t=whh_t, dst=dst, is_last=is_last):
                h_new = jnp.tanh(
                    dst[t]
                    + jnp.dot(h, whh_t, preferred_element_type=jnp.float32,
                              precision=prec))
                if not is_last:
                    dst[t] = h_new                  # full 128-lane vst (no mask)
                return h_new

            h_last = lax.fori_loop(
                0, seq, step, jnp.zeros((batch, hidden_p), jnp.float32),
                unroll=True)

        # out[:, -1, :] == final hidden of the last layer (already tanh'd by
        # the cell); the module applies tanh again -> double tanh kept.
        o = jnp.tanh(h_last)
        # TODO(synk): nn.Dropout(p=0.5) implemented as identity (eval mode).
        o = jnp.tanh(
            jnp.dot(o, fc1w_ref[...], preferred_element_type=jnp.float32,
                    precision=prec) + fc1b_ref[...])
        o = (jnp.dot(o, fc2w_ref[...], preferred_element_type=jnp.float32,
                     precision=prec) + fc2b_ref[...])
        out_ref[...] = o                            # (B, 128) lane-dense store

    return kernel


def rnn_forward(x, params, *, n_layers, hidden_dim, output_dim):
    """x: (batch, seq, input_dim) float32 -> (batch, output_dim, 1) float32."""
    B, S, I = x.shape
    IP, HP, OP = LANE, LANE, LANE                   # lane-dense padded dims

    x_tm = jnp.transpose(x, (1, 0, 2)).astype(jnp.float32)   # (S, B, I)
    x_tm = _pad_to(x_tm, (S, B, IP))

    # Host-side weight pre-transposition + bias fusion + zero-padding to 128
    # lanes (padded lanes contribute exactly zero, so semantics are unchanged).
    inputs = [x_tm]
    for l in range(n_layers):
        wih, whh, bih, bhh = params["rnn"][l]
        in_p = IP if l == 0 else HP
        inputs += [
            _pad_to(wih.T.astype(jnp.float32), (in_p, HP)),              # (in_p, HP)
            _pad_to(whh.T.astype(jnp.float32), (HP, HP)),                # (HP, HP)
            _pad_to((bih + bhh).reshape(1, -1).astype(jnp.float32), (1, HP)),
        ]
    inputs += [
        _pad_to(params["fc1_w"].T.astype(jnp.float32), (HP, HP)),
        _pad_to(params["fc1_b"].reshape(1, -1).astype(jnp.float32), (1, HP)),
        _pad_to(params["fc2_w"].T.astype(jnp.float32), (HP, OP)),
        _pad_to(params["fc2_b"].reshape(1, -1).astype(jnp.float32), (1, OP)),
    ]

    kernel = _make_rnn_kernel(n_layers, S, B, HP)
    vmem_spec = lambda: pl.BlockSpec(memory_space=pltpu.MemorySpace.VMEM)

    # Gridless single program: x, all weights, and the two (S,B,128) f32
    # scratches total well under 1 MiB — comfortable on every generation.
    out_p = pl.pallas_call(
        kernel,
        out_shape=jax.ShapeDtypeStruct((B, OP), jnp.float32),
        in_specs=[vmem_spec() for _ in inputs],
        out_specs=vmem_spec(),
        scratch_shapes=[pltpu.VMEM((S, B, HP), jnp.float32),
                        pltpu.VMEM((S, B, HP), jnp.float32)],
    )(*inputs)

    # Slice padded lanes away, then unsqueeze(-1) like the module.
    return out_p[:, :output_dim, None]              # (B, out_dim, 1)


def rnn_reference(x, params, *, n_layers, hidden_dim):
    """Pure-JAX reference mirroring the PyTorch forward (dropout = identity)."""
    prec = lax.Precision.HIGHEST
    B, S, _ = x.shape
    layer_in = x
    for l in range(n_layers):
        wih, whh, bih, bhh = params["rnn"][l]
        h = jnp.zeros((B, hidden_dim), jnp.float32)
        outs = []
        for t in range(S):
            h = jnp.tanh(jnp.dot(layer_in[:, t, :], wih.T, precision=prec) + bih
                         + jnp.dot(h, whh.T, precision=prec) + bhh)
            outs.append(h)
        layer_in = jnp.stack(outs, axis=1)
    o = jnp.tanh(layer_in[:, -1, :])
    o = jnp.tanh(jnp.dot(o, params["fc1_w"].T, precision=prec) + params["fc1_b"])
    o = jnp.dot(o, params["fc2_w"].T, precision=prec) + params["fc2_b"]
    return o[..., None]


def init_params(key, *, input_dim, hidden_dim, output_dim, n_layers):
    """Deterministic normal init (mirrors the module's init_weights)."""
    keys = jax.random.split(key, 4 * n_layers + 4)
    ki = iter(range(len(keys)))
    rnn = []
    for l in range(n_layers):
        in_dim = input_dim if l == 0 else hidden_dim
        wih = jax.random.normal(keys[next(ki)], (hidden_dim, in_dim), jnp.float32)
        whh = jax.random.normal(keys[next(ki)], (hidden_dim, hidden_dim), jnp.float32)
        bih = jax.random.normal(keys[next(ki)], (hidden_dim,), jnp.float32)
        bhh = jax.random.normal(keys[next(ki)], (hidden_dim,), jnp.float32)
        rnn.append((wih, whh, bih, bhh))
    fc1_w = jax.random.normal(keys[next(ki)], (hidden_dim, hidden_dim), jnp.float32)
    fc2_w = jax.random.normal(keys[next(ki)], (output_dim, hidden_dim), jnp.float32)
    # fc biases keep small deterministic values (PyTorch default uniform init).
    fc1_b = 0.01 * jax.random.normal(keys[next(ki)], (hidden_dim,), jnp.float32)
    fc2_b = 0.01 * jax.random.normal(keys[next(ki)], (output_dim,), jnp.float32)
    return {"rnn": rnn, "fc1_w": fc1_w, "fc1_b": fc1_b,
            "fc2_w": fc2_w, "fc2_b": fc2_b}


if __name__ == "__main__":
    INPUT_DIM, HIDDEN_DIM, OUTPUT_DIM, N_LAYERS = 16, 32, 4, 2
    BATCH, SEQ = 8, 8

    key = jax.random.PRNGKey(0)
    k_x, k_p = jax.random.split(key)
    x = jax.random.normal(k_x, (BATCH, SEQ, INPUT_DIM), jnp.float32)
    params = init_params(k_p, input_dim=INPUT_DIM, hidden_dim=HIDDEN_DIM,
                         output_dim=OUTPUT_DIM, n_layers=N_LAYERS)

    out = rnn_forward(x, params, n_layers=N_LAYERS,
                      hidden_dim=HIDDEN_DIM, output_dim=OUTPUT_DIM)
    out = jax.block_until_ready(out)

    ref = rnn_reference(x, params, n_layers=N_LAYERS, hidden_dim=HIDDEN_DIM)
    assert out.shape == (BATCH, OUTPUT_DIM, 1), out.shape
    assert jnp.allclose(out, ref, atol=1e-3, rtol=1e-3), \
        f"max err {jnp.max(jnp.abs(out - ref))}"

    print("KERNEL_OK")
</pallas_src>

<mosaic_0001>
module attributes {stable_mosaic.version = 11 : i64} {
  func.func @kernel(%arg0: memref<8x8x128xf32, #tpu.memory_space<vmem>>, %arg1: memref<128x128xf32, #tpu.memory_space<vmem>>, %arg2: memref<128x128xf32, #tpu.memory_space<vmem>>, %arg3: memref<1x128xf32, #tpu.memory_space<vmem>>, %arg4: memref<128x128xf32, #tpu.memory_space<vmem>>, %arg5: memref<128x128xf32, #tpu.memory_space<vmem>>, %arg6: memref<1x128xf32, #tpu.memory_space<vmem>>, %arg7: memref<128x128xf32, #tpu.memory_space<vmem>>, %arg8: memref<1x128xf32, #tpu.memory_space<vmem>>, %arg9: memref<128x128xf32, #tpu.memory_space<vmem>>, %arg10: memref<1x128xf32, #tpu.memory_space<vmem>>, %arg11: memref<8x128xf32, #tpu.memory_space<vmem>>, %arg12: memref<8x8x128xf32, #tpu.memory_space<vmem>>, %arg13: memref<8x8x128xf32, #tpu.memory_space<vmem>>) attributes {dimension_semantics = [], scalar_prefetch = 0 : i64, scratch_operands = 2 : i64, tpu.core_type = #tpu.core_type<tc>} {
    %c0 = arith.constant 0 : index
    %c0_0 = arith.constant 0 : index
    %0 = vector.load %arg1[%c0, %c0_0] : memref<128x128xf32, #tpu.memory_space<vmem>>, vector<128x128xf32>
    %c0_1 = arith.constant 0 : index
    %c0_2 = arith.constant 0 : index
    %1 = vector.load %arg2[%c0_1, %c0_2] : memref<128x128xf32, #tpu.memory_space<vmem>>, vector<128x128xf32>
    %c0_3 = arith.constant 0 : index
    %c0_4 = arith.constant 0 : index
    %2 = vector.load %arg3[%c0_3, %c0_4] : memref<1x128xf32, #tpu.memory_space<vmem>>, vector<1x128xf32>
    %c0_5 = arith.constant 0 : index
    %c0_6 = arith.constant 0 : index
    %c0_7 = arith.constant 0 : index
    %3 = vector.load %arg0[%c0_5, %c0_6, %c0_7] : memref<8x8x128xf32, #tpu.memory_space<vmem>>, vector<8x8x128xf32>
    %4 = vector.shape_cast %3 : vector<8x8x128xf32> to vector<64x128xf32>
    %cst = arith.constant dense<0.000000e+00> : vector<64x128xf32>
    %5 = tpu.matmul %4, %0, %cst {dimension_numbers = #tpu.dot_dimension_numbers<[1], [0], [0], [1], [0, 0, 1, 1], [], []>, precision = #tpu.contract_precision<fp32>} : vector<64x128xf32>, vector<128x128xf32>, vector<64x128xf32> -> vector<64x128xf32>
    %6 = vector.broadcast %2 : vector<1x128xf32> to vector<64x128xf32>
    %7 = arith.addf %5, %6 : vector<64x128xf32>
    %8 = vector.shape_cast %7 : vector<64x128xf32> to vector<8x8x128xf32>
    %c0_8 = arith.constant 0 : index
    %c0_9 = arith.constant 0 : index
    %c0_10 = arith.constant 0 : index
    %9 = vector.load %arg12[%c0_8, %c0_9, %c0_10] : memref<8x8x128xf32, #tpu.memory_space<vmem>>, vector<8x8x128xf32>
    tpu.vector_store %arg12[%c0_8, %c0_9, %c0_10], %8 {strides = array<i32>} : memref<8x8x128xf32, #tpu.memory_space<vmem>>, vector<8x8x128xf32>,
    %cst_11 = arith.constant 0.000000e+00 : f32
    %10 = vector.broadcast %cst_11 : f32 to vector<8x128xf32>
    %c0_i32 = arith.constant 0 : i32
    %11 = arith.index_cast %c0_i32 : i32 to index
    %c0_12 = arith.constant 0 : index
    %c0_13 = arith.constant 0 : index
    %12 = vector.load %arg12[%11, %c0_12, %c0_13] : memref<8x8x128xf32, #tpu.memory_space<vmem>>, vector<1x8x128xf32>
    %13 = vector.shape_cast %12 : vector<1x8x128xf32> to vector<8x128xf32>
    %cst_14 = arith.constant dense<0.000000e+00> : vector<8x128xf32>
    %14 = tpu.matmul %10, %1, %cst_14 {dimension_numbers = #tpu.dot_dimension_numbers<[1], [0], [0], [1], [0, 0, 1, 1], [], []>, precision = #tpu.contract_precision<fp32>} : vector<8x128xf32>, vector<128x128xf32>, vector<8x128xf32> -> vector<8x128xf32>
    %15 = arith.addf %13, %14 : vector<8x128xf32>
    %16 = math.tanh %15 : vector<8x128xf32>
    %17 = arith.index_cast %c0_i32 : i32 to index
    %c0_15 = arith.constant 0 : index
    %c0_16 = arith.constant 0 : index
    %18 = vector.load %arg12[%17, %c0_15, %c0_16] : memref<8x8x128xf32, #tpu.memory_space<vmem>>, vector<1x8x128xf32>
    %19 = vector.shape_cast %18 : vector<1x8x128xf32> to vector<8x128xf32>
    %20 = vector.shape_cast %16 : vector<8x128xf32> to vector<1x8x128xf32>
    tpu.vector_store %arg12[%17, %c0_15, %c0_16], %20 {strides = array<i32>} : memref<8x8x128xf32, #tpu.memory_space<vmem>>, vector<1x8x128xf32>,
    %c1_i32 = arith.constant 1 : i32
    %21 = arith.index_cast %c1_i32 : i32 to index
    %c0_17 = arith.constant 0 : index
    %c0_18 = arith.constant 0 : index
    %22 = vector.load %arg12[%21, %c0_17, %c0_18] : memref<8x8x128xf32, #tpu.memory_space<vmem>>, vector<1x8x128xf32>
    %23 = vector.shape_cast %22 : vector<1x8x128xf32> to vector<8x128xf32>
    %cst_19 = arith.constant dense<0.000000e+00> : vector<8x128xf32>
    %24 = tpu.matmul %16, %1, %cst_19 {dimension_numbers = #tpu.dot_dimension_numbers<[1], [0], [0], [1], [0, 0, 1, 1], [], []>, precision = #tpu.contract_precision<fp32>} : vector<8x128xf32>, vector<128x128xf32>, vector<8x128xf32> -> vector<8x128xf32>
    %25 = arith.addf %23, %24 : vector<8x128xf32>
    %26 = math.tanh %25 : vector<8x128xf32>
    %27 = arith.index_cast %c1_i32 : i32 to index
    %c0_20 = arith.constant 0 : index
    %c0_21 = arith.constant 0 : index
    %28 = vector.load %arg12[%27, %c0_20, %c0_21] : memref<8x8x128xf32, #tpu.memory_space<vmem>>, vector<1x8x128xf32>
    %29 = vector.shape_cast %28 : vector<1x8x128xf32> to vector<8x128xf32>
    %30 = vector.shape_cast %26 : vector<8x128xf32> to vector<1x8x128xf32>
    tpu.vector_store %arg12[%27, %c0_20, %c0_21], %30 {strides = array<i32>} : memref<8x8x128xf32, #tpu.memory_space<vmem>>, vector<1x8x128xf32>,
    %c2_i32 = arith.constant 2 : i32
    %31 = arith.index_cast %c2_i32 : i32 to index
    %c0_22 = arith.constant 0 : index
    %c0_23 = arith.constant 0 : index
    %32 = vector.load %arg12[%31, %c0_22, %c0_23] : memref<8x8x128xf32, #tpu.memory_space<vmem>>, vector<1x8x128xf32>
    %33 = vector.shape_cast %32 : vector<1x8x128xf32> to vector<8x128xf32>
    %cst_24 = arith.constant dense<0.000000e+00> : vector<8x128xf32>
    %34 = tpu.matmul %26, %1, %cst_24 {dimension_numbers = #tpu.dot_dimension_numbers<[1], [0], [0], [1], [0, 0, 1, 1], [], []>, precision = #tpu.contract_precision<fp32>} : vector<8x128xf32>, vector<128x128xf32>, vector<8x128xf32> -> vector<8x128xf32>
    %35 = arith.addf %33, %34 : vector<8x128xf32>
    %36 = math.tanh %35 : vector<8x128xf32>
    %37 = arith.index_cast %c2_i32 : i32 to index
    %c0_25 = arith.constant 0 : index
    %c0_26 = arith.constant 0 : index
    %38 = vector.load %arg12[%37, %c0_25, %c0_26] : memref<8x8x128xf32, #tpu.memory_space<vmem>>, vector<1x8x128xf32>
    %39 = vector.shape_cast %38 : vector<1x8x128xf32> to vector<8x128xf32>
    %40 = vector.shape_cast %36 : vector<8x128xf32> to vector<1x8x128xf32>
    tpu.vector_store %arg12[%37, %c0_25, %c0_26], %40 {strides = array<i32>} : memref<8x8x128xf32, #tpu.memory_space<vmem>>, vector<1x8x128xf32>,
    %c3_i32 = arith.constant 3 : i32
    %41 = arith.index_cast %c3_i32 : i32 to index
    %c0_27 = arith.constant 0 : index
    %c0_28 = arith.constant 0 : index
    %42 = vector.load %arg12[%41, %c0_27, %c0_28] : memref<8x8x128xf32, #tpu.memory_space<vmem>>, vector<1x8x128xf32>
    %43 = vector.shape_cast %42 : vector<1x8x128xf32> to vector<8x128xf32>
    %cst_29 = arith.constant dense<0.000000e+00> : vector<8x128xf32>
    %44 = tpu.matmul %36, %1, %cst_29 {dimension_numbers = #tpu.dot_dimension_numbers<[1], [0], [0], [1], [0, 0, 1, 1], [], []>, precision = #tpu.contract_precision<fp32>} : vector<8x128xf32>, vector<128x128xf32>, vector<8x128xf32> -> vector<8x128xf32>
    %45 = arith.addf %43, %44 : vector<8x128xf32>
    %46 = math.tanh %45 : vector<8x128xf32>
    %47 = arith.index_cast %c3_i32 : i32 to index
    %c0_30 = arith.constant 0 : index
    %c0_31 = arith.constant 0 : index
    %48 = vector.load %arg12[%47, %c0_30, %c0_31] : memref<8x8x128xf32, #tpu.memory_space<vmem>>, vector<1x8x128xf32>
    %49 = vector.shape_cast %48 : vector<1x8x128xf32> to vector<8x128xf32>
    %50 = vector.shape_cast %46 : vector<8x128xf32> to vector<1x8x128xf32>
    tpu.vector_store %arg12[%47, %c0_30, %c0_31], %50 {strides = array<i32>} : memref<8x8x128xf32, #tpu.memory_space<vmem>>, vector<1x8x128xf32>,
    %c4_i32 = arith.constant 4 : i32
    %51 = arith.index_cast %c4_i32 : i32 to index
    %c0_32 = arith.constant 0 : index
    %c0_33 = arith.constant 0 : index
    %52 = vector.load %arg12[%51, %c0_32, %c0_33] : memref<8x8x128xf32, #tpu.memory_space<vmem>>, vector<1x8x128xf32>
    %53 = vector.shape_cast %52 : vector<1x8x128xf32> to vector<8x128xf32>
    %cst_34 = arith.constant dense<0.000000e+00> : vector<8x128xf32>
    %54 = tpu.matmul %46, %1, %cst_34 {dimension_numbers = #tpu.dot_dimension_numbers<[1], [0], [0], [1], [0, 0, 1, 1], [], []>, precision = #tpu.contract_precision<fp32>} : vector<8x128xf32>, vector<128x128xf32>, vector<8x128xf32> -> vector<8x128xf32>
    %55 = arith.addf %53, %54 : vector<8x128xf32>
    %56 = math.tanh %55 : vector<8x128xf32>
    %57 = arith.index_cast %c4_i32 : i32 to index
    %c0_35 = arith.constant 0 : index
    %c0_36 = arith.constant 0 : index
    %58 = vector.load %arg12[%57, %c0_35, %c0_36] : memref<8x8x128xf32, #tpu.memory_space<vmem>>, vector<1x8x128xf32>
    %59 = vector.shape_cast %58 : vector<1x8x128xf32> to vector<8x128xf32>
    %60 = vector.shape_cast %56 : vector<8x128xf32> to vector<1x8x128xf32>
    tpu.vector_store %arg12[%57, %c0_35, %c0_36], %60 {strides = array<i32>} : memref<8x8x128xf32, #tpu.memory_space<vmem>>, vector<1x8x128xf32>,
    %c5_i32 = arith.constant 5 : i32
    %61 = arith.index_cast %c5_i32 : i32 to index
    %c0_37 = arith.constant 0 : index
    %c0_38 = arith.constant 0 : index
    %62 = vector.load %arg12[%61, %c0_37, %c0_38] : memref<8x8x128xf32, #tpu.memory_space<vmem>>, vector<1x8x128xf32>
    %63 = vector.shape_cast %62 : vector<1x8x128xf32> to vector<8x128xf32>
    %cst_39 = arith.constant dense<0.000000e+00> : vector<8x128xf32>
    %64 = tpu.matmul %56, %1, %cst_39 {dimension_numbers = #tpu.dot_dimension_numbers<[1], [0], [0], [1], [0, 0, 1, 1], [], []>, precision = #tpu.contract_precision<fp32>} : vector<8x128xf32>, vector<128x128xf32>, vector<8x128xf32> -> vector<8x128xf32>
    %65 = arith.addf %63, %64 : vector<8x128xf32>
    %66 = math.tanh %65 : vector<8x128xf32>
    %67 = arith.index_cast %c5_i32 : i32 to index
    %c0_40 = arith.constant 0 : index
    %c0_41 = arith.constant 0 : index
    %68 = vector.load %arg12[%67, %c0_40, %c0_41] : memref<8x8x128xf32, #tpu.memory_space<vmem>>, vector<1x8x128xf32>
    %69 = vector.shape_cast %68 : vector<1x8x128xf32> to vector<8x128xf32>
    %70 = vector.shape_cast %66 : vector<8x128xf32> to vector<1x8x128xf32>
    tpu.vector_store %arg12[%67, %c0_40, %c0_41], %70 {strides = array<i32>} : memref<8x8x128xf32, #tpu.memory_space<vmem>>, vector<1x8x128xf32>,
    %c6_i32 = arith.constant 6 : i32
    %71 = arith.index_cast %c6_i32 : i32 to index
    %c0_42 = arith.constant 0 : index
    %c0_43 = arith.constant 0 : index
    %72 = vector.load %arg12[%71, %c0_42, %c0_43] : memref<8x8x128xf32, #tpu.memory_space<vmem>>, vector<1x8x128xf32>
    %73 = vector.shape_cast %72 : vector<1x8x128xf32> to vector<8x128xf32>
    %cst_44 = arith.constant dense<0.000000e+00> : vector<8x128xf32>
    %74 = tpu.matmul %66, %1, %cst_44 {dimension_numbers = #tpu.dot_dimension_numbers<[1], [0], [0], [1], [0, 0, 1, 1], [], []>, precision = #tpu.contract_precision<fp32>} : vector<8x128xf32>, vector<128x128xf32>, vector<8x128xf32> -> vector<8x128xf32>
    %75 = arith.addf %73, %74 : vector<8x128xf32>
    %76 = math.tanh %75 : vector<8x128xf32>
    %77 = arith.index_cast %c6_i32 : i32 to index
    %c0_45 = arith.constant 0 : index
    %c0_46 = arith.constant 0 : index
    %78 = vector.load %arg12[%77, %c0_45, %c0_46] : memref<8x8x128xf32, #tpu.memory_space<vmem>>, vector<1x8x128xf32>
    %79 = vector.shape_cast %78 : vector<1x8x128xf32> to vector<8x128xf32>
    %80 = vector.shape_cast %76 : vector<8x128xf32> to vector<1x8x128xf32>
    tpu.vector_store %arg12[%77, %c0_45, %c0_46], %80 {strides = array<i32>} : memref<8x8x128xf32, #tpu.memory_space<vmem>>, vector<1x8x128xf32>,
    %c7_i32 = arith.constant 7 : i32
    %81 = arith.index_cast %c7_i32 : i32 to index
    %c0_47 = arith.constant 0 : index
    %c0_48 = arith.constant 0 : index
    %82 = vector.load %arg12[%81, %c0_47, %c0_48] : memref<8x8x128xf32, #tpu.memory_space<vmem>>, vector<1x8x128xf32>
    %83 = vector.shape_cast %82 : vector<1x8x128xf32> to vector<8x128xf32>
    %cst_49 = arith.constant dense<0.000000e+00> : vector<8x128xf32>
    %84 = tpu.matmul %76, %1, %cst_49 {dimension_numbers = #tpu.dot_dimension_numbers<[1], [0], [0], [1], [0, 0, 1, 1], [], []>, precision = #tpu.contract_precision<fp32>} : vector<8x128xf32>, vector<128x128xf32>, vector<8x128xf32> -> vector<8x128xf32>
    %85 = arith.addf %83, %84 : vector<8x128xf32>
    %86 = math.tanh %85 : vector<8x128xf32>
    %87 = arith.index_cast %c7_i32 : i32 to index
    %c0_50 = arith.constant 0 : index
    %c0_51 = arith.constant 0 : index
    %88 = vector.load %arg12[%87, %c0_50, %c0_51] : memref<8x8x128xf32, #tpu.memory_space<vmem>>, vector<1x8x128xf32>
    %89 = vector.shape_cast %88 : vector<1x8x128xf32> to vector<8x128xf32>
    %90 = vector.shape_cast %86 : vector<8x128xf32> to vector<1x8x128xf32>
    tpu.vector_store %arg12[%87, %c0_50, %c0_51], %90 {strides = array<i32>} : memref<8x8x128xf32, #tpu.memory_space<vmem>>, vector<1x8x128xf32>,
    %c8_i32 = arith.constant 8 : i32
    %c0_52 = arith.constant 0 : index
    %c0_53 = arith.constant 0 : index
    %91 = vector.load %arg4[%c0_52, %c0_53] : memref<128x128xf32, #tpu.memory_space<vmem>>, vector<128x128xf32>
    %c0_54 = arith.constant 0 : index
    %c0_55 = arith.constant 0 : index
    %92 = vector.load %arg5[%c0_54, %c0_55] : memref<128x128xf32, #tpu.memory_space<vmem>>, vector<128x128xf32>
    %c0_56 = arith.constant 0 : index
    %c0_57 = arith.constant 0 : index
    %93 = vector.load %arg6[%c0_56, %c0_57] : memref<1x128xf32, #tpu.memory_space<vmem>>, vector<1x128xf32>
    %c0_58 = arith.constant 0 : index
    %c0_59 = arith.constant 0 : index
    %c0_60 = arith.constant 0 : index
    %94 = vector.load %arg12[%c0_58, %c0_59, %c0_60] : memref<8x8x128xf32, #tpu.memory_space<vmem>>, vector<8x8x128xf32>
    %95 = vector.shape_cast %94 : vector<8x8x128xf32> to vector<64x128xf32>
    %cst_61 = arith.constant dense<0.000000e+00> : vector<64x128xf32>
    %96 = tpu.matmul %95, %91, %cst_61 {dimension_numbers = #tpu.dot_dimension_numbers<[1], [0], [0], [1], [0, 0, 1, 1], [], []>, precision = #tpu.contract_precision<fp32>} : vector<64x128xf32>, vector<128x128xf32>, vector<64x128xf32> -> vector<64x128xf32>
    %97 = vector.broadcast %93 : vector<1x128xf32> to vector<64x128xf32>
    %98 = arith.addf %96, %97 : vector<64x128xf32>
    %99 = vector.shape_cast %98 : vector<64x128xf32> to vector<8x8x128xf32>
    %c0_62 = arith.constant 0 : index
    %c0_63 = arith.constant 0 : index
    %c0_64 = arith.constant 0 : index
    %100 = vector.load %arg13[%c0_62, %c0_63, %c0_64] : memref<8x8x128xf32, #tpu.memory_space<vmem>>, vector<8x8x128xf32>
    tpu.vector_store %arg13[%c0_62, %c0_63, %c0_64], %99 {strides = array<i32>} : memref<8x8x128xf32, #tpu.memory_space<vmem>>, vector<8x8x128xf32>,
    %cst_65 = arith.constant 0.000000e+00 : f32
    %101 = vector.broadcast %cst_65 : f32 to vector<8x128xf32>
    %c0_i32_66 = arith.constant 0 : i32
    %102 = arith.index_cast %c0_i32_66 : i32 to index
    %c0_67 = arith.constant 0 : index
    %c0_68 = arith.constant 0 : index
    %103 = vector.load %arg13[%102, %c0_67, %c0_68] : memref<8x8x128xf32, #tpu.memory_space<vmem>>, vector<1x8x128xf32>
    %104 = vector.shape_cast %103 : vector<1x8x128xf32> to vector<8x128xf32>
    %cst_69 = arith.constant dense<0.000000e+00> : vector<8x128xf32>
    %105 = tpu.matmul %101, %92, %cst_69 {dimension_numbers = #tpu.dot_dimension_numbers<[1], [0], [0], [1], [0, 0, 1, 1], [], []>, precision = #tpu.contract_precision<fp32>} : vector<8x128xf32>, vector<128x128xf32>, vector<8x128xf32> -> vector<8x128xf32>
    %106 = arith.addf %104, %105 : vector<8x128xf32>
    %107 = math.tanh %106 : vector<8x128xf32>
    %c1_i32_70 = arith.constant 1 : i32
    %108 = arith.index_cast %c1_i32_70 : i32 to index
    %c0_71 = arith.constant 0 : index
    %c0_72 = arith.constant 0 : index
    %109 = vector.load %arg13[%108, %c0_71, %c0_72] : memref<8x8x128xf32, #tpu.memory_space<vmem>>, vector<1x8x128xf32>
    %110 = vector.shape_cast %109 : vector<1x8x128xf32> to vector<8x128xf32>
    %cst_73 = arith.constant dense<0.000000e+00> : vector<8x128xf32>
    %111 = tpu.matmul %107, %92, %cst_73 {dimension_numbers = #tpu.dot_dimension_numbers<[1], [0], [0], [1], [0, 0, 1, 1], [], []>, precision = #tpu.contract_precision<fp32>} : vector<8x128xf32>, vector<128x128xf32>, vector<8x128xf32> -> vector<8x128xf32>
    %112 = arith.addf %110, %111 : vector<8x128xf32>
    %113 = math.tanh %112 : vector<8x128xf32>
    %c2_i32_74 = arith.constant 2 : i32
    %114 = arith.index_cast %c2_i32_74 : i32 to index
    %c0_75 = arith.constant 0 : index
    %c0_76 = arith.constant 0 : index
    %115 = vector.load %arg13[%114, %c0_75, %c0_76] : memref<8x8x128xf32, #tpu.memory_space<vmem>>, vector<1x8x128xf32>
    %116 = vector.shape_cast %115 : vector<1x8x128xf32> to vector<8x128xf32>
    %cst_77 = arith.constant dense<0.000000e+00> : vector<8x128xf32>
    %117 = tpu.matmul %113, %92, %cst_77 {dimension_numbers = #tpu.dot_dimension_numbers<[1], [0], [0], [1], [0, 0, 1, 1], [], []>, precision = #tpu.contract_precision<fp32>} : vector<8x128xf32>, vector<128x128xf32>, vector<8x128xf32> -> vector<8x128xf32>
    %118 = arith.addf %116, %117 : vector<8x128xf32>
    %119 = math.tanh %118 : vector<8x128xf32>
    %c3_i32_78 = arith.constant 3 : i32
    %120 = arith.index_cast %c3_i32_78 : i32 to index
    %c0_79 = arith.constant 0 : index
    %c0_80 = arith.constant 0 : index
    %121 = vector.load %arg13[%120, %c0_79, %c0_80] : memref<8x8x128xf32, #tpu.memory_space<vmem>>, vector<1x8x128xf32>
    %122 = vector.shape_cast %121 : vector<1x8x128xf32> to vector<8x128xf32>
    %cst_81 = arith.constant dense<0.000000e+00> : vector<8x128xf32>
    %123 = tpu.matmul %119, %92, %cst_81 {dimension_numbers = #tpu.dot_dimension_numbers<[1], [0], [0], [1], [0, 0, 1, 1], [], []>, precision = #tpu.contract_precision<fp32>} : vector<8x128xf32>, vector<128x128xf32>, vector<8x128xf32> -> vector<8x128xf32>
    %124 = arith.addf %122, %123 : vector<8x128xf32>
    %125 = math.tanh %124 : vector<8x128xf32>
    %c4_i32_82 = arith.constant 4 : i32
    %126 = arith.index_cast %c4_i32_82 : i32 to index
    %c0_83 = arith.constant 0 : index
    %c0_84 = arith.constant 0 : index
    %127 = vector.load %arg13[%126, %c0_83, %c0_84] : memref<8x8x128xf32, #tpu.memory_space<vmem>>, vector<1x8x128xf32>
    %128 = vector.shape_cast %127 : vector<1x8x128xf32> to vector<8x128xf32>
    %cst_85 = arith.constant dense<0.000000e+00> : vector<8x128xf32>
    %129 = tpu.matmul %125, %92, %cst_85 {dimension_numbers = #tpu.dot_dimension_numbers<[1], [0], [0], [1], [0, 0, 1, 1], [], []>, precision = #tpu.contract_precision<fp32>} : vector<8x128xf32>, vector<128x128xf32>, vector<8x128xf32> -> vector<8x128xf32>
    %130 = arith.addf %128, %129 : vector<8x128xf32>
    %131 = math.tanh %130 : vector<8x128xf32>
    %c5_i32_86 = arith.constant 5 : i32
    %132 = arith.index_cast %c5_i32_86 : i32 to index
    %c0_87 = arith.constant 0 : index
    %c0_88 = arith.constant 0 : index
    %133 = vector.load %arg13[%132, %c0_87, %c0_88] : memref<8x8x128xf32, #tpu.memory_space<vmem>>, vector<1x8x128xf32>
    %134 = vector.shape_cast %133 : vector<1x8x128xf32> to vector<8x128xf32>
    %cst_89 = arith.constant dense<0.000000e+00> : vector<8x128xf32>
    %135 = tpu.matmul %131, %92, %cst_89 {dimension_numbers = #tpu.dot_dimension_numbers<[1], [0], [0], [1], [0, 0, 1, 1], [], []>, precision = #tpu.contract_precision<fp32>} : vector<8x128xf32>, vector<128x128xf32>, vector<8x128xf32> -> vector<8x128xf32>
    %136 = arith.addf %134, %135 : vector<8x128xf32>
    %137 = math.tanh %136 : vector<8x128xf32>
    %c6_i32_90 = arith.constant 6 : i32
    %138 = arith.index_cast %c6_i32_90 : i32 to index
    %c0_91 = arith.constant 0 : index
    %c0_92 = arith.constant 0 : index
    %139 = vector.load %arg13[%138, %c0_91, %c0_92] : memref<8x8x128xf32, #tpu.memory_space<vmem>>, vector<1x8x128xf32>
    %140 = vector.shape_cast %139 : vector<1x8x128xf32> to vector<8x128xf32>
    %cst_93 = arith.constant dense<0.000000e+00> : vector<8x128xf32>
    %141 = tpu.matmul %137, %92, %cst_93 {dimension_numbers = #tpu.dot_dimension_numbers<[1], [0], [0], [1], [0, 0, 1, 1], [], []>, precision = #tpu.contract_precision<fp32>} : vector<8x128xf32>, vector<128x128xf32>, vector<8x128xf32> -> vector<8x128xf32>
    %142 = arith.addf %140, %141 : vector<8x128xf32>
    %143 = math.tanh %142 : vector<8x128xf32>
    %c7_i32_94 = arith.constant 7 : i32
    %144 = arith.index_cast %c7_i32_94 : i32 to index
    %c0_95 = arith.constant 0 : index
    %c0_96 = arith.constant 0 : index
    %145 = vector.load %arg13[%144, %c0_95, %c0_96] : memref<8x8x128xf32, #tpu.memory_space<vmem>>, vector<1x8x128xf32>
    %146 = vector.shape_cast %145 : vector<1x8x128xf32> to vector<8x128xf32>
    %cst_97 = arith.constant dense<0.000000e+00> : vector<8x128xf32>
    %147 = tpu.matmul %143, %92, %cst_97 {dimension_numbers = #tpu.dot_dimension_numbers<[1], [0], [0], [1], [0, 0, 1, 1], [], []>, precision = #tpu.contract_precision<fp32>} : vector<8x128xf32>, vector<128x128xf32>, vector<8x128xf32> -> vector<8x128xf32>
    %148 = arith.addf %146, %147 : vector<8x128xf32>
    %149 = math.tanh %148 : vector<8x128xf32>
    %c8_i32_98 = arith.constant 8 : i32
    %150 = math.tanh %149 : vector<8x128xf32>
    %c0_99 = arith.constant 0 : index
    %c0_100 = arith.constant 0 : index
    %151 = vector.load %arg7[%c0_99, %c0_100] : memref<128x128xf32, #tpu.memory_space<vmem>>, vector<128x128xf32>
    %cst_101 = arith.constant dense<0.000000e+00> : vector<8x128xf32>
    %152 = tpu.matmul %150, %151, %cst_101 {dimension_numbers = #tpu.dot_dimension_numbers<[1], [0], [0], [1], [0, 0, 1, 1], [], []>, precision = #tpu.contract_precision<fp32>} : vector<8x128xf32>, vector<128x128xf32>, vector<8x128xf32> -> vector<8x128xf32>
    %c0_102 = arith.constant 0 : index
    %c0_103 = arith.constant 0 : index
    %153 = vector.load %arg8[%c0_102, %c0_103] : memref<1x128xf32, #tpu.memory_space<vmem>>, vector<1x128xf32>
    %154 = vector.broadcast %153 : vector<1x128xf32> to vector<8x128xf32>
    %155 = arith.addf %152, %154 : vector<8x128xf32>
    %156 = math.tanh %155 : vector<8x128xf32>
    %c0_104 = arith.constant 0 : index
    %c0_105 = arith.constant 0 : index
    %157 = vector.load %arg9[%c0_104, %c0_105] : memref<128x128xf32, #tpu.memory_space<vmem>>, vector<128x128xf32>
    %cst_106 = arith.constant dense<0.000000e+00> : vector<8x128xf32>
    %158 = tpu.matmul %156, %157, %cst_106 {dimension_numbers = #tpu.dot_dimension_numbers<[1], [0], [0], [1], [0, 0, 1, 1], [], []>, precision = #tpu.contract_precision<fp32>} : vector<8x128xf32>, vector<128x128xf32>, vector<8x128xf32> -> vector<8x128xf32>
    %c0_107 = arith.constant 0 : index
    %c0_108 = arith.constant 0 : index
    %159 = vector.load %arg10[%c0_107, %c0_108] : memref<1x128xf32, #tpu.memory_space<vmem>>, vector<1x128xf32>
    %160 = vector.broadcast %159 : vector<1x128xf32> to vector<8x128xf32>
    %161 = arith.addf %158, %160 : vector<8x128xf32>
    %c0_109 = arith.constant 0 : index
    %c0_110 = arith.constant 0 : index
    %162 = vector.load %arg11[%c0_109, %c0_110] : memref<8x128xf32, #tpu.memory_space<vmem>>, vector<8x128xf32>
    tpu.vector_store %arg11[%c0_109, %c0_110], %161 {strides = array<i32>} : memref<8x128xf32, #tpu.memory_space<vmem>>, vector<8x128xf32>,
    return
  }
}

</mosaic_0001>

<bundles_post_ra>
// kernel: tpu_custom_call.1
= control target key start
LH: loop header
LB: loop body
LE: loop exit
PB: predicated region body
PF: predicated region fallthrough
CT: control target
= control target key end

     0   :  { %16 = vsyncpa [#allocation5], 0  ;;  %s27896_s0 = inlined_call_operand.hbm [shape: f32[8,8,128], index: 0, kind: input, shape index: {}]   ;;  %s27897_s1 = inlined_call_operand.hbm [shape: f32[128,128], index: 1, kind: input, shape index: {}]   ;;  %s27898_s2 = inlined_call_operand.hbm [shape: f32[128,128], index: 2, kind: input, shape index: {}]   ;;  %s27899_s3 = inlined_call_operand.vmem [shape: f32[1,128], index: 3, kind: input, shape index: {}]   ;;  %s27900_s4 = inlined_call_operand.hbm [shape: f32[128,128], index: 4, kind: input, shape index: {}]   ;;  %s27901_s5 = inlined_call_operand.hbm [shape: f32[128,128], index: 5, kind: input, shape index: {}]   ;;  %s27902_s6 = inlined_call_operand.vmem [shape: f32[1,128], index: 6, kind: input, shape index: {}]   ;;  %s27903_s7 = inlined_call_operand.hbm [shape: f32[128,128], index: 7, kind: input, shape index: {}]   ;;  %s27904_s8 = inlined_call_operand.vmem [shape: f32[1,128], index: 8, kind: input, shape index: {}]   ;;  %s27905_s9 = inlined_call_operand.hbm [shape: f32[128,128], index: 9, kind: input, shape index: {}]   ;;  %s27906_s10 = inlined_call_operand.vmem [shape: f32[1,128], index: 10, kind: input, shape index: {}]   ;;  %s27907_s11 = inlined_call_operand.hbm [shape: f32[8,128], index: 11, kind: output, shape index: {}]  }
   0x1   :  { %17 = vsyncpa [#allocation8], 0 }
   0x2   :  { %18 = vsyncpa [#allocation11], 0 }
   0x3   :  { %19 = vsyncpa [#allocation14], 0 }
   0x4   :  { %20 = vsyncpa [#allocation6], 0  ;;  %s23702_s17 = smov [#allocation7]   ;;  %s23703_s19 = smov [#allocation10]  }
   0x5   :  { %s38_s18 = sshll.u32 %s23702_s17, 4  ;;  %s64_s20 = sshll.u32 %s23703_s19, 4  ;;  %s39_s18 = int_to_ptr.vmem [resolvable:$true] %s38_s18  ;;  %s23775_s20 = int_to_ptr.vmem [resolvable:$true] %s64_s20 }
   0x6   :  { %s23516_s23 = scalar_lea.hbm %s27897_s1, 2048 }
   0x7   :  { %p23517_p0 = scmp.ne.s32.totalorder %s27897_s1, %s23516_s23  ;;  %p23520_p1 = scmp.lt.u32.totalorder %s23516_s23, %s27897_s1 }
   0x9   :  { %p23522_p2 = pnand %p23520_p1, %p23517_p0 }
   0xb   :  { %23525 = shalt.err (!%p23522_p2)
}
   0xc   :  { %s23526_s28 = scalar_lea.vmem %s39_s18, 2048  ;;  %p23531_p4 = scmp.lt.s32.totalorder %s39_s18, %s39_s18 }
   0xd   :  { %p23527_p3 = scmp.ne.s32.totalorder %s39_s18, %s23526_s28  ;;  %p23532_p5 = scmp.lt.s32.totalorder %s23526_s28, %s23526_s28 }
   0xf   :  { %p23533_p6 = por %p23532_p5, %p23531_p4 }
  0x11   :  { %p23534_p7 = pnand %p23533_p6, %p23527_p3 }
  0x13   :  { %23537 = shalt.err (!%p23534_p7)
}
  0x14   :  { %s23704_s29 = smov 128   ;;  %s23705_s30 = smov 8  }
  0x15   :  { %44 = dma.hbm_to_vmem [thread:$0]  %s27897_s1, 2048, %s39_s18, [#allocation8], %s23704_s29, %s23704_s29, %s23705_s30  }
  0x16   :  { %s23538_s16 = scalar_lea.hbm %s27900_s4, 2048 }
  0x17   :  { %p23539_p8 = scmp.ne.s32.totalorder %s27900_s4, %s23538_s16  ;;  %p23542_p9 = scmp.lt.u32.totalorder %s23538_s16, %s27900_s4 }
  0x19   :  { %p23544_p10 = pnand %p23542_p9, %p23539_p8 }
  0x1b   :  { %23547 = shalt.err (!%p23544_p10)
}
  0x1c   :  { %s23548_s23 = scalar_lea.vmem %s23775_s20, 2048  ;;  %p23553_p12 = scmp.lt.s32.totalorder %s23775_s20, %s23775_s20 }
  0x1d   :  { %p23549_p11 = scmp.ne.s32.totalorder %s23775_s20, %s23548_s23  ;;  %p23554_p13 = scmp.lt.s32.totalorder %s23548_s23, %s23548_s23 }
  0x1f   :  { %p23555_p0 = por %p23554_p13, %p23553_p12 }
  0x21   :  { %p23556_p1 = pnand %p23555_p0, %p23549_p11 }
  0x23   :  { %23559 = shalt.err (!%p23556_p1)
}
  0x24   :  { %70 = dma.hbm_to_vmem [thread:$0]  %s27900_s4, 2048, %s23775_s20, [#allocation11], %s23704_s29, %s23704_s29, %s23705_s30  }
  0x25   :  { %s23706_s24 = smov [#allocation13]   ;;  %s23707_s26 = smov [#allocation4]  }
  0x26   :  { %s90_s25 = sshll.u32 %s23706_s24, 4  ;;  %s26_s27 = sshll.u32 %s23707_s26, 4  ;;  %s91_s25 = int_to_ptr.vmem [resolvable:$true] %s90_s25  ;;  %s23812_s27 = int_to_ptr.vmem [resolvable:$true] %s26_s27 }
  0x27   :  { %s23560_s13 = scalar_lea.hbm %s27903_s7, 2048 }
  0x28   :  { %p23561_p2 = scmp.ne.s32.totalorder %s27903_s7, %s23560_s13  ;;  %p23564_p3 = scmp.lt.u32.totalorder %s23560_s13, %s27903_s7 }
  0x2a   :  { %p23566_p4 = pnand %p23564_p3, %p23561_p2 }
  0x2c   :  { %23569 = shalt.err (!%p23566_p4)
}
  0x2d   :  { %s23570_s4 = scalar_lea.vmem %s91_s25, 2048  ;;  %p23575_p6 = scmp.lt.s32.totalorder %s91_s25, %s91_s25 }
  0x2e   :  { %p23571_p5 = scmp.ne.s32.totalorder %s91_s25, %s23570_s4  ;;  %p23576_p7 = scmp.lt.s32.totalorder %s23570_s4, %s23570_s4 }
  0x30   :  { %p23577_p8 = por %p23576_p7, %p23575_p6 }
  0x32   :  { %p23578_p9 = pnand %p23577_p8, %p23571_p5 }
  0x34   :  { %23581 = shalt.err (!%p23578_p9)
}
  0x35   :  { %96 = dma.hbm_to_vmem [thread:$0]  %s27903_s7, 2048, %s91_s25, [#allocation14], %s23704_s29, %s23704_s29, %s23705_s30  }
  0x36   :  { %s23582_s23 = scalar_lea.hbm %s27896_s0, 1024 }
  0x37   :  { %p23583_p10 = scmp.ne.s32.totalorder %s27896_s0, %s23582_s23  ;;  %p23586_p11 = scmp.lt.u32.totalorder %s23582_s23, %s27896_s0 }
  0x39   :  { %p23588_p12 = pnand %p23586_p11, %p23583_p10 }
  0x3b   :  { %23591 = shalt.err (!%p23588_p12)
}
  0x3c   :  { %s23592_s28 = scalar_lea.vmem %s23812_s27, 1024  ;;  %p23597_p0 = scmp.lt.s32.totalorder %s23812_s27, %s23812_s27 }
  0x3d   :  { %p23593_p13 = scmp.ne.s32.totalorder %s23812_s27, %s23592_s28  ;;  %p23598_p1 = scmp.lt.s32.totalorder %s23592_s28, %s23592_s28 }
  0x3f   :  { %p23599_p2 = por %p23598_p1, %p23597_p0 }
  0x41   :  { %p23600_p3 = pnand %p23599_p2, %p23593_p13 }
  0x43   :  { %23603 = shalt.err (!%p23600_p3)
}
  0x44   :  { %32 = dma.hbm_to_vmem [thread:$0]  %s27896_s0, 1024, %s23812_s27, [#allocation5], %s23704_s29, %s23704_s29, %s23705_s30  }
  0x45   :  { %s23708_s12 = smov [#allocation9]   ;;  %s23709_s14 = smov [#allocation12]  }
  0x46   :  { %s50_s13 = sshll.u32 %s23708_s12, 4  ;;  %s76_s15 = sshll.u32 %s23709_s14, 4  ;;  %s51_s13 = int_to_ptr.vmem [resolvable:$true] %s50_s13  ;;  %s23849_s15 = int_to_ptr.vmem [resolvable:$true] %s76_s15 }
  0x47   :  { %s23604_s4 = scalar_lea.hbm %s27898_s2, 2048 }
  0x48   :  { %p23605_p4 = scmp.ne.s32.totalorder %s27898_s2, %s23604_s4  ;;  %p23608_p5 = scmp.lt.u32.totalorder %s23604_s4, %s27898_s2 }
  0x4a   :  { %p23610_p6 = pnand %p23608_p5, %p23605_p4 }
  0x4c   :  { %23613 = shalt.err (!%p23610_p6)
}
  0x4d   :  { %s23614_s0 = scalar_lea.vmem %s51_s13, 2048  ;;  %p23619_p8 = scmp.lt.s32.totalorder %s51_s13, %s51_s13 }
  0x4e   :  { %p23615_p7 = scmp.ne.s32.totalorder %s51_s13, %s23614_s0  ;;  %p23620_p9 = scmp.lt.s32.totalorder %s23614_s0, %s23614_s0 }
  0x50   :  { %p23621_p10 = por %p23620_p9, %p23619_p8 }
  0x52   :  { %p23622_p11 = pnand %p23621_p10, %p23615_p7 }
  0x54   :  { %23625 = shalt.err (!%p23622_p11)
}
  0x55   :  { %56 = dma.hbm_to_vmem [thread:$0]  %s27898_s2, 2048, %s51_s13, [#allocation8], %s23704_s29, %s23704_s29, %s23705_s30  }
  0x56   :  { %s23626_s24 = scalar_lea.hbm %s27901_s5, 2048 }
  0x57   :  { %p23627_p12 = scmp.ne.s32.totalorder %s27901_s5, %s23626_s24  ;;  %p23630_p13 = scmp.lt.u32.totalorder %s23626_s24, %s27901_s5 }
  0x59   :  { %p23632_p0 = pnand %p23630_p13, %p23627_p12 }
  0x5b   :  { %23635 = shalt.err (!%p23632_p0)
}
  0x5c   :  { %s23636_s12 = scalar_lea.vmem %s23849_s15, 2048  ;;  %p23641_p2 = scmp.lt.s32.totalorder %s23849_s15, %s23849_s15 }
  0x5d   :  { %p23637_p1 = scmp.ne.s32.totalorder %s23849_s15, %s23636_s12  ;;  %p23642_p3 = scmp.lt.s32.totalorder %s23636_s12, %s23636_s12 }
  0x5f   :  { %p23643_p4 = por %p23642_p3, %p23641_p2 }
  0x61   :  { %p23644_p5 = pnand %p23643_p4, %p23637_p1 }
  0x63   :  { %23647 = shalt.err (!%p23644_p5)
}
  0x64   :  { %82 = dma.hbm_to_vmem [thread:$0]  %s27901_s5, 2048, %s23849_s15, [#allocation11], %s23704_s29, %s23704_s29, %s23705_s30  }
  0x65   :  { %s23710_s14 = smov [#allocation15]   ;;  %s23648_s20 = scalar_lea.hbm %s27905_s9, 2048 }
  0x66   :  { %s104_s16 = sshll.u32 %s23710_s14, 4  ;;  %p23649_p6 = scmp.ne.s32.totalorder %s27905_s9, %s23648_s20  ;;  %s105_s16 = int_to_ptr.vmem [resolvable:$true] %s104_s16 }
  0x67   :  { %p23652_p7 = scmp.lt.u32.totalorder %s23648_s20, %s27905_s9 }
  0x69   :  { %p23654_p8 = pnand %p23652_p7, %p23649_p6 }
  0x6b   :  { %23657 = shalt.err (!%p23654_p8)
}
  0x6c   :  { %s23658_s27 = scalar_lea.vmem %s105_s16, 2048  ;;  %p23663_p10 = scmp.lt.s32.totalorder %s105_s16, %s105_s16 }
  0x6d   :  { %p23659_p9 = scmp.ne.s32.totalorder %s105_s16, %s23658_s27  ;;  %p23664_p11 = scmp.lt.s32.totalorder %s23658_s27, %s23658_s27 }
  0x6f   :  { %p23665_p12 = por %p23664_p11, %p23663_p10 }
  0x71   :  { %p23666_p13 = pnand %p23665_p12, %p23659_p9 }
  0x73   :  { %23669 = shalt.err (!%p23666_p13)
}
  0x74   :  { %110 = dma.hbm_to_vmem [thread:$0]  %s27905_s9, 2048, %s105_s16, [#allocation14], %s23704_s29, %s23704_s29, %s23705_s30  }
  0x75   :  { %23692 = dma.done.wait [#allocation5], 1024  }
  0x76   :  { %23693 = vsyncadd [#allocation5], 4294966272 }
  0x77   :  { %23694 = dma.done.wait [#allocation8], 4096  }
  0x78   :  { %23695 = vsyncadd [#allocation8], 4294963200 }
  0x79   :  { %23696 = dma.done.wait [#allocation11], 4096  }
  0x7a   :  { %23697 = vsyncadd [#allocation11], 4294963200 }
  0x7b   :  { %23698 = dma.done.wait [#allocation14], 4096  }
  0x7c   :  { %23699 = vsyncadd [#allocation14], 4294963200  ;;  %v27944_v0 = vmov 0.0|0.0   ;;  %vm23712_vm0 = vmmov 0   ;;  %v27908_v1 = vmov 0.0   ;;  %v23904_v2 = vld [vmem:[#allocation7] sm:$0xff] }
  0x7d   :  { %20405 = vmatprep.subr.bf16.mxu1 %v27944_v0  ;;  %16201 = vmatprep.mubr.msk.f32.mxu1 %vm23712_vm0, %v27908_v1  ;;  %v23906_v3 = vld [vmem:[#allocation7 + $0x8] sm:$0xff]  ;;  %v23908_v4 = vld [vmem:[#allocation9] sm:$0xff]  ;;  %v182_v5 = vand.u32 4294901760, %v23904_v2  ;;  %v23915_v9 = vld [vmem:[#allocation7 + $0x10] sm:$0xff]  ;;  %s23714_s18 = smov [#allocation16]  }
  0x7e   :  { %v185_v6 = vand.u32 4294901760, %v23906_v3  ;;  %v23912_v7 = vld [vmem:[#allocation9 + $0x8] sm:$0xff]  ;;  %v1133_v8 = vand.u32 4294901760, %v23908_v4  ;;  %v23917_v10 = vld [vmem:[#allocation7 + $0x18] sm:$0xff]  ;;  %v27927_v12 = vand.u32 4294901760, %v23915_v9  ;;  %v23922_v14 = vld [vmem:[#allocation9 + $0x10] sm:$0xff] }
  0x7f   :  { %v1136_v11 = vand.u32 4294901760, %v23912_v7  ;;  %v27926_v13 = vand.u32 4294901760, %v23917_v10  ;;  %v23924_v15 = vld [vmem:[#allocation9 + $0x18] sm:$0xff]  ;;  %v23926_v16 = vld [vmem:[#allocation7 + $0x20] sm:$0xff]  ;;  %v27923_v18 = vand.u32 4294901760, %v23922_v14  ;;  %v23936_v20 = vld [vmem:[#allocation7 + $0x28] sm:$0xff] }
  0x80   :  { %v23932_v17 = vpack.c.bf16 %v185_v6, %v182_v5  ;;  %v27922_v19 = vand.u32 4294901760, %v23924_v15  ;;  %v27921_v21 = vand.u32 4294901760, %v23926_v16  ;;  %v23939_v22 = vld [vmem:[#allocation9 + $0x20] sm:$0xff]  ;;  %v23941_v23 = vld [vmem:[#allocation9 + $0x28] sm:$0xff]  ;;  %v27916_v26 = vand.u32 4294901760, %v23936_v20  ;;  %v23957_v28 = vld [vmem:[#allocation7 + $0x30] sm:$0xff] }
  0x81   :  { %v23947_v24 = vpack.c.bf16 %v1136_v11, %v1133_v8  ;;  %v23953_v25 = vpack.c.bf16 %v27926_v13, %v27927_v12  ;;  %v27915_v27 = vand.u32 4294901760, %v23939_v22  ;;  %v23959_v29 = vld [vmem:[#allocation7 + $0x38] sm:$0xff]  ;;  %v23961_v30 = vld [vmem:[#allocation9 + $0x30] sm:$0xff]  ;;  %v27914_v31 = vand.u32 4294901760, %v23941_v23  ;;  %v23969_v35 = vld [vmem:[#allocation7 + $0x40] sm:$0xff]  ;;  %s13765_s24 = sshll.u32 %s23714_s18, 4  ;;  %s13766_s24 = int_to_ptr.vmem [resolvable:$true] %s13765_s24 }
  0x82   :  { %28152 = vst [vmem:[#allocation22_spill] sm:$0xff] %v23932_v17  ;;  %20214 = vmatprep.subr.bf16.mxu0 %v23932_v17  ;;  %v27913_v32 = vand.u32 4294901760, %v23957_v28  ;;  %v27912_v33 = vand.u32 4294901760, %v23959_v29  ;;  %v23967_v34 = vld [vmem:[#allocation9 + $0x38] sm:$0xff]  ;;  %v23971_v36 = vld [vmem:[#allocation7 + $0x48] sm:$0xff]  ;;  %v23979_v37 = vpack.c.bf16 %v27922_v19, %v27923_v18  ;;  %v27911_v38 = vand.u32 4294901760, %v23961_v30  ;;  %p23675_p1 = scmp.lt.s32.totalorder %s13766_s24, %s13766_s24 }
  0x83   :  { %28153 = vst [vmem:[#allocation23_spill] sm:$0xff] %v23947_v24  ;;  %28154 = vst [vmem:[#allocation24_spill] sm:$0xff] %v23953_v25  ;;  %20407 = vmatpush3.bf16.msra.mxu1 %v23947_v24  ;;  %20216 = vmatpush3.bf16.msra.mxu0 %v23932_v17  ;;  %v27910_v39 = vand.u32 4294901760, %v23967_v34  ;;  %v27920_v40 = vand.u32 4294901760, %v23969_v35  ;;  %v23984_v41 = vld [vmem:[#allocation9 + $0x40] sm:$0xff]  ;;  %v23986_v42 = vld [vmem:[#allocation9 + $0x48] sm:$0xff]  ;;  %v23996_v44 = vpack.c.bf16 %v27916_v26, %v27921_v21 }
  0x84   :  { %28155 = vst [vmem:[#allocation25_spill] sm:$0xff] %v23979_v37  ;;  %v23988_v43 = vld [vmem:[#allocation7 + $0x50] sm:$0xff]  ;;  %20408 = vmatprep.subr.bf16.mxu1 %v27944_v0  ;;  %20218 = vmatprep.subr.bf16.mxu0 %v23953_v25  ;;  %v24002_v45 = vpack.c.bf16 %v27914_v31, %v27915_v27  ;;  %v27917_v46 = vand.u32 4294901760, %v23971_v36  ;;  %v27919_v47 = vand.u32 4294901760, %v23984_v41  ;;  %v24006_v48 = vld [vmem:[#allocation7 + $0x58] sm:$0xff]  ;;  %v24016_v51 = vpack.c.bf16 %v27912_v33, %v27913_v32  ;;  %v24021_v55 = vld [vmem:[#allocation7 + $0x60] sm:$0xff] }
  0x85   :  { %28156 = vst [vmem:[#allocation26_spill] sm:$0xff] %v23996_v44  ;;  %v24008_v49 = vld [vmem:[#allocation9 + $0x50] sm:$0xff]  ;;  %v24010_v50 = vld [vmem:[#allocation9 + $0x58] sm:$0xff]  ;;  %v27918_v52 = vand.u32 4294901760, %v23986_v42  ;;  %v27925_v53 = vand.u32 4294901760, %v23988_v43  ;;  %v27924_v54 = vand.u32 4294901760, %v24006_v48  ;;  %v24031_v58 = vpack.c.bf16 %v27910_v39, %v27911_v38 }
  0x86   :  { %28157 = vst [vmem:[#allocation27_spill] sm:$0xff] %v24002_v45  ;;  %28158 = vst [vmem:[#allocation28_spill] sm:$0xff] %v24016_v51  ;;  %v24023_v56 = vld [vmem:[#allocation7 + $0x68] sm:$0xff]  ;;  %v24025_v57 = vld [vmem:[#allocation9 + $0x60] sm:$0xff]  ;;  %v27935_v59 = vand.u32 4294901760, %v24008_v49  ;;  %v27928_v60 = vand.u32 4294901760, %v24010_v50  ;;  %v24048_v39 = vpack.c.bf16 %v27917_v46, %v27920_v40 }
  0x87   :  { %28159 = vst [vmem:[#allocation29_spill] sm:$0xff] %v24031_v58  ;;  %v27934_v61 = vand.u32 4294901760, %v24021_v55  ;;  %v24036_v62 = vld [vmem:[#allocation9 + $0x68] sm:$0xff]  ;;  %v24038_v63 = vld [vmem:[#allocation7 + $0x70] sm:$0xff]  ;;  %v24040_v1 = vld [vmem:[#allocation7 + $0x78] sm:$0xff]  ;;  %20410 = vmatpush3.bf16.msra.mxu1 %v23979_v37  ;;  %20220 = vmatpush3.bf16.msra.mxu0 %v23953_v25  ;;  %v24054_v38 = vpack.c.bf16 %v27918_v52, %v27919_v47  ;;  %v27929_v33 = vand.u32 4294901760, %v24023_v56  ;;  %v24068_v46 = vpack.c.bf16 %v27924_v54, %v27925_v53 }
  0x88   :  { %28160 = vst [vmem:[#allocation30_spill] sm:$0xff] %v24048_v39  ;;  %v27931_v32 = vand.u32 4294901760, %v24025_v57  ;;  %v24058_v31 = vld [vmem:[#allocation9 + $0x70] sm:$0xff]  ;;  %v24060_v27 = vld [vmem:[#allocation9 + $0x78] sm:$0xff]  ;;  %v167_v26 = vld [vmem:[#allocation4] sm:$0xff]  ;;  %20411 = vmatprep.subr.bf16.mxu1 %v27944_v0  ;;  %20222 = vmatprep.subr.bf16.mxu0 %v23996_v44  ;;  %v27930_v52 = vand.u32 4294901760, %v24036_v62  ;;  %v24077_v19 = vpack.c.bf16 %v27928_v60, %v27935_v59  ;;  %v24098_v60 = vsub.f32 %v23904_v2, %v182_v5 }
  0x89   :  { %28161 = vst [vmem:[#allocation31_spill] sm:$0xff] %v24054_v38  ;;  %28162 = vst [vmem:[#allocation32_spill] sm:$0xff] %v24068_v46  ;;  %v27933_v47 = vand.u32 4294901760, %v24038_v63  ;;  %v27932_v40 = vand.u32 4294901760, %v24040_v1  ;;  %v168_v21 = vld [vmem:[#allocation4 + $0x8] sm:$0xff]  ;;  %v24083_v18 = vpack.c.bf16 %v27929_v33, %v27934_v61  ;;  %v24086_v53 = vand.u32 4294901760, %v167_v26 }
  0x8a   :  { %28163 = vst [vmem:[#allocation33_spill] sm:$0xff] %v24077_v19  ;;  %v24092_v13 = vpack.c.bf16 %v27930_v52, %v27931_v32  ;;  %v24103_v33 = vsub.f32 %v23906_v3, %v185_v6  ;;  %v24119_v2 = vsub.f32 %v23908_v4, %v1133_v8  ;;  %v24121_v3 = vand.u32 4294901760, %v168_v21  ;;  %s23670_s26 = scalar_lea.vmem %s13766_s24, 128 }
  0x8b   :  { %28164 = vst [vmem:[#allocation34_spill] sm:$0xff] %v24083_v18  ;;  %20413 = vmatpush3.bf16.msra.mxu1 %v24002_v45  ;;  %20224 = vmatpush3.bf16.msra.mxu0 %v23996_v44  ;;  %v24111_v52 = vpack.c.bf16 %v27932_v40, %v27933_v47  ;;  %v24114_v32 = vsub.f32 %v167_v26, %v24086_v53  ;;  %v27937_v5 = vand.u32 4294901760, %v24098_v60  ;;  %v28168_v40 = vand.u32 4294901760, %v23915_v9  ;;  %p23671_p0 = scmp.ne.s32.totalorder %s13766_s24, %s23670_s26  ;;  %p23676_p2 = scmp.lt.s32.totalorder %s23670_s26, %s23670_s26 }
  0x8c   :  { %28165 = vst [vmem:[#allocation35_spill] sm:$0xff] %v24092_v13  ;;  %20414 = vmatprep.subr.bf16.mxu1 %v27944_v0  ;;  %20226 = vmatprep.subr.bf16.mxu0 %v24016_v51  ;;  %v27936_v6 = vand.u32 4294901760, %v24103_v33  ;;  %v24130_v26 = vsub.f32 %v23912_v7, %v1136_v11  ;;  %v27943_v47 = vand.u32 4294901760, %v24119_v2  ;;  %v24140_v61 = vsub.f32 %v168_v21, %v24121_v3 }
  0x8d   :  { %28166 = vst [vmem:[#allocation36_spill] sm:$0xff] %v24111_v52  ;;  %28167 = vst [vmem:[#allocation37_spill] sm:$0xff] %v24114_v32  ;;  %v24135_v4 = vsub.f32 %v23915_v9, %v28168_v40  ;;  %v27938_v8 = vand.u32 4294901760, %v24114_v32  ;;  %v28170_v59 = vand.u32 4294901760, %v23917_v10  ;;  %v346_v7 = vsub.f32 %v24098_v60, %v27937_v5  ;;  %p23677_p3 = por %p23676_p2, %p23675_p1 }
  0x8e   :  { %28169 = vst [vmem:[#allocation38_spill] sm:$0xff] %v24140_v61  ;;  %v353_v9 = vsub.f32 %v24103_v33, %v27936_v6  ;;  %v27948_v11 = vand.u32 4294901760, %v24130_v26  ;;  %v1222_v21 = vsub.f32 %v24119_v2, %v27943_v47  ;;  %v28174_v45 = vand.u32 4294901760, %v24060_v27 }
  0x8f   :  { %v24145_v12 = vsub.f32 %v23917_v10, %v28170_v59  ;;  %20416 = vmatpush3.bf16.msra.mxu1 %v24031_v58  ;;  %20228 = vmatpush3.bf16.msra.mxu0 %v24016_v51  ;;  %v265_v10 = vsub.f32 %v24114_v32, %v27938_v8  ;;  %v27951_v59 = vand.u32 4294901760, %v24140_v61  ;;  %v347_v5 = vand.u32 4294901760, %v346_v7  ;;  %p23678_p4 = pnand %p23677_p3, %p23671_p0 }
  0x90   :  { %20417 = vmatprep.subr.bf16.mxu1 %v27944_v0  ;;  %20230 = vmatprep.subr.bf16.mxu0 %v24048_v39  ;;  %v354_v54 = vand.u32 4294901760, %v353_v9  ;;  %v1229_v40 = vsub.f32 %v24130_v26, %v27948_v11  ;;  %v28171_v8 = vand.u32 4294901760, %v24135_v4  ;;  %v1223_v47 = vand.u32 4294901760, %v1222_v21 }
  0x91   :  { %v266_v51 = vand.u32 4294901760, %v265_v10  ;;  %v24176_v6 = vsub.f32 %v24140_v61, %v27951_v59  ;;  %v28172_v0 = vand.u32 4294901760, %v24145_v12  ;;  %v28173_v9 = vand.u32 4294901760, %v24058_v31 }
  0x92   :  { %v360_v58 = vsub.f32 %v24135_v4, %v28171_v8  ;;  %v24187_v44 = vpack.c.bf16 %v354_v54, %v347_v5  ;;  %v1230_v8 = vand.u32 4294901760, %v1229_v40  ;;  %v28176_v10 = vand.u32 4294901760, %v23922_v14 }
  0x93   :  { %v367_v7 = vsub.f32 %v24145_v12, %v28172_v0  ;;  %v24185_v11 = vpack.c.bf16 %v28174_v45, %v28173_v9  ;;  %20419 = vmatpush3.bf16.msra.mxu1 %v24054_v38  ;;  %20232 = vmatpush3.bf16.msra.mxu0 %v24048_v39  ;;  %v28177_v37 = vand.u32 4294901760, %v23924_v15  ;;  %v28178_v54 = vand.u32 4294901760, %v23926_v16 }
  0x94   :  { %v24192_v21 = vsub.f32 %v23922_v14, %v28176_v10  ;;  %v361_v59 = vand.u32 4294901760, %v360_v58  ;;  %v28179_v40 = vmov 0.0|0.0   ;;  %20234 = vmatprep.subr.bf16.mxu0 %v24068_v46  ;;  %v28180_v10 = vand.u32 4294901760, %v23936_v20  ;;  %15937 = vmatprep.mubr.f32.mxu0 %v266_v51 }
  0x95   :  { %28175 = vst [vmem:[#allocation39_spill] sm:$0xff] %v24185_v11  ;;  %v24200_v45 = vsub.f32 %v23924_v15, %v28177_v37  ;;  %v24205_v5 = vsub.f32 %v23926_v16, %v28178_v54  ;;  %20420 = vmatprep.subr.bf16.mxu1 %v28179_v40  ;;  %v368_v14 = vand.u32 4294901760, %v367_v7  ;;  %v28181_v15 = vand.u32 4294901760, %v23939_v22 }
  0x96   :  { %v24213_v58 = vsub.f32 %v23936_v20, %v28180_v10  ;;  %v24220_v16 = vpack.c.bf16 %v1230_v8, %v1223_v47  ;;  %v28183_v7 = vand.u32 4294901760, %v23941_v23  ;;  %v28184_v20 = vand.u32 4294901760, %v24192_v21 }
  0x97   :  { %v24218_v37 = vsub.f32 %v23939_v22, %v28181_v15  ;;  %v27957_v54 = vand.u32 4294901760, %v24200_v45  ;;  %v27956_v0 = vand.u32 4294901760, %v24205_v5  ;;  %v28185_v47 = vand.u32 4294901760, %v23957_v28  ;;  %20422 = vmatpush3.bf16.msra.mxu1 %v24077_v19  ;;  %20236 = vmatpush3.bf16.msra.mxu0 %v24068_v46 }
  0x98   :  { %28182 = vst [vmem:[#allocation40_spill] sm:$0xff] %v24220_v16  ;;  %v24227_v9 = vsub.f32 %v23941_v23, %v28183_v7  ;;  %v1236_v10 = vsub.f32 %v24192_v21, %v28184_v20  ;;  %v27964_v38 = vand.u32 4294901760, %v24213_v58  ;;  %v28186_v7 = vand.u32 4294901760, %v23959_v29  ;;  %20423 = vmatprep.subr.bf16.mxu1 %v28179_v40  ;;  %20238 = vmatprep.subr.bf16.mxu0 %v24083_v18 }
  0x99   :  { %v27967_v22 = vand.u32 4294901760, %v24218_v37  ;;  %v24237_v51 = vsub.f32 %v23957_v28, %v28185_v47  ;;  %v1243_v23 = vsub.f32 %v24200_v45, %v27957_v54  ;;  %v374_v8 = vsub.f32 %v24205_v5, %v27956_v0 }
  0x9a   :  { %v24251_v20 = vsub.f32 %v23959_v29, %v28186_v7  ;;  %v1237_v28 = vand.u32 4294901760, %v1236_v10  ;;  %v381_v47 = vsub.f32 %v24213_v58, %v27964_v38  ;;  %v28187_v29 = vand.u32 4294901760, %v24227_v9 }
  0x9b   :  { %v1250_v0 = vsub.f32 %v24218_v37, %v27967_v22  ;;  %v27969_v54 = vand.u32 4294901760, %v24237_v51  ;;  %v1244_v15 = vand.u32 4294901760, %v1243_v23  ;;  %v375_v19 = vand.u32 4294901760, %v374_v8  ;;  %20425 = vmatpush3.bf16.msra.mxu1 %v24092_v13  ;;  %20240 = vmatpush3.bf16.msra.mxu0 %v24083_v18 }
  0x9c   :  { %v1257_v7 = vsub.f32 %v24227_v9, %v28187_v29  ;;  %v27968_v46 = vand.u32 4294901760, %v24251_v20  ;;  %v382_v39 = vand.u32 4294901760, %v381_v47  ;;  %v28188_v25 = vand.u32 4294901760, %v23961_v30  ;;  %20426 = vmatprep.subr.bf16.mxu1 %v28179_v40  ;;  %20242 = vmatprep.subr.bf16.mxu0 %v24111_v52 }
  0x9d   :  { %v1251_v10 = vand.u32 4294901760, %v1250_v0  ;;  %v388_v38 = vsub.f32 %v24237_v51, %v27969_v54  ;;  %v24276_v23 = vpack.c.bf16 %v368_v14, %v361_v59  ;;  %v28189_v47 = vand.u32 4294901760, %v23967_v34 }
  0x9e   :  { %v24272_v22 = vsub.f32 %v23961_v30, %v28188_v25  ;;  %v1258_v8 = vand.u32 4294901760, %v1257_v7  ;;  %v395_v0 = vsub.f32 %v24251_v20, %v27968_v46  ;;  %v24288_v25 = vpack.c.bf16 %v1244_v15, %v1237_v28  ;;  %v169_v46 = vld [vmem:[#allocation4 + $0x10] sm:$0xff] }
  0x9f   :  { %v24284_v29 = vsub.f32 %v23967_v34, %v28189_v47  ;;  %v24290_v30 = vpack.c.bf16 %v382_v39, %v375_v19  ;;  %v28191_v14 = vand.u32 4294901760, %v23969_v35  ;;  %v389_v34 = vand.u32 4294901760, %v388_v38  ;;  %20428 = vmatpush3.bf16.msra.mxu1 %v24185_v11  ;;  %20244 = vmatpush3.bf16.msra.mxu0 %v24111_v52 }
  0xa0   :  { %28190 = vst [vmem:[#allocation41_spill] sm:$0xff] %v24288_v25  ;;  %v27973_v59 = vand.u32 4294901760, %v24272_v22  ;;  %v24298_v54 = vpack.c.bf16 %v1258_v8, %v1251_v10  ;;  %v28193_v13 = vand.u32 4294901760, %v23971_v36  ;;  %v28195_v38 = vand.u32 4294901760, %v23986_v42  ;;  %20429 = vmatprep.subr.bf16.mxu1 %v28179_v40  ;;  %20246 = vmatprep.subr.bf16.mxu0 %v24187_v44 }
  0xa1   :  { %v24296_v7 = vsub.f32 %v23969_v35, %v28191_v14  ;;  %v27972_v47 = vand.u32 4294901760, %v24284_v29  ;;  %v28194_v35 = vand.u32 4294901760, %v23984_v41  ;;  %v24326_v14 = vand.u32 4294901760, %v169_v46 }
  0xa2   :  { %28192 = vst [vmem:[#allocation42_spill] sm:$0xff] %v24298_v54  ;;  %v24304_v15 = vsub.f32 %v23971_v36, %v28193_v13  ;;  %v1264_v19 = vsub.f32 %v24272_v22, %v27973_v59  ;;  %v24318_v10 = vsub.f32 %v23986_v42, %v28195_v38  ;;  %v396_v13 = vand.u32 4294901760, %v395_v0 }
  0xa3   :  { %v27978_v39 = vand.u32 4294901760, %v24296_v7  ;;  %v24313_v28 = vsub.f32 %v23984_v41, %v28194_v35  ;;  %v1271_v36 = vsub.f32 %v24284_v29, %v27972_v47  ;;  %v24339_v59 = vsub.f32 %v169_v46, %v24326_v14 }
  0xa4   :  { %v27979_v8 = vand.u32 4294901760, %v24304_v15  ;;  %v1265_v41 = vand.u32 4294901760, %v1264_v19  ;;  %v28197_v11 = vand.u32 4294901760, %v23988_v43  ;;  %v28198_v52 = vmov 0.0  }
  0xa5   :  { %v402_v42 = vsub.f32 %v24296_v7, %v27978_v39  ;;  %v1272_v38 = vand.u32 4294901760, %v1271_v36  ;;  %28196 = vst [vmem:[#allocation43_spill] sm:$0xff] %v24339_v59  ;;  %16202 = vmatmul.mubr.f32.vlgmr.msra.gmra.mrb[0].mxu1 %v28198_v52  ;;  %v28199_v39 = vand.u32 4294901760, %v24176_v6  ;;  %v28200_v36 = vand.u32 4294901760, %v24313_v28 }
  0xa6   :  { %v409_v47 = vsub.f32 %v24304_v15, %v27979_v8  ;;  %v24344_v19 = vsub.f32 %v23988_v43, %v28197_v11  ;;  %v28201_v8 = vand.u32 4294901760, %v24318_v10  ;;  %v28202_v18 = vand.u32 4294901760, %v24006_v48  ;;  %20431 = vmatpush3.bf16.msra.mxu1 %v24220_v16  ;;  %16236 = vmatprep.mubr.msk.f32.mxu1 %vm23712_vm0, %v28198_v52 }
  0xa7   :  { %15938 = vmatmul.mubr.f32.vlgmr.msra.gmra.mrb[0].mxu0 %v28199_v39  ;;  %v403_v35 = vand.u32 4294901760, %v402_v42  ;;  %v1278_v0 = vsub.f32 %v24313_v28, %v28200_v36  ;;  %v24362_v43 = vpack.c.bf16 %v396_v13, %v389_v34  ;;  %v27986_v11 = vand.u32 4294901760, %v24339_v59  ;;  %v170_v42 = vld [vmem:[#allocation4 + $0x18] sm:$0xff]  ;;  %20432 = vmatprep.subr.bf16.mxu1 %v28179_v40  ;;  %v171_v34 = vld [vmem:[#allocation4 + $0x20] sm:$0xff] }
  0xa8   :  { %v1285_v46 = vsub.f32 %v24318_v10, %v28201_v8  ;;  %v24358_v24 = vsub.f32 %v24006_v48, %v28202_v18  ;;  %20248 = vmatpush3.bf16.msra.mxu0 %v24187_v44  ;;  %v410_v6 = vand.u32 4294901760, %v409_v47  ;;  %v27987_v39 = vand.u32 4294901760, %v24344_v19 }
  0xa9   :  { %20250 = vmatprep.subr.bf16.mxu0 %v24276_v23  ;;  %v24368_v8 = vpack.c.bf16 %v1272_v38, %v1265_v41  ;;  %v1279_v18 = vand.u32 4294901760, %v1278_v0  ;;  %v28204_v36 = vand.u32 4294901760, %v24008_v49  ;;  %v285_v13 = vsub.f32 %v24339_v59, %v27986_v11 }
  0xaa   :  { %v27988_v48 = vand.u32 4294901760, %v24358_v24  ;;  %v1286_v47 = vand.u32 4294901760, %v1285_v46  ;;  %v416_v16 = vsub.f32 %v24344_v19, %v27987_v39  ;;  %v28205_v41 = vand.u32 4294901760, %v24010_v50  ;;  %20434 = vmatpush3.bf16.msra.mxu1 %v24288_v25 }
  0xab   :  { %28203 = vst [vmem:[#allocation44_spill] sm:$0xff] %v24368_v8  ;;  %v24374_v44 = vsub.f32 %v24008_v49, %v28204_v36  ;;  %v24389_v49 = vpack.c.bf16 %v410_v6, %v403_v35  ;;  %v24395_v36 = vand.u32 4294901760, %v170_v42  ;;  %v286_v11 = vand.u32 4294901760, %v285_v13  ;;  %20435 = vmatprep.subr.bf16.mxu1 %v28179_v40 }
  0xac   :  { %v24385_v0 = vsub.f32 %v24010_v50, %v28205_v41  ;;  %v423_v38 = vsub.f32 %v24358_v24, %v27988_v48  ;;  %20252 = vmatpush3.bf16.msra.mxu0 %v24276_v23  ;;  %v417_v50 = vand.u32 4294901760, %v416_v16  ;;  %v24400_v39 = vand.u32 4294901760, %v171_v34 }
  0xad   :  { %v27991_v46 = vand.u32 4294901760, %v24374_v44  ;;  %20254 = vmatprep.subr.bf16.mxu0 %v24290_v30  ;;  %v24408_v48 = vsub.f32 %v170_v42, %v24395_v36  ;;  %v28207_v23 = vand.u32 4294901760, %v24021_v55  ;;  %15940 = vmatprep.mubr.f32.mxu0 %v286_v11  ;;  %v28210_v42 = vand.u32 4294901760, %v24025_v57 }
  0xae   :  { %v27996_v41 = vand.u32 4294901760, %v24385_v0  ;;  %v424_v35 = vand.u32 4294901760, %v423_v38  ;;  %v24419_v25 = vsub.f32 %v171_v34, %v24400_v39  ;;  %v28209_v38 = vand.u32 4294901760, %v24023_v56  ;;  %20437 = vmatpush3.bf16.msra.mxu1 %v24298_v54 }
  0xaf   :  { %v1292_v6 = vsub.f32 %v24374_v44, %v27991_v46  ;;  %28206 = vst [vmem:[#allocation45_spill] sm:$0xff] %v24408_v48  ;;  %v24413_v16 = vsub.f32 %v24021_v55, %v28207_v23  ;;  %v24429_v59 = vsub.f32 %v24025_v57, %v28210_v42  ;;  %v172_v55 = vld [vmem:[#allocation4 + $0x28] sm:$0xff]  ;;  %v24431_v23 = vpack.c.bf16 %v1286_v47, %v1279_v18  ;;  %v173_v42 = vld [vmem:[#allocation4 + $0x30] sm:$0xff] }
  0xb0   :  { %v1299_v13 = vsub.f32 %v24385_v0, %v27996_v41  ;;  %28208 = vst [vmem:[#allocation46_spill] sm:$0xff] %v24419_v25  ;;  %v24424_v46 = vsub.f32 %v24023_v56, %v28209_v38  ;;  %v27999_v61 = vand.u32 4294901760, %v24408_v48  ;;  %20256 = vmatpush3.bf16.msra.mxu0 %v24290_v30  ;;  %v28007_v56 = vand.u32 4294901760, %v24419_v25  ;;  %20438 = vmatprep.subr.bf16.mxu1 %v28179_v40 }
  0xb1   :  { %28211 = vst [vmem:[#allocation47_spill] sm:$0xff] %v24431_v23  ;;  %v1293_v11 = vand.u32 4294901760, %v1292_v6  ;;  %v28002_v41 = vand.u32 4294901760, %v24413_v16  ;;  %20258 = vmatprep.subr.bf16.mxu0 %v24362_v43  ;;  %v28212_v30 = vand.u32 4294901760, %v24036_v62  ;;  %v20265_v57 = vpack.c.bf16 %v424_v35, %v417_v50 }
  0xb2   :  { %v1300_v34 = vand.u32 4294901760, %v1299_v13  ;;  %v295_v18 = vsub.f32 %v24408_v48, %v27999_v61  ;;  %v24453_v13 = vand.u32 4294901760, %v172_v55  ;;  %v305_v38 = vsub.f32 %v24419_v25, %v28007_v56  ;;  %20440 = vmatpush3.bf16.msra.mxu1 %v24368_v8 }
  0xb3   :  { %v430_v47 = vsub.f32 %v24413_v16, %v28002_v41  ;;  %v24451_v6 = vsub.f32 %v24036_v62, %v28212_v30  ;;  %v28213_v54 = vand.u32 4294901760, %v24424_v46  ;;  %v28214_v48 = vand.u32 4294901760, %v24429_v59  ;;  %20441 = vmatprep.subr.bf16.mxu1 %v28179_v40 }
  0xb4   :  { %v24464_v17 = vpack.c.bf16 %v1300_v34, %v1293_v11  ;;  %v296_v62 = vand.u32 4294901760, %v295_v18  ;;  %v24468_v32 = vsub.f32 %v172_v55, %v24453_v13  ;;  %20260 = vmatpush3.bf16.msra.mxu0 %v24362_v43  ;;  %v306_v50 = vand.u32 4294901760, %v305_v38  ;;  %v174_v38 = vld [vmem:[#allocation4 + $0x38] sm:$0xff] }
  0xb5   :  { %v437_v61 = vsub.f32 %v24424_v46, %v28213_v54  ;;  %v1306_v41 = vsub.f32 %v24429_v59, %v28214_v48  ;;  %v28008_v30 = vand.u32 4294901760, %v24451_v6  ;;  %v431_v35 = vand.u32 4294901760, %v430_v47  ;;  %20262 = vmatprep.subr.bf16.mxu0 %v24389_v49 }
  0xb6   :  { %28215 = vst [vmem:[#allocation48_spill] sm:$0xff] %v24468_v32  ;;  %v24472_v54 = vand.u32 4294901760, %v173_v42  ;;  %v28217_v11 = vand.u32 4294901760, %v24038_v63  ;;  %v28219_v43 = vand.u32 4294901760, %v24040_v1  ;;  %15941 = vmatmul.mubr.f32.gmra.mrb[2].mxu0 %v296_v62  ;;  %v28223_v8 = vand.u32 4294901760, %v24060_v27  ;;  %20443 = vmatpush3.bf16.msra.mxu1 %v24431_v23 }
  0xb7   :  { %v438_v56 = vand.u32 4294901760, %v437_v61  ;;  %v1313_v48 = vsub.f32 %v24451_v6, %v28008_v30  ;;  %v1307_v18 = vand.u32 4294901760, %v1306_v41  ;;  %v28222_v30 = vand.u32 4294901760, %v24058_v31  ;;  %15943 = vmatprep.mubr.f32.mxu0 %v306_v50  ;;  %20444 = vmatprep.subr.bf16.mxu1 %v28179_v40 }
  0xb8   :  { %28216 = vst [vmem:[#allocation49_spill] sm:$0xff] %v24472_v54  ;;  %v24483_v34 = vsub.f32 %v24038_v63, %v28217_v11  ;;  %v24488_v61 = vsub.f32 %v24040_v1, %v28219_v43  ;;  %v24491_v47 = vsub.f32 %v173_v42, %v24472_v54  ;;  %v24501_v63 = vsub.f32 %v24060_v27, %v28223_v8 }
  0xb9   :  { %v24496_v55 = vsub.f32 %v24058_v31, %v28222_v30  ;;  %v1314_v11 = vand.u32 4294901760, %v1313_v48  ;;  %v28224_v1 = vand.u32 4294901760, %v24468_v32  ;;  %20264 = vmatpush3.bf16.msra.mxu0 %v24389_v49  ;;  %v24513_v8 = vand.u32 4294901760, %v174_v38 }
  0xba   :  { %28218 = vst [vmem:[#allocation50_spill] sm:$0xff] %v24483_v34  ;;  %28220 = vst [vmem:[#allocation51_spill] sm:$0xff] %v24488_v61  ;;  %v443_v41 = vand.u32 4294901760, %v24483_v34  ;;  %v450_v42 = vand.u32 4294901760, %v24488_v61  ;;  %v28021_v31 = vand.u32 4294901760, %v24491_v47  ;;  %v1326_v27 = vand.u32 4294901760, %v24501_v63  ;;  %20266 = vmatprep.subr.bf16.mxu0 %v20265_v57  ;;  %20446 = vmatpush3.bf16.msra.mxu1 %v24464_v17 }
  0xbb   :  { %28221 = vst [vmem:[#allocation52_spill] sm:$0xff] %v24491_v47  ;;  %v315_v62 = vsub.f32 %v24468_v32, %v28224_v1  ;;  %v1319_v30 = vand.u32 4294901760, %v24496_v55  ;;  %v20269_v50 = vpack.c.bf16 %v438_v56, %v431_v35  ;;  %v24524_v25 = vsub.f32 %v174_v38, %v24513_v8  ;;  %20447 = vmatprep.subr.bf16.mxu1 %v28179_v40 }
  0xbc   :  { %v444_v43 = vsub.f32 %v24483_v34, %v443_v41  ;;  %v451_v1 = vsub.f32 %v24488_v61, %v450_v42  ;;  %v325_v49 = vsub.f32 %v24491_v47, %v28021_v31  ;;  %v1327_v32 = vsub.f32 %v24501_v63, %v1326_v27 }
  0xbd   :  { %v316_v48 = vand.u32 4294901760, %v315_v62  ;;  %v1320_v23 = vsub.f32 %v24496_v55, %v1319_v30  ;;  %v24526_v54 = vpack.c.bf16 %v1314_v11, %v1307_v18  ;;  %20268 = vmatpush3.bf16.msra.mxu0 %v20265_v57  ;;  %v28024_v31 = vand.u32 4294901760, %v24524_v25 }
  0xbe   :  { %v445_v56 = vand.u32 4294901760, %v444_v43  ;;  %v452_v35 = vand.u32 4294901760, %v451_v1  ;;  %v326_v62 = vand.u32 4294901760, %v325_v49  ;;  %v1328_v34 = vand.u32 4294901760, %v1327_v32  ;;  %20270 = vmatprep.subr.bf16.mxu0 %v20269_v50 }
  0xbf   :  { %28225 = vst [vmem:[#allocation53_spill] sm:$0xff] %v24526_v54  ;;  %15944 = vmatmul.mubr.f32.gmra.mrb[4].mxu0 %v316_v48  ;;  %v1321_v61 = vand.u32 4294901760, %v1320_v23  ;;  %v335_v38 = vsub.f32 %v24524_v25, %v28024_v31  ;;  %20449 = vmatpush3.bf16.msra.mxu1 %v24526_v54  ;;  %v20277_v32 = vpack.c.bf16 %v24103_v33, %v24098_v60  ;;  %v28227_v48 = vand.u32 4294901760, %v24098_v60 }
  0xc0   :  { %v20273_v47 = vpack.c.bf16 %v452_v35, %v445_v56  ;;  %15946 = vmatprep.mubr.f32.mxu0 %v326_v62  ;;  %20450 = vmatprep.subr.bf16.mxu1 %v28179_v40  ;;  %v24542_v23 = vpack.c.bf16 %v24130_v26, %v24119_v2  ;;  %v20281_v11 = vpack.c.bf16 %v24145_v12, %v24135_v4  ;;  %v28230_v43 = vand.u32 4294901760, %v24130_v26 }
  0xc1   :  { %20272 = vmatpush3.bf16.msra.mxu0 %v20269_v50  ;;  %v24535_v18 = vpack.c.bf16 %v1328_v34, %v1321_v61  ;;  %v336_v57 = vand.u32 4294901760, %v335_v38  ;;  %v28228_v34 = vand.u32 4294901760, %v24103_v33  ;;  %v28229_v50 = vand.u32 4294901760, %v24119_v2 }
  0xc2   :  { %20274 = vmatprep.subr.bf16.mxu0 %v20273_v47  ;;  %v28231_v49 = vand.u32 4294901760, %v24135_v4  ;;  %v28232_v56 = vand.u32 4294901760, %v24145_v12  ;;  %v28233_v62 = vand.u32 4294901760, %v24192_v21  ;;  %v28234_v60 = vand.u32 4294901760, %v24200_v45 }
  0xc3   :  { %28226 = vst [vmem:[#allocation54_spill] sm:$0xff] %v24535_v18  ;;  %15947 = vmatmul.mubr.f32.gmra.mrb[6].mxu0 %v336_v57  ;;  %v24550_v61 = vpack.c.bf16 %v28228_v34, %v28227_v48  ;;  %v24556_v1 = vpack.c.bf16 %v28230_v43, %v28229_v50  ;;  %v28235_v33 = vand.u32 4294901760, %v24205_v5  ;;  %v28236_v2 = vand.u32 4294901760, %v24213_v58  ;;  %20452 = vmatpush3.bf16.msra.mxu1 %v24535_v18 }
  0xc4   :  { %v24562_v35 = vpack.c.bf16 %v28232_v56, %v28231_v49  ;;  %v24568_v38 = vpack.c.bf16 %v28234_v60, %v28233_v62  ;;  %15981 = vmatprep.mubr.f32.mxu0 %v24086_v53  ;;  %v28237_v4 = vand.u32 4294901760, %v24218_v37  ;;  %v28238_v12 = vand.u32 4294901760, %v24227_v9  ;;  %20453 = vmatprep.subr.bf16.mxu1 %v28179_v40 }
  0xc5   :  { %v24575_v26 = vpack.c.bf16 %v28236_v2, %v28235_v33  ;;  %v28239_v48 = vand.u32 4294901760, %v24237_v51  ;;  %v28240_v34 = vand.u32 4294901760, %v24251_v20  ;;  %v28241_v43 = vand.u32 4294901760, %v24272_v22  ;;  %20276 = vmatpush3.bf16.msra.mxu0 %v20273_v47 }
  0xc6   :  { %v24581_v57 = vpack.c.bf16 %v28238_v12, %v28237_v4  ;;  %v28242_v49 = vand.u32 4294901760, %v24284_v29  ;;  %v28243_v62 = vand.u32 4294901760, %v24296_v7  ;;  %v28244_v60 = vand.u32 4294901760, %v24304_v15  ;;  %20278 = vmatprep.subr.bf16.mxu0 %v20277_v32  ;;  %16237 = vmatmul.mubr.f32.vlgmr.msra.gmra.mrb[0].mxu1 %v28198_v52 }
  0xc7   :  { %v24587_v50 = vpack.c.bf16 %v28240_v34, %v28239_v48  ;;  %v28245_v2 = vand.u32 4294901760, %v24313_v28  ;;  %v28246_v4 = vand.u32 4294901760, %v24318_v10  ;;  %v28247_v48 = vand.u32 4294901760, %v24344_v19  ;;  %20455 = vmatpush3.bf16.msra.mxu1 %v24542_v23  ;;  %16271 = vmatprep.mubr.msk.f32.mxu1 %vm23712_vm0, %v28198_v52 }
  0xc8   :  { %v24593_v56 = vpack.c.bf16 %v28242_v49, %v28241_v43  ;;  %v24600_v33 = vpack.c.bf16 %v28244_v60, %v28243_v62  ;;  %v28248_v34 = vand.u32 4294901760, %v24358_v24  ;;  %v28249_v47 = vand.u32 4294901760, %v24374_v44  ;;  %15982 = vmatmul.mubr.f32.vlgmr.msra.gmra.mrb[0].mxu0 %v24121_v3  ;;  %20456 = vmatprep.subr.bf16.mxu1 %v28179_v40 }
  0xc9   :  { %v24606_v12 = vpack.c.bf16 %v28246_v4, %v28245_v2  ;;  %v28250_v49 = vand.u32 4294901760, %v24385_v0  ;;  %v28251_v60 = vand.u32 4294901760, %v24413_v16  ;;  %v28252_v2 = vand.u32 4294901760, %v24424_v46  ;;  %20280 = vmatpush3.bf16.msra.mxu0 %v20277_v32  ;;  %15984 = vmatprep.mubr.f32.mxu0 %v24326_v14  ;;  %v28272_v32 = vld [vmem:[#allocation29_spill] sm:$0xff] }
  0xca   :  { %v24612_v43 = vpack.c.bf16 %v28248_v34, %v28247_v48  ;;  %v28253_v31 = vand.u32 4294901760, %v24429_v59  ;;  %v28254_v48 = vand.u32 4294901760, %v24451_v6  ;;  %v24633_v18 = vpack.c.bf16 %v450_v42, %v443_v41  ;;  %20282 = vmatprep.subr.bf16.mxu0 %v20281_v11  ;;  %v28268_v42 = vld [vmem:[#allocation48_spill] sm:$0xff] }
  0xcb   :  { %v24619_v62 = vpack.c.bf16 %v28250_v49, %v28249_v47  ;;  %v24625_v4 = vpack.c.bf16 %v28252_v2, %v28251_v60  ;;  %v24635_v54 = vpack.c.bf16 %v1326_v27, %v1319_v30  ;;  %v24642_v47 = vpack.c.bf16 %v24200_v45, %v24192_v21  ;;  %v28270_v30 = vld [vmem:[#allocation28_spill] sm:$0xff]  ;;  %v28275_v60 = vld [vmem:[#allocation31_spill] sm:$0xff] }
  0xcc   :  { %v24631_v34 = vpack.c.bf16 %v28254_v48, %v28253_v31  ;;  %v20285_v41 = vpack.c.bf16 %v24213_v58, %v24205_v5  ;;  %15985 = vmatmul.mubr.f32.gmra.mrb[2].mxu0 %v24395_v36  ;;  %v24654_v21 = vpack.c.bf16 %v24227_v9, %v24218_v37  ;;  %v20289_v45 = vpack.c.bf16 %v24251_v20, %v24237_v51  ;;  %v28255_v58 = vld [vmem:[#allocation49_spill] sm:$0xff]  ;;  %v28269_v31 = vld [vmem:[#allocation27_spill] sm:$0xff]  ;;  %v28271_v27 = vld [vmem:[#allocation52_spill] sm:$0xff] }
  0xcd   :  { %20458 = vmatpush3.bf16.msra.mxu1 %v24642_v47  ;;  %20284 = vmatpush3.bf16.msra.mxu0 %v20281_v11  ;;  %v24664_v5 = vpack.c.bf16 %v24284_v29, %v24272_v22  ;;  %v20293_v9 = vpack.c.bf16 %v24304_v15, %v24296_v7  ;;  %v24674_v37 = vpack.c.bf16 %v24318_v10, %v24313_v28  ;;  %v28256_v51 = vld [vmem:[#allocation37_spill] sm:$0xff]  ;;  %v28257_v7 = vld [vmem:[#allocation50_spill] sm:$0xff]  ;;  %v28258_v15 = vld [vmem:[#allocation51_spill] sm:$0xff] }
  0xce   :  { %20459 = vmatprep.subr.bf16.mxu1 %v28179_v40  ;;  %20286 = vmatprep.subr.bf16.mxu0 %v20285_v41  ;;  %v20297_v22 = vpack.c.bf16 %v24358_v24, %v24344_v19  ;;  %v24683_v20 = vpack.c.bf16 %v24385_v0, %v24374_v44  ;;  %v20301_v29 = vpack.c.bf16 %v24424_v46, %v24413_v16  ;;  %v28260_v19 = vld [vmem:[#allocation38_spill] sm:$0xff]  ;;  %v28261_v44 = vld [vmem:[#allocation23_spill] sm:$0xff]  ;;  %v28262_v0 = vld [vmem:[#allocation24_spill] sm:$0xff]  ;;  %v28274_v49 = vand.u32 4294901760, %v28256_v51 }
  0xcf   :  { %15987 = vmatprep.mubr.f32.mxu0 %v24400_v39  ;;  %v24691_v24 = vpack.c.bf16 %v24451_v6, %v24429_v59  ;;  %v20305_v28 = vpack.c.bf16 %v28258_v15, %v28257_v7  ;;  %v24699_v10 = vpack.c.bf16 %v24501_v63, %v24496_v55  ;;  %v28259_v59 = vld [vmem:[#allocation22_spill] sm:$0xff]  ;;  %v28263_v46 = vld [vmem:[#allocation43_spill] sm:$0xff]  ;;  %v28264_v16 = vld [vmem:[#allocation45_spill] sm:$0xff]  ;;  %v28286_v15 = vand.u32 4294901760, %v28268_v42 }
  0xd0   :  { %15988 = vmatmul.mubr.f32.gmra.mrb[4].mxu0 %v24453_v13  ;;  %v28265_v6 = vld [vmem:[#allocation25_spill] sm:$0xff]  ;;  %v28266_v55 = vld [vmem:[#allocation26_spill] sm:$0xff]  ;;  %v28276_v2 = vld [vmem:[#allocation32_spill] sm:$0xff]  ;;  %v28284_v7 = vand.u32 4294901760, %v28264_v16 }
  0xd1   :  { %20461 = vmatpush3.bf16.msra.mxu1 %v24654_v21  ;;  %20288 = vmatpush3.bf16.msra.mxu0 %v20285_v41  ;;  %v28267_v63 = vld [vmem:[#allocation46_spill] sm:$0xff]  ;;  %v28277_v48 = vld [vmem:[#allocation33_spill] sm:$0xff] }
  0xd2   :  { %20462 = vmatprep.subr.bf16.mxu1 %v28179_v40  ;;  %20290 = vmatprep.subr.bf16.mxu0 %v20289_v45  ;;  %v28273_v11 = vld [vmem:[#allocation30_spill] sm:$0xff] }
  0xd3   :  { %15990 = vmatprep.mubr.f32.mxu0 %v28255_v58  ;;  %v28278_v41 = vld [vmem:[#allocation34_spill] sm:$0xff] }
  0xd4   :  { %15991 = vmatmul.mubr.f32.gmra.mrb[6].mxu0 %v24513_v8 }
  0xd5   :  { %20464 = vmatpush3.bf16.msra.mxu1 %v24664_v5  ;;  %20292 = vmatpush3.bf16.msra.mxu0 %v20289_v45  ;;  %v28279_v45 = vld [vmem:[#allocation35_spill] sm:$0xff] }
  0xd6   :  { %20465 = vmatprep.subr.bf16.mxu1 %v28179_v40  ;;  %20294 = vmatprep.subr.bf16.mxu0 %v20293_v9 }
  0xd7   :  { %16025 = vmatprep.mubr.f32.mxu0 %v28256_v51  ;;  %v28282_v51 = vand.u32 4294901760, %v28260_v19 }
  0xd9   :  { %20467 = vmatpush3.bf16.msra.mxu1 %v24674_v37  ;;  %20296 = vmatpush3.bf16.msra.mxu0 %v20293_v9  ;;  %v28280_v9 = vld [vmem:[#allocation36_spill] sm:$0xff] }
  0xda   :  { %20468 = vmatprep.subr.bf16.mxu1 %v28179_v40  ;;  %20298 = vmatprep.subr.bf16.mxu0 %v20297_v22 }
  0xdd   :  { %20470 = vmatpush3.bf16.msra.mxu1 %v24683_v20  ;;  %20300 = vmatpush3.bf16.msra.mxu0 %v20297_v22  ;;  %v28281_v22 = vld [vmem:[#allocation39_spill] sm:$0xff] }
  0xde   :  { %20471 = vmatprep.subr.bf16.mxu1 %v28179_v40  ;;  %20302 = vmatprep.subr.bf16.mxu0 %v20301_v29 }
  0xe1   :  { %20473 = vmatpush3.bf16.msra.mxu1 %v24691_v24  ;;  %20304 = vmatpush3.bf16.msra.mxu0 %v20301_v29  ;;  %v28283_v29 = vand.u32 4294901760, %v28263_v46 }
  0xe2   :  { %20474 = vmatprep.subr.bf16.mxu1 %v28179_v40  ;;  %20306 = vmatprep.subr.bf16.mxu0 %v20305_v28 }
  0xe5   :  { %20476 = vmatpush3.bf16.msra.mxu1 %v24699_v10  ;;  %20308 = vmatpush3.bf16.msra.mxu0 %v20305_v28  ;;  %v28288_v28 = vand.u32 4294901760, %v24524_v25 }
  0xe6   :  { %20477 = vmatprep.subr.bf16.mxu1 %v28179_v40  ;;  %20310 = vmatprep.subr.bf16.mxu0 %v28259_v59 }
  0xe8   :  { %16272 = vmatmul.mubr.f32.vlgmr.msra.gmra.mrb[0].mxu1 %v28198_v52  ;;  %16026 = vmatmul.mubr.f32.vlgmr.msra.gmra.mrb[0].mxu0 %v28260_v19 }
  0xe9   :  { %20479 = vmatpush3.bf16.msra.mxu1 %v28261_v44  ;;  %20312 = vmatpush3.bf16.msra.mxu0 %v28259_v59 }
  0xea   :  { %20480 = vmatprep.subr.bf16.mxu1 %v28179_v40  ;;  %20314 = vmatprep.subr.bf16.mxu0 %v28262_v0 }
  0xeb   :  { %16028 = vmatprep.mubr.f32.mxu0 %v28263_v46  ;;  %16306 = vmatprep.mubr.msk.f32.mxu1 %vm23712_vm0, %v28198_v52 }
  0xec   :  { %16029 = vmatmul.mubr.f32.gmra.mrb[2].mxu0 %v28264_v16 }
  0xed   :  { %20482 = vmatpush3.bf16.msra.mxu1 %v28265_v6  ;;  %20316 = vmatpush3.bf16.msra.mxu0 %v28262_v0 }
  0xee   :  { %20483 = vmatprep.subr.bf16.mxu1 %v28179_v40  ;;  %20318 = vmatprep.subr.bf16.mxu0 %v28266_v55 }
  0xef   :  { %16031 = vmatprep.mubr.f32.mxu0 %v28267_v63 }
  0xf0   :  { %16032 = vmatmul.mubr.f32.gmra.mrb[4].mxu0 %v28268_v42 }
  0xf1   :  { %20485 = vmatpush3.bf16.msra.mxu1 %v28269_v31  ;;  %20320 = vmatpush3.bf16.msra.mxu0 %v28266_v55 }
  0xf2   :  { %20486 = vmatprep.subr.bf16.mxu1 %v28179_v40  ;;  %20322 = vmatprep.subr.bf16.mxu0 %v28270_v30 }
  0xf3   :  { %16034 = vmatprep.mubr.f32.mxu0 %v28271_v27 }
  0xf4   :  { %16035 = vmatmul.mubr.f32.gmra.mrb[6].mxu0 %v24524_v25 }
  0xf5   :  { %20488 = vmatpush3.bf16.msra.mxu1 %v28272_v32  ;;  %20324 = vmatpush3.bf16.msra.mxu0 %v28270_v30 }
  0xf6   :  { %20489 = vmatprep.subr.bf16.mxu1 %v28179_v40  ;;  %20326 = vmatprep.subr.bf16.mxu0 %v28273_v11 }
  0xf7   :  { %16069 = vmatprep.mubr.f32.mxu0 %v28274_v49  ;;  %v28292_v49 = vld [vmem:[#allocation40_spill] sm:$0xff] }
  0xf9   :  { %20491 = vmatpush3.bf16.msra.mxu1 %v28275_v60  ;;  %20328 = vmatpush3.bf16.msra.mxu0 %v28273_v11 }
  0xfa   :  { %20492 = vmatprep.subr.bf16.mxu1 %v28179_v40  ;;  %20330 = vmatprep.subr.bf16.mxu0 %v28276_v2 }
  0xfd   :  { %20494 = vmatpush3.bf16.msra.mxu1 %v28277_v48  ;;  %20332 = vmatpush3.bf16.msra.mxu0 %v28276_v2 }
  0xfe   :  { %20495 = vmatprep.subr.bf16.mxu1 %v28179_v40  ;;  %20334 = vmatprep.subr.bf16.mxu0 %v28278_v41 }
 0x101   :  { %20497 = vmatpush3.bf16.msra.mxu1 %v28279_v45  ;;  %20336 = vmatpush3.bf16.msra.mxu0 %v28278_v41 }
 0x102   :  { %20498 = vmatprep.subr.bf16.mxu1 %v28179_v40  ;;  %20338 = vmatprep.subr.bf16.mxu0 %v28280_v9 }
 0x105   :  { %20500 = vmatpush3.bf16.msra.mxu1 %v28281_v22  ;;  %20340 = vmatpush3.bf16.msra.mxu0 %v28280_v9 }
 0x106   :  { %20501 = vmatprep.subr.bf16.mxu1 %v28179_v40  ;;  %20342 = vmatprep.subr.bf16.mxu0 %v24550_v61 }
 0x108   :  { %16307 = vmatmul.mubr.f32.vlgmr.msra.gmra.mrb[0].mxu1 %v28198_v52  ;;  %16070 = vmatmul.mubr.f32.vlgmr.msra.gmra.mrb[0].mxu0 %v28282_v51  ;;  %v28296_v51 = vld [vmem:[#allocation47_spill] sm:$0xff] }
 0x109   :  { %20503 = vmatpush3.bf16.msra.mxu1 %v24556_v1  ;;  %20344 = vmatpush3.bf16.msra.mxu0 %v24550_v61  ;;  %v28285_v61 = vand.u32 4294901760, %v28267_v63 }
 0x10a   :  { %20504 = vmatprep.subr.bf16.mxu1 %v28179_v40  ;;  %20346 = vmatprep.subr.bf16.mxu0 %v24562_v35 }
 0x10b   :  { %16072 = vmatprep.mubr.f32.mxu0 %v28283_v29  ;;  %16341 = vmatprep.mubr.msk.f32.mxu1 %vm23712_vm0, %v28198_v52  ;;  %v28297_v29 = vld [vmem:[#allocation53_spill] sm:$0xff] }
 0x10c   :  { %16073 = vmatmul.mubr.f32.gmra.mrb[2].mxu0 %v28284_v7  ;;  %v28298_v7 = vld [vmem:[#allocation54_spill] sm:$0xff] }
 0x10d   :  { %20506 = vmatpush3.bf16.msra.mxu1 %v24568_v38  ;;  %20348 = vmatpush3.bf16.msra.mxu0 %v24562_v35  ;;  %v28287_v35 = vand.u32 4294901760, %v28271_v27 }
 0x10e   :  { %20507 = vmatprep.subr.bf16.mxu1 %v28179_v40  ;;  %20350 = vmatprep.subr.bf16.mxu0 %v24575_v26 }
 0x10f   :  { %16075 = vmatprep.mubr.f32.mxu0 %v28285_v61 }
 0x110   :  { %16076 = vmatmul.mubr.f32.gmra.mrb[4].mxu0 %v28286_v15 }
 0x111   :  { %20509 = vmatpush3.bf16.msra.mxu1 %v24581_v57  ;;  %20352 = vmatpush3.bf16.msra.mxu0 %v24575_v26 }
 0x112   :  { %20510 = vmatprep.subr.bf16.mxu1 %v28179_v40  ;;  %20354 = vmatprep.subr.bf16.mxu0 %v24587_v50 }
 0x113   :  { %16078 = vmatprep.mubr.f32.mxu0 %v28287_v35 }
 0x114   :  { %16079 = vmatmul.mubr.f32.gmra.mrb[6].mxu0 %v28288_v28 }
 0x115   :  { %20512 = vmatpush3.bf16.msra.mxu1 %v24593_v56  ;;  %20356 = vmatpush3.bf16.msra.mxu0 %v24587_v50 }
 0x116   :  { %20513 = vmatprep.subr.bf16.mxu1 %v28179_v40  ;;  %20358 = vmatprep.subr.bf16.mxu0 %v24600_v33 }
 0x117   :  { %16113 = vmatprep.mubr.f32.mxu0 %v24086_v53 }
 0x119   :  { %20515 = vmatpush3.bf16.msra.mxu1 %v24606_v12  ;;  %20360 = vmatpush3.bf16.msra.mxu0 %v24600_v33 }
 0x11a   :  { %20516 = vmatprep.subr.bf16.mxu1 %v28179_v40  ;;  %20362 = vmatprep.subr.bf16.mxu0 %v24612_v43 }
 0x11d   :  { %20518 = vmatpush3.bf16.msra.mxu1 %v24619_v62  ;;  %20364 = vmatpush3.bf16.msra.mxu0 %v24612_v43 }
 0x11e   :  { %20519 = vmatprep.subr.bf16.mxu1 %v28179_v40  ;;  %20366 = vmatprep.subr.bf16.mxu0 %v24625_v4 }
 0x121   :  { %20521 = vmatpush3.bf16.msra.mxu1 %v24631_v34  ;;  %20368 = vmatpush3.bf16.msra.mxu0 %v24625_v4 }
 0x122   :  { %20522 = vmatprep.subr.bf16.mxu1 %v28179_v40  ;;  %20370 = vmatprep.subr.bf16.mxu0 %v24633_v18 }
 0x125   :  { %20524 = vmatpush3.bf16.msra.mxu1 %v24635_v54  ;;  %20372 = vmatpush3.bf16.msra.mxu0 %v24633_v18 }
 0x126   :  { %20525 = vmatprep.subr.bf16.mxu1 %v28179_v40  ;;  %20374 = vmatprep.subr.bf16.mxu0 %v28259_v59 }
 0x128   :  { %16342 = vmatmul.mubr.f32.vlgmr.msra.gmra.mrb[0].mxu1 %v28198_v52  ;;  %16114 = vmatmul.mubr.f32.vlgmr.msra.gmra.mrb[0].mxu0 %v24121_v3 }
 0x129   :  { %20527 = vmatpush3.bf16.msra.mxu1 %v28261_v44  ;;  %20376 = vmatpush3.bf16.msra.mxu0 %v28259_v59 }
 0x12a   :  { %20528 = vmatprep.subr.bf16.mxu1 %v28179_v40  ;;  %20378 = vmatprep.subr.bf16.mxu0 %v28262_v0 }
 0x12b   :  { %16116 = vmatprep.mubr.f32.mxu0 %v24326_v14  ;;  %16376 = vmatprep.mubr.msk.f32.mxu1 %vm23712_vm0, %v28198_v52 }
 0x12c   :  { %16117 = vmatmul.mubr.f32.gmra.mrb[2].mxu0 %v24395_v36 }
 0x12d   :  { %20530 = vmatpush3.bf16.msra.mxu1 %v28265_v6  ;;  %20380 = vmatpush3.bf16.msra.mxu0 %v28262_v0 }
 0x12e   :  { %20531 = vmatprep.subr.bf16.mxu1 %v28179_v40  ;;  %20382 = vmatprep.subr.bf16.mxu0 %v28266_v55 }
 0x12f   :  { %16119 = vmatprep.mubr.f32.mxu0 %v24400_v39 }
 0x130   :  { %16120 = vmatmul.mubr.f32.gmra.mrb[4].mxu0 %v24453_v13 }
 0x131   :  { %20533 = vmatpush3.bf16.msra.mxu1 %v28269_v31  ;;  %20384 = vmatpush3.bf16.msra.mxu0 %v28266_v55 }
 0x132   :  { %20534 = vmatprep.subr.bf16.mxu1 %v28179_v40  ;;  %20386 = vmatprep.subr.bf16.mxu0 %v28270_v30 }
 0x133   :  { %16122 = vmatprep.mubr.f32.mxu0 %v28255_v58 }
 0x134   :  { %16123 = vmatmul.mubr.f32.gmra.mrb[6].mxu0 %v24513_v8 }
 0x135   :  { %20536 = vmatpush3.bf16.msra.mxu1 %v28272_v32  ;;  %20388 = vmatpush3.bf16.msra.mxu0 %v28270_v30 }
 0x136   :  { %20537 = vmatprep.subr.bf16.mxu1 %v28179_v40  ;;  %20390 = vmatprep.subr.bf16.mxu0 %v28273_v11 }
 0x137   :  { %16157 = vmatprep.mubr.f32.mxu0 %v24086_v53  ;;  %v13777_v53 = vld [vmem:[%s27899_s3] ss:$0 sm:$0xff] }
 0x139   :  { %20539 = vmatpush3.bf16.msra.mxu1 %v28275_v60  ;;  %20392 = vmatpush3.bf16.msra.mxu0 %v28273_v11 }
 0x13a   :  { %20540 = vmatprep.subr.bf16.mxu1 %v28179_v40  ;;  %20394 = vmatprep.subr.bf16.mxu0 %v28276_v2 }
 0x13d   :  { %20542 = vmatpush3.bf16.msra.mxu1 %v28277_v48  ;;  %20396 = vmatpush3.bf16.msra.mxu0 %v28276_v2  ;;  %v28293_v2 = vld [vmem:[#allocation41_spill] sm:$0xff] }
 0x13e   :  { %20543 = vmatprep.subr.bf16.mxu1 %v28179_v40  ;;  %20398 = vmatprep.subr.bf16.mxu0 %v28278_v41 }
 0x141   :  { %20545 = vmatpush3.bf16.msra.mxu1 %v28279_v45  ;;  %20400 = vmatpush3.bf16.msra.mxu0 %v28278_v41  ;;  %v28294_v41 = vld [vmem:[#allocation42_spill] sm:$0xff] }
 0x142   :  { %20546 = vmatprep.subr.bf16.mxu1 %v28179_v40  ;;  %20402 = vmatprep.subr.bf16.mxu0 %v28280_v9 }
 0x145   :  { %20548 = vmatpush3.bf16.msra.mxu1 %v28281_v22  ;;  %20404 = vmatpush3.bf16.msra.mxu0 %v28280_v9  ;;  %v28295_v9 = vld [vmem:[#allocation44_spill] sm:$0xff] }
 0x146   :  { %20549 = vmatprep.subr.bf16.mxu0 %v28179_v40  ;;  %20693 = vmatprep.subr.bf16.mxu1 %v28179_v40 }
 0x148   :  { %16377 = vmatmul.mubr.f32.vlgmr.msra.gmra.mrb[0].mxu1 %v28198_v52  ;;  %16158 = vmatmul.mubr.f32.vlgmr.msra.gmra.mrb[0].mxu0 %v24121_v3 }
 0x149   :  { %16160 = vmatprep.mubr.f32.mxu0 %v24326_v14  ;;  %20551 = vmatpush3.bf16.msra.mxu0 %v28261_v44 }
 0x14a   :  { %20552 = vmatprep.subr.bf16.mxu0 %v28179_v40  ;;  %20695 = vmatpush3.bf16.msra.mxu1 %v28261_v44 }
 0x14b   :  { %20696 = vmatprep.subr.bf16.mxu1 %v28179_v40  ;;  %16621 = vmatprep.mubr.msk.f32.mxu1 %vm23712_vm0, %v28198_v52 }
 0x14c   :  { %16161 = vmatmul.mubr.f32.gmra.mrb[2].mxu0 %v24395_v36 }
 0x14d   :  { %16163 = vmatprep.mubr.f32.mxu0 %v24400_v39  ;;  %20554 = vmatpush3.bf16.msra.mxu0 %v28265_v6 }
 0x14e   :  { %20555 = vmatprep.subr.bf16.mxu0 %v28179_v40  ;;  %20698 = vmatpush3.bf16.msra.mxu1 %v28265_v6 }
 0x14f   :  { %20699 = vmatprep.subr.bf16.mxu1 %v28179_v40 }
 0x150   :  { %16164 = vmatmul.mubr.f32.gmra.mrb[4].mxu0 %v24453_v13 }
 0x151   :  { %16166 = vmatprep.mubr.f32.mxu0 %v28255_v58  ;;  %20557 = vmatpush3.bf16.msra.mxu0 %v28269_v31 }
 0x152   :  { %20558 = vmatprep.subr.bf16.mxu0 %v28179_v40  ;;  %20701 = vmatpush3.bf16.msra.mxu1 %v28269_v31 }
 0x153   :  { %20702 = vmatprep.subr.bf16.mxu1 %v28179_v40 }
 0x154   :  { %16167 = vmatmul.mubr.f32.gmra.mrb[6].mxu0 %v24513_v8 }
 0x155   :  { %20560 = vmatpush3.bf16.msra.mxu0 %v28272_v32  ;;  %16411 = vmatprep.mubr.msk.f32.mxu0 %vm23712_vm0, %v28198_v52 }
 0x156   :  { %20561 = vmatprep.subr.bf16.mxu0 %v28179_v40  ;;  %20704 = vmatpush3.bf16.msra.mxu1 %v28272_v32 }
 0x157   :  { %20705 = vmatprep.subr.bf16.mxu1 %v28179_v40 }
 0x159   :  { %20563 = vmatpush3.bf16.msra.mxu0 %v28275_v60 }
 0x15a   :  { %20564 = vmatprep.subr.bf16.mxu0 %v28179_v40  ;;  %20707 = vmatpush3.bf16.msra.mxu1 %v28275_v60 }
 0x15b   :  { %20708 = vmatprep.subr.bf16.mxu1 %v28179_v40 }
 0x15d   :  { %20566 = vmatpush3.bf16.msra.mxu0 %v28277_v48 }
 0x15e   :  { %20567 = vmatprep.subr.bf16.mxu0 %v28179_v40  ;;  %20710 = vmatpush3.bf16.msra.mxu1 %v28277_v48 }
 0x15f   :  { %20711 = vmatprep.subr.bf16.mxu1 %v28179_v40 }
 0x161   :  { %20569 = vmatpush3.bf16.msra.mxu0 %v28279_v45 }
 0x162   :  { %20570 = vmatprep.subr.bf16.mxu0 %v28179_v40  ;;  %20713 = vmatpush3.bf16.msra.mxu1 %v28279_v45 }
 0x163   :  { %20714 = vmatprep.subr.bf16.mxu1 %v28179_v40 }
 0x165   :  { %20572 = vmatpush3.bf16.msra.mxu0 %v28281_v22 }
 0x166   :  { %20573 = vmatprep.subr.bf16.mxu0 %v28179_v40  ;;  %20716 = vmatpush3.bf16.msra.mxu1 %v28281_v22 }
 0x167   :  { %20717 = vmatprep.subr.bf16.mxu1 %v28179_v40 }
 0x21b   :  { %v1756_v3 = vpop.f32.mrb[0].mxu1  ;;  %v16159_v25 = vpop.f32.mrb[0].mxu0 }
 0x21c   :  { %v24889_v14 = vadd.f32 %v16159_v25, %v13777_v53  ;;  %v16378_v39 = vpop.f32.mrb[1].mxu1  ;;  %v1077_v36 = vpop.f32.mrb[1].mxu0 }
 0x21d   :  { %v23190_v13 = vadd.f32 %v13777_v53, %v1077_v36 }
 0x21f   :  { %v1760_v8 = vadd.f32 %v23190_v13, %v1756_v3  ;;  %v16162_v18 = vpop.f32.mrb[2].mxu0 }
 0x220   :  { %v24891_v26 = vadd.f32 %v16162_v18, %v13777_v53  ;;  %v1089_v50 = vpop.f32.mrb[3].mxu0 }
 0x221   :  { %23480 = vtanh.f32 %v1760_v8  ;;  %v24893_v33 = vadd.f32 %v13777_v53, %v1089_v50 }
 0x223   :  { %v16165_v43 = vpop.f32.mrb[4].mxu0 }
 0x224   :  { %v24895_v4 = vadd.f32 %v16165_v43, %v13777_v53  ;;  %v1101_v58 = vpop.f32.mrb[5].mxu0 }
 0x225   :  { %v24897_v59 = vadd.f32 %v13777_v53, %v1101_v58 }
 0x227   :  { %v16168_v19 = vpop.f32.mrb[6].mxu0 }
 0x228   :  { %v24899_v0 = vadd.f32 %v16168_v19, %v13777_v53  ;;  %v1113_v46 = vpop.f32.mrb[7].mxu0 }
 0x229   :  { %v24901_v16 = vadd.f32 %v13777_v53, %v1113_v46 }
 0x22b   :  { %v23481_v55 = vpop.eup %23480 }
 0x22c   :  { %v24903_v63 = vand.u32 4294901760, %v23481_v55 }
 0x22e   :  { %28289 = vst [vmem:[#allocation49_spill] sm:$0xff] %v24903_v63  ;;  %v24906_v42 = vsub.f32 %v23481_v55, %v24903_v63 }
 0x230   :  { %28290 = vst [vmem:[#allocation37_spill] sm:$0xff] %v24906_v42  ;;  %v24909_v30 = vand.u32 4294901760, %v24906_v42 }
 0x232   :  { %28291 = vst [vmem:[#allocation50_spill] sm:$0xff] %v24909_v30  ;;  %v1849_v27 = vsub.f32 %v24906_v42, %v24909_v30 }
 0x234   :  { %v24913_v11 = vand.u32 4294901760, %v1849_v27 }
 0x236   :  { %16412 = vmatmul.mubr.f32.vlgmr.msra.gmra.mrb[8].mxu0 %v24913_v11 }
 0x237   :  { %20575 = vmatpush3.bf16.msra.mxu0 %v28292_v49  ;;  %16446 = vmatprep.mubr.msk.f32.mxu0 %vm23712_vm0, %v28198_v52 }
 0x238   :  { %20576 = vmatprep.subr.bf16.mxu0 %v28179_v40 }
 0x23b   :  { %20578 = vmatpush3.bf16.msra.mxu0 %v28293_v2 }
 0x23c   :  { %20579 = vmatprep.subr.bf16.mxu0 %v28179_v40 }
 0x23f   :  { %20581 = vmatpush3.bf16.msra.mxu0 %v28294_v41 }
 0x240   :  { %20582 = vmatprep.subr.bf16.mxu0 %v28179_v40 }
 0x243   :  { %20584 = vmatpush3.bf16.msra.mxu0 %v28295_v9 }
 0x244   :  { %20585 = vmatprep.subr.bf16.mxu0 %v28179_v40 }
 0x247   :  { %20587 = vmatpush3.bf16.msra.mxu0 %v28296_v51 }
 0x248   :  { %20588 = vmatprep.subr.bf16.mxu0 %v28179_v40 }
 0x24b   :  { %20590 = vmatpush3.bf16.msra.mxu0 %v24464_v17 }
 0x24c   :  { %20591 = vmatprep.subr.bf16.mxu0 %v28179_v40 }
 0x24f   :  { %20593 = vmatpush3.bf16.msra.mxu0 %v28297_v29 }
 0x250   :  { %20594 = vmatprep.subr.bf16.mxu0 %v28179_v40 }
 0x253   :  { %20596 = vmatpush3.bf16.msra.mxu0 %v28298_v7 }
 0x254   :  { %20597 = vmatprep.subr.bf16.mxu0 %v28179_v40 }
 0x256   :  { %16447 = vmatmul.mubr.f32.vlgmr.msra.gmra.mrb[8].mxu0 %v24903_v63 }
 0x257   :  { %20599 = vmatpush3.bf16.msra.mxu0 %v24542_v23  ;;  %16481 = vmatprep.mubr.msk.f32.mxu0 %vm23712_vm0, %v28198_v52 }
 0x258   :  { %20600 = vmatprep.subr.bf16.mxu0 %v28179_v40 }
 0x25b   :  { %20602 = vmatpush3.bf16.msra.mxu0 %v24642_v47 }
 0x25c   :  { %20603 = vmatprep.subr.bf16.mxu0 %v28179_v40 }
 0x25f   :  { %20605 = vmatpush3.bf16.msra.mxu0 %v24654_v21 }
 0x260   :  { %20606 = vmatprep.subr.bf16.mxu0 %v28179_v40 }
 0x263   :  { %20608 = vmatpush3.bf16.msra.mxu0 %v24664_v5 }
 0x264   :  { %20609 = vmatprep.subr.bf16.mxu0 %v28179_v40 }
 0x267   :  { %20611 = vmatpush3.bf16.msra.mxu0 %v24674_v37 }
 0x268   :  { %20612 = vmatprep.subr.bf16.mxu0 %v28179_v40 }
 0x26b   :  { %20614 = vmatpush3.bf16.msra.mxu0 %v24683_v20 }
 0x26c   :  { %20615 = vmatprep.subr.bf16.mxu0 %v28179_v40 }
 0x26f   :  { %20617 = vmatpush3.bf16.msra.mxu0 %v24691_v24 }
 0x270   :  { %20618 = vmatprep.subr.bf16.mxu0 %v28179_v40 }
 0x273   :  { %20620 = vmatpush3.bf16.msra.mxu0 %v24699_v10 }
 0x274   :  { %20621 = vmatprep.subr.bf16.mxu0 %v28179_v40 }
 0x276   :  { %16482 = vmatmul.mubr.f32.vlgmr.msra.gmra.mrb[8].mxu0 %v24906_v42  ;;  %v25691_v42 = vld [vmem:[#allocation10 + $0x40] sm:$0xff] }
 0x277   :  { %20623 = vmatpush3.bf16.msra.mxu0 %v28261_v44  ;;  %16516 = vmatprep.mubr.msk.f32.mxu0 %vm23712_vm0, %v28198_v52 }
 0x278   :  { %20624 = vmatprep.subr.bf16.mxu0 %v28179_v40 }
 0x27b   :  { %20626 = vmatpush3.bf16.msra.mxu0 %v28265_v6 }
 0x27c   :  { %20627 = vmatprep.subr.bf16.mxu0 %v28179_v40 }
 0x27f   :  { %20629 = vmatpush3.bf16.msra.mxu0 %v28269_v31 }
 0x280   :  { %20630 = vmatprep.subr.bf16.mxu0 %v28179_v40 }
 0x283   :  { %20632 = vmatpush3.bf16.msra.mxu0 %v28272_v32 }
 0x284   :  { %20633 = vmatprep.subr.bf16.mxu0 %v28179_v40 }
 0x287   :  { %20635 = vmatpush3.bf16.msra.mxu0 %v28275_v60 }
 0x288   :  { %20636 = vmatprep.subr.bf16.mxu0 %v28179_v40 }
 0x28b   :  { %20638 = vmatpush3.bf16.msra.mxu0 %v28277_v48 }
 0x28c   :  { %20639 = vmatprep.subr.bf16.mxu0 %v28179_v40 }
 0x28f   :  { %20641 = vmatpush3.bf16.msra.mxu0 %v28279_v45 }
 0x290   :  { %20642 = vmatprep.subr.bf16.mxu0 %v28179_v40 }
 0x293   :  { %20644 = vmatpush3.bf16.msra.mxu0 %v28281_v22 }
 0x294   :  { %20645 = vmatprep.subr.bf16.mxu0 %v28179_v40 }
 0x296   :  { %16517 = vmatmul.mubr.f32.vlgmr.msra.gmra.mrb[8].mxu0 %v24909_v30  ;;  %v25661_v30 = vld [vmem:[#allocation10 + $0x20] sm:$0xff] }
 0x297   :  { %20647 = vmatpush3.bf16.msra.mxu0 %v24556_v1  ;;  %16551 = vmatprep.mubr.msk.f32.mxu0 %vm23712_vm0, %v28198_v52 }
 0x298   :  { %20648 = vmatprep.subr.bf16.mxu0 %v28179_v40 }
 0x29b   :  { %20650 = vmatpush3.bf16.msra.mxu0 %v24568_v38 }
 0x29c   :  { %20651 = vmatprep.subr.bf16.mxu0 %v28179_v40 }
 0x29f   :  { %20653 = vmatpush3.bf16.msra.mxu0 %v24581_v57 }
 0x2a0   :  { %20654 = vmatprep.subr.bf16.mxu0 %v28179_v40 }
 0x2a3   :  { %20656 = vmatpush3.bf16.msra.mxu0 %v24593_v56 }
 0x2a4   :  { %20657 = vmatprep.subr.bf16.mxu0 %v28179_v40 }
 0x2a7   :  { %20659 = vmatpush3.bf16.msra.mxu0 %v24606_v12 }
 0x2a8   :  { %20660 = vmatprep.subr.bf16.mxu0 %v28179_v40 }
 0x2ab   :  { %20662 = vmatpush3.bf16.msra.mxu0 %v24619_v62 }
 0x2ac   :  { %20663 = vmatprep.subr.bf16.mxu0 %v28179_v40 }
 0x2af   :  { %20665 = vmatpush3.bf16.msra.mxu0 %v24631_v34 }
 0x2b0   :  { %20666 = vmatprep.subr.bf16.mxu0 %v28179_v40 }
 0x2b3   :  { %20668 = vmatpush3.bf16.msra.mxu0 %v24635_v54 }
 0x2b4   :  { %20669 = vmatprep.subr.bf16.mxu0 %v28179_v40 }
 0x2b6   :  { %16552 = vmatmul.mubr.f32.vlgmr.msra.gmra.mrb[8].mxu0 %v24903_v63 }
 0x2b7   :  { %20671 = vmatpush3.bf16.msra.mxu0 %v28261_v44  ;;  %16586 = vmatprep.mubr.msk.f32.mxu0 %vm23712_vm0, %v28198_v52 }
 0x2b8   :  { %20672 = vmatprep.subr.bf16.mxu0 %v28179_v40 }
 0x2bb   :  { %20674 = vmatpush3.bf16.msra.mxu0 %v28265_v6 }
 0x2bc   :  { %20675 = vmatprep.subr.bf16.mxu0 %v28179_v40 }
 0x2bf   :  { %20677 = vmatpush3.bf16.msra.mxu0 %v28269_v31 }
 0x2c0   :  { %20678 = vmatprep.subr.bf16.mxu0 %v28179_v40 }
 0x2c3   :  { %20680 = vmatpush3.bf16.msra.mxu0 %v28272_v32 }
 0x2c4   :  { %20681 = vmatprep.subr.bf16.mxu0 %v28179_v40 }
 0x2c7   :  { %20683 = vmatpush3.bf16.msra.mxu0 %v28275_v60 }
 0x2c8   :  { %20684 = vmatprep.subr.bf16.mxu0 %v28179_v40 }
 0x2cb   :  { %20686 = vmatpush3.bf16.msra.mxu0 %v28277_v48 }
 0x2cc   :  { %20687 = vmatprep.subr.bf16.mxu0 %v28179_v40 }
 0x2cf   :  { %20689 = vmatpush3.bf16.msra.mxu0 %v28279_v45 }
 0x2d0   :  { %20690 = vmatprep.subr.bf16.mxu0 %v28179_v40 }
 0x2d3   :  { %20692 = vmatpush3.bf16.msra.mxu0 %v28281_v22 }
 0x2d4   :  { %20837 = vmatprep.subr.bf16.mxu0 %v28179_v40 }
 0x2d6   :  { %16587 = vmatmul.mubr.f32.vlgmr.msra.gmra.mrb[8].mxu0 %v24903_v63  ;;  %v25735_v63 = vld [vmem:[#allocation10 + $0x78] sm:$0xff] }
 0x2d7   :  { %20839 = vmatpush3.bf16.msra.mxu0 %v28261_v44  ;;  %16831 = vmatprep.mubr.msk.f32.mxu0 %vm23712_vm0, %v28198_v52 }
 0x2d8   :  { %20840 = vmatprep.subr.bf16.mxu0 %v28179_v40 }
 0x2db   :  { %20842 = vmatpush3.bf16.msra.mxu0 %v28265_v6 }
 0x2dc   :  { %20843 = vmatprep.subr.bf16.mxu0 %v28179_v40 }
 0x2df   :  { %20845 = vmatpush3.bf16.msra.mxu0 %v28269_v31 }
 0x2e0   :  { %20846 = vmatprep.subr.bf16.mxu0 %v28179_v40 }
 0x2e3   :  { %20848 = vmatpush3.bf16.msra.mxu0 %v28272_v32 }
 0x2e4   :  { %20849 = vmatprep.subr.bf16.mxu0 %v28179_v40 }
 0x2e7   :  { %20851 = vmatpush3.bf16.msra.mxu0 %v28275_v60 }
 0x2e8   :  { %20852 = vmatprep.subr.bf16.mxu0 %v28179_v40 }
 0x2eb   :  { %20854 = vmatpush3.bf16.msra.mxu0 %v28277_v48 }
 0x2ec   :  { %20855 = vmatprep.subr.bf16.mxu0 %v28179_v40 }
 0x2ef   :  { %20857 = vmatpush3.bf16.msra.mxu0 %v28279_v45 }
 0x2f0   :  { %20858 = vmatprep.subr.bf16.mxu0 %v28179_v40 }
 0x2f3   :  { %20860 = vmatpush3.bf16.msra.mxu0 %v28281_v22 }
 0x2f4   :  { %20861 = vmatprep.subr.bf16.mxu0 %v28179_v40 }
 0x3a9   :  { %v2402_v61 = vpop.f32.mrb[8].mxu0 }
 0x3aa   :  { %v2406_v15 = vadd.f32 %v24889_v14, %v2402_v61  ;;  %v16588_v35 = vpop.f32.mrb[9].mxu0 }
 0x3ac   :  { %23482 = vtanh.f32 %v2406_v15 }
 0x3b6   :  { %v23483_v28 = vpop.eup %23482 }
 0x3b7   :  { %v25030_v53 = vand.u32 4294901760, %v23483_v28 }
 0x3b9   :  { %28299 = vst [vmem:[#allocation51_spill] sm:$0xff] %v25030_v53  ;;  %v25033_v3 = vsub.f32 %v23483_v28, %v25030_v53 }
 0x3bb   :  { %28300 = vst [vmem:[#allocation22_spill] sm:$0xff] %v25033_v3  ;;  %v25036_v25 = vand.u32 4294901760, %v25033_v3 }
 0x3bd   :  { %28301 = vst [vmem:[#allocation38_spill] sm:$0xff] %v25036_v25  ;;  %v2495_v39 = vsub.f32 %v25033_v3, %v25036_v25 }
 0x3bf   :  { %v25040_v36 = vand.u32 4294901760, %v2495_v39 }
 0x3c1   :  { %16622 = vmatmul.mubr.f32.vlgmr.msra.gmra.mrb[2].mxu1 %v25040_v36 }
 0x3c2   :  { %20719 = vmatpush3.bf16.msra.mxu1 %v28292_v49  ;;  %16656 = vmatprep.mubr.msk.f32.mxu1 %vm23712_vm0, %v28198_v52 }
 0x3c3   :  { %20720 = vmatprep.subr.bf16.mxu1 %v28179_v40 }
 0x3c6   :  { %20722 = vmatpush3.bf16.msra.mxu1 %v28293_v2 }
 0x3c7   :  { %20723 = vmatprep.subr.bf16.mxu1 %v28179_v40 }
 0x3ca   :  { %20725 = vmatpush3.bf16.msra.mxu1 %v28294_v41 }
 0x3cb   :  { %20726 = vmatprep.subr.bf16.mxu1 %v28179_v40 }
 0x3ce   :  { %20728 = vmatpush3.bf16.msra.mxu1 %v28295_v9 }
 0x3cf   :  { %20729 = vmatprep.subr.bf16.mxu1 %v28179_v40 }
 0x3d2   :  { %20731 = vmatpush3.bf16.msra.mxu1 %v28296_v51 }
 0x3d3   :  { %20732 = vmatprep.subr.bf16.mxu1 %v28179_v40 }
 0x3d6   :  { %20734 = vmatpush3.bf16.msra.mxu1 %v24464_v17 }
 0x3d7   :  { %20735 = vmatprep.subr.bf16.mxu1 %v28179_v40 }
 0x3da   :  { %20737 = vmatpush3.bf16.msra.mxu1 %v28297_v29 }
 0x3db   :  { %20738 = vmatprep.subr.bf16.mxu1 %v28179_v40 }
 0x3de   :  { %20740 = vmatpush3.bf16.msra.mxu1 %v28298_v7 }
 0x3df   :  { %20741 = vmatprep.subr.bf16.mxu1 %v28179_v40 }
 0x3e1   :  { %16657 = vmatmul.mubr.f32.vlgmr.msra.gmra.mrb[2].mxu1 %v25030_v53 }
 0x3e2   :  { %20743 = vmatpush3.bf16.msra.mxu1 %v24542_v23  ;;  %16691 = vmatprep.mubr.msk.f32.mxu1 %vm23712_vm0, %v28198_v52 }
 0x3e3   :  { %20744 = vmatprep.subr.bf16.mxu1 %v28179_v40 }
 0x3e6   :  { %20746 = vmatpush3.bf16.msra.mxu1 %v24642_v47 }
 0x3e7   :  { %20747 = vmatprep.subr.bf16.mxu1 %v28179_v40 }
 0x3ea   :  { %20749 = vmatpush3.bf16.msra.mxu1 %v24654_v21 }
 0x3eb   :  { %20750 = vmatprep.subr.bf16.mxu1 %v28179_v40 }
 0x3ee   :  { %20752 = vmatpush3.bf16.msra.mxu1 %v24664_v5 }
 0x3ef   :  { %20753 = vmatprep.subr.bf16.mxu1 %v28179_v40 }
 0x3f2   :  { %20755 = vmatpush3.bf16.msra.mxu1 %v24674_v37 }
 0x3f3   :  { %20756 = vmatprep.subr.bf16.mxu1 %v28179_v40 }
 0x3f6   :  { %20758 = vmatpush3.bf16.msra.mxu1 %v24683_v20 }
 0x3f7   :  { %20759 = vmatprep.subr.bf16.mxu1 %v28179_v40 }
 0x3fa   :  { %20761 = vmatpush3.bf16.msra.mxu1 %v24691_v24 }
 0x3fb   :  { %20762 = vmatprep.subr.bf16.mxu1 %v28179_v40 }
 0x3fe   :  { %20764 = vmatpush3.bf16.msra.mxu1 %v24699_v10 }
 0x3ff   :  { %20765 = vmatprep.subr.bf16.mxu1 %v28179_v40 }
 0x401   :  { %16692 = vmatmul.mubr.f32.vlgmr.msra.gmra.mrb[2].mxu1 %v25033_v3 }
 0x402   :  { %20767 = vmatpush3.bf16.msra.mxu1 %v28261_v44  ;;  %16726 = vmatprep.mubr.msk.f32.mxu1 %vm23712_vm0, %v28198_v52 }
 0x403   :  { %20768 = vmatprep.subr.bf16.mxu1 %v28179_v40 }
 0x406   :  { %20770 = vmatpush3.bf16.msra.mxu1 %v28265_v6 }
 0x407   :  { %20771 = vmatprep.subr.bf16.mxu1 %v28179_v40 }
 0x40a   :  { %20773 = vmatpush3.bf16.msra.mxu1 %v28269_v31 }
 0x40b   :  { %20774 = vmatprep.subr.bf16.mxu1 %v28179_v40 }
 0x40e   :  { %20776 = vmatpush3.bf16.msra.mxu1 %v28272_v32 }
 0x40f   :  { %20777 = vmatprep.subr.bf16.mxu1 %v28179_v40 }
 0x412   :  { %20779 = vmatpush3.bf16.msra.mxu1 %v28275_v60 }
 0x413   :  { %20780 = vmatprep.subr.bf16.mxu1 %v28179_v40 }
 0x416   :  { %20782 = vmatpush3.bf16.msra.mxu1 %v28277_v48 }
 0x417   :  { %20783 = vmatprep.subr.bf16.mxu1 %v28179_v40 }
 0x41a   :  { %20785 = vmatpush3.bf16.msra.mxu1 %v28279_v45 }
 0x41b   :  { %20786 = vmatprep.subr.bf16.mxu1 %v28179_v40 }
 0x41e   :  { %20788 = vmatpush3.bf16.msra.mxu1 %v28281_v22 }
 0x41f   :  { %20789 = vmatprep.subr.bf16.mxu1 %v28179_v40 }
 0x421   :  { %16727 = vmatmul.mubr.f32.vlgmr.msra.gmra.mrb[2].mxu1 %v25036_v25 }
 0x422   :  { %20791 = vmatpush3.bf16.msra.mxu1 %v24556_v1  ;;  %16761 = vmatprep.mubr.msk.f32.mxu1 %vm23712_vm0, %v28198_v52 }
 0x423   :  { %20792 = vmatprep.subr.bf16.mxu1 %v28179_v40 }
 0x426   :  { %20794 = vmatpush3.bf16.msra.mxu1 %v24568_v38 }
 0x427   :  { %20795 = vmatprep.subr.bf16.mxu1 %v28179_v40 }
 0x42a   :  { %20797 = vmatpush3.bf16.msra.mxu1 %v24581_v57 }
 0x42b   :  { %20798 = vmatprep.subr.bf16.mxu1 %v28179_v40 }
 0x42e   :  { %20800 = vmatpush3.bf16.msra.mxu1 %v24593_v56 }
 0x42f   :  { %20801 = vmatprep.subr.bf16.mxu1 %v28179_v40 }
 0x432   :  { %20803 = vmatpush3.bf16.msra.mxu1 %v24606_v12 }
 0x433   :  { %20804 = vmatprep.subr.bf16.mxu1 %v28179_v40 }
 0x436   :  { %20806 = vmatpush3.bf16.msra.mxu1 %v24619_v62 }
 0x437   :  { %20807 = vmatprep.subr.bf16.mxu1 %v28179_v40 }
 0x43a   :  { %20809 = vmatpush3.bf16.msra.mxu1 %v24631_v34 }
 0x43b   :  { %20810 = vmatprep.subr.bf16.mxu1 %v28179_v40 }
 0x43e   :  { %20812 = vmatpush3.bf16.msra.mxu1 %v24635_v54 }
 0x43f   :  { %20813 = vmatprep.subr.bf16.mxu1 %v28179_v40 }
 0x441   :  { %16762 = vmatmul.mubr.f32.vlgmr.msra.gmra.mrb[2].mxu1 %v25030_v53 }
 0x442   :  { %20815 = vmatpush3.bf16.msra.mxu1 %v28261_v44  ;;  %16796 = vmatprep.mubr.msk.f32.mxu1 %vm23712_vm0, %v28198_v52 }
 0x443   :  { %20816 = vmatprep.subr.bf16.mxu1 %v28179_v40 }
 0x446   :  { %20818 = vmatpush3.bf16.msra.mxu1 %v28265_v6 }
 0x447   :  { %20819 = vmatprep.subr.bf16.mxu1 %v28179_v40 }
 0x44a   :  { %20821 = vmatpush3.bf16.msra.mxu1 %v28269_v31 }
 0x44b   :  { %20822 = vmatprep.subr.bf16.mxu1 %v28179_v40 }
 0x44e   :  { %20824 = vmatpush3.bf16.msra.mxu1 %v28272_v32 }
 0x44f   :  { %20825 = vmatprep.subr.bf16.mxu1 %v28179_v40 }
 0x452   :  { %20827 = vmatpush3.bf16.msra.mxu1 %v28275_v60 }
 0x453   :  { %20828 = vmatprep.subr.bf16.mxu1 %v28179_v40 }
 0x456   :  { %20830 = vmatpush3.bf16.msra.mxu1 %v28277_v48 }
 0x457   :  { %20831 = vmatprep.subr.bf16.mxu1 %v28179_v40 }
 0x45a   :  { %20833 = vmatpush3.bf16.msra.mxu1 %v28279_v45 }
 0x45b   :  { %20834 = vmatprep.subr.bf16.mxu1 %v28179_v40 }
 0x45e   :  { %20836 = vmatpush3.bf16.msra.mxu1 %v28281_v22 }
 0x45f   :  { %20981 = vmatprep.subr.bf16.mxu1 %v28179_v40 }
 0x461   :  { %16797 = vmatmul.mubr.f32.vlgmr.msra.gmra.mrb[2].mxu1 %v25030_v53  ;;  %v25733_v53 = vld [vmem:[#allocation10 + $0x70] sm:$0xff] }
 0x462   :  { %20983 = vmatpush3.bf16.msra.mxu1 %v28261_v44  ;;  %17041 = vmatprep.mubr.msk.f32.mxu1 %vm23712_vm0, %v28198_v52 }
 0x463   :  { %20984 = vmatprep.subr.bf16.mxu1 %v28179_v40 }
 0x466   :  { %20986 = vmatpush3.bf16.msra.mxu1 %v28265_v6 }
 0x467   :  { %20987 = vmatprep.subr.bf16.mxu1 %v28179_v40 }
 0x46a   :  { %20989 = vmatpush3.bf16.msra.mxu1 %v28269_v31 }
 0x46b   :  { %20990 = vmatprep.subr.bf16.mxu1 %v28179_v40 }
 0x46e   :  { %20992 = vmatpush3.bf16.msra.mxu1 %v28272_v32 }
 0x46f   :  { %20993 = vmatprep.subr.bf16.mxu1 %v28179_v40 }
 0x472   :  { %20995 = vmatpush3.bf16.msra.mxu1 %v28275_v60 }
 0x473   :  { %20996 = vmatprep.subr.bf16.mxu1 %v28179_v40 }
 0x476   :  { %20998 = vmatpush3.bf16.msra.mxu1 %v28277_v48 }
 0x477   :  { %20999 = vmatprep.subr.bf16.mxu1 %v28179_v40 }
 0x47a   :  { %21001 = vmatpush3.bf16.msra.mxu1 %v28279_v45 }
 0x47b   :  { %21002 = vmatprep.subr.bf16.mxu1 %v28179_v40 }
 0x47e   :  { %21004 = vmatpush3.bf16.msra.mxu1 %v28281_v22 }
 0x47f   :  { %21005 = vmatprep.subr.bf16.mxu1 %v28179_v40 }
 0x534   :  { %v3048_v14 = vpop.f32.mrb[2].mxu1 }
 0x535   :  { %v3052_v13 = vadd.f32 %v24893_v33, %v3048_v14  ;;  %v16798_v8 = vpop.f32.mrb[3].mxu1 }
 0x537   :  { %23484 = vtanh.f32 %v3052_v13 }
 0x541   :  { %v23485_v18 = vpop.eup %23484 }
 0x542   :  { %v25157_v50 = vand.u32 4294901760, %v23485_v18 }
 0x544   :  { %28302 = vst [vmem:[#allocation23_spill] sm:$0xff] %v25157_v50  ;;  %v25160_v43 = vsub.f32 %v23485_v18, %v25157_v50 }
 0x546   :  { %28303 = vst [vmem:[#allocation24_spill] sm:$0xff] %v25160_v43  ;;  %v25163_v58 = vand.u32 4294901760, %v25160_v43 }
 0x548   :  { %28304 = vst [vmem:[#allocation43_spill] sm:$0xff] %v25163_v58  ;;  %v3141_v19 = vsub.f32 %v25160_v43, %v25163_v58 }
 0x54a   :  { %v25167_v46 = vand.u32 4294901760, %v3141_v19 }
 0x54c   :  { %16832 = vmatmul.mubr.f32.vlgmr.msra.gmra.mrb[10].mxu0 %v25167_v46 }
 0x54d   :  { %20863 = vmatpush3.bf16.msra.mxu0 %v28292_v49  ;;  %16866 = vmatprep.mubr.msk.f32.mxu0 %vm23712_vm0, %v28198_v52 }
 0x54e   :  { %20864 = vmatprep.subr.bf16.mxu0 %v28179_v40 }
 0x551   :  { %20866 = vmatpush3.bf16.msra.mxu0 %v28293_v2 }
 0x552   :  { %20867 = vmatprep.subr.bf16.mxu0 %v28179_v40 }
 0x555   :  { %20869 = vmatpush3.bf16.msra.mxu0 %v28294_v41 }
 0x556   :  { %20870 = vmatprep.subr.bf16.mxu0 %v28179_v40 }
 0x559   :  { %20872 = vmatpush3.bf16.msra.mxu0 %v28295_v9 }
 0x55a   :  { %20873 = vmatprep.subr.bf16.mxu0 %v28179_v40 }
 0x55d   :  { %20875 = vmatpush3.bf16.msra.mxu0 %v28296_v51 }
 0x55e   :  { %20876 = vmatprep.subr.bf16.mxu0 %v28179_v40 }
 0x561   :  { %20878 = vmatpush3.bf16.msra.mxu0 %v24464_v17 }
 0x562   :  { %20879 = vmatprep.subr.bf16.mxu0 %v28179_v40 }
 0x565   :  { %20881 = vmatpush3.bf16.msra.mxu0 %v28297_v29 }
 0x566   :  { %20882 = vmatprep.subr.bf16.mxu0 %v28179_v40 }
 0x569   :  { %20884 = vmatpush3.bf16.msra.mxu0 %v28298_v7 }
 0x56a   :  { %20885 = vmatprep.subr.bf16.mxu0 %v28179_v40 }
 0x56c   :  { %16867 = vmatmul.mubr.f32.vlgmr.msra.gmra.mrb[10].mxu0 %v25157_v50 }
 0x56d   :  { %20887 = vmatpush3.bf16.msra.mxu0 %v24542_v23  ;;  %16901 = vmatprep.mubr.msk.f32.mxu0 %vm23712_vm0, %v28198_v52 }
 0x56e   :  { %20888 = vmatprep.subr.bf16.mxu0 %v28179_v40 }
 0x571   :  { %20890 = vmatpush3.bf16.msra.mxu0 %v24642_v47 }
 0x572   :  { %20891 = vmatprep.subr.bf16.mxu0 %v28179_v40 }
 0x575   :  { %20893 = vmatpush3.bf16.msra.mxu0 %v24654_v21 }
 0x576   :  { %20894 = vmatprep.subr.bf16.mxu0 %v28179_v40 }
 0x579   :  { %20896 = vmatpush3.bf16.msra.mxu0 %v24664_v5 }
 0x57a   :  { %20897 = vmatprep.subr.bf16.mxu0 %v28179_v40 }
 0x57d   :  { %20899 = vmatpush3.bf16.msra.mxu0 %v24674_v37 }
 0x57e   :  { %20900 = vmatprep.subr.bf16.mxu0 %v28179_v40 }
 0x581   :  { %20902 = vmatpush3.bf16.msra.mxu0 %v24683_v20 }
 0x582   :  { %20903 = vmatprep.subr.bf16.mxu0 %v28179_v40 }
 0x585   :  { %20905 = vmatpush3.bf16.msra.mxu0 %v24691_v24 }
 0x586   :  { %20906 = vmatprep.subr.bf16.mxu0 %v28179_v40 }
 0x589   :  { %20908 = vmatpush3.bf16.msra.mxu0 %v24699_v10 }
 0x58a   :  { %20909 = vmatprep.subr.bf16.mxu0 %v28179_v40 }
 0x58c   :  { %16902 = vmatmul.mubr.f32.vlgmr.msra.gmra.mrb[10].mxu0 %v25160_v43  ;;  %v25677_v43 = vld [vmem:[#allocation10 + $0x38] sm:$0xff] }
 0x58d   :  { %20911 = vmatpush3.bf16.msra.mxu0 %v28261_v44  ;;  %16936 = vmatprep.mubr.msk.f32.mxu0 %vm23712_vm0, %v28198_v52  ;;  %v28055_v3 = vand.u32 4294901760, %v25677_v43 }
 0x58e   :  { %20912 = vmatprep.subr.bf16.mxu0 %v28179_v40 }
 0x591   :  { %20914 = vmatpush3.bf16.msra.mxu0 %v28265_v6 }
 0x592   :  { %20915 = vmatprep.subr.bf16.mxu0 %v28179_v40 }
 0x595   :  { %20917 = vmatpush3.bf16.msra.mxu0 %v28269_v31 }
 0x596   :  { %20918 = vmatprep.subr.bf16.mxu0 %v28179_v40 }
 0x599   :  { %20920 = vmatpush3.bf16.msra.mxu0 %v28272_v32 }
 0x59a   :  { %20921 = vmatprep.subr.bf16.mxu0 %v28179_v40 }
 0x59d   :  { %20923 = vmatpush3.bf16.msra.mxu0 %v28275_v60 }
 0x59e   :  { %20924 = vmatprep.subr.bf16.mxu0 %v28179_v40 }
 0x5a1   :  { %20926 = vmatpush3.bf16.msra.mxu0 %v28277_v48 }
 0x5a2   :  { %20927 = vmatprep.subr.bf16.mxu0 %v28179_v40 }
 0x5a5   :  { %20929 = vmatpush3.bf16.msra.mxu0 %v28279_v45 }
 0x5a6   :  { %20930 = vmatprep.subr.bf16.mxu0 %v28179_v40 }
 0x5a9   :  { %20932 = vmatpush3.bf16.msra.mxu0 %v28281_v22 }
 0x5aa   :  { %20933 = vmatprep.subr.bf16.mxu0 %v28179_v40 }
 0x5ac   :  { %16937 = vmatmul.mubr.f32.vlgmr.msra.gmra.mrb[10].mxu0 %v25163_v58 }
 0x5ad   :  { %20935 = vmatpush3.bf16.msra.mxu0 %v24556_v1  ;;  %16971 = vmatprep.mubr.msk.f32.mxu0 %vm23712_vm0, %v28198_v52 }
 0x5ae   :  { %20936 = vmatprep.subr.bf16.mxu0 %v28179_v40 }
 0x5b1   :  { %20938 = vmatpush3.bf16.msra.mxu0 %v24568_v38 }
 0x5b2   :  { %20939 = vmatprep.subr.bf16.mxu0 %v28179_v40 }
 0x5b5   :  { %20941 = vmatpush3.bf16.msra.mxu0 %v24581_v57 }
 0x5b6   :  { %20942 = vmatprep.subr.bf16.mxu0 %v28179_v40 }
 0x5b9   :  { %20944 = vmatpush3.bf16.msra.mxu0 %v24593_v56 }
 0x5ba   :  { %20945 = vmatprep.subr.bf16.mxu0 %v28179_v40 }
 0x5bd   :  { %20947 = vmatpush3.bf16.msra.mxu0 %v24606_v12 }
 0x5be   :  { %20948 = vmatprep.subr.bf16.mxu0 %v28179_v40 }
 0x5c1   :  { %20950 = vmatpush3.bf16.msra.mxu0 %v24619_v62 }
 0x5c2   :  { %20951 = vmatprep.subr.bf16.mxu0 %v28179_v40 }
 0x5c5   :  { %20953 = vmatpush3.bf16.msra.mxu0 %v24631_v34 }
 0x5c6   :  { %20954 = vmatprep.subr.bf16.mxu0 %v28179_v40 }
 0x5c9   :  { %20956 = vmatpush3.bf16.msra.mxu0 %v24635_v54 }
 0x5ca   :  { %20957 = vmatprep.subr.bf16.mxu0 %v28179_v40 }
 0x5cc   :  { %16972 = vmatmul.mubr.f32.vlgmr.msra.gmra.mrb[10].mxu0 %v25157_v50 }
 0x5cd   :  { %20959 = vmatpush3.bf16.msra.mxu0 %v28261_v44  ;;  %17006 = vmatprep.mubr.msk.f32.mxu0 %vm23712_vm0, %v28198_v52 }
 0x5ce   :  { %20960 = vmatprep.subr.bf16.mxu0 %v28179_v40 }
 0x5d1   :  { %20962 = vmatpush3.bf16.msra.mxu0 %v28265_v6 }
 0x5d2   :  { %20963 = vmatprep.subr.bf16.mxu0 %v28179_v40 }
 0x5d5   :  { %20965 = vmatpush3.bf16.msra.mxu0 %v28269_v31 }
 0x5d6   :  { %20966 = vmatprep.subr.bf16.mxu0 %v28179_v40 }
 0x5d9   :  { %20968 = vmatpush3.bf16.msra.mxu0 %v28272_v32 }
 0x5da   :  { %20969 = vmatprep.subr.bf16.mxu0 %v28179_v40 }
 0x5dd   :  { %20971 = vmatpush3.bf16.msra.mxu0 %v28275_v60 }
 0x5de   :  { %20972 = vmatprep.subr.bf16.mxu0 %v28179_v40 }
 0x5e1   :  { %20974 = vmatpush3.bf16.msra.mxu0 %v28277_v48 }
 0x5e2   :  { %20975 = vmatprep.subr.bf16.mxu0 %v28179_v40 }
 0x5e5   :  { %20977 = vmatpush3.bf16.msra.mxu0 %v28279_v45 }
 0x5e6   :  { %20978 = vmatprep.subr.bf16.mxu0 %v28179_v40 }
 0x5e9   :  { %20980 = vmatpush3.bf16.msra.mxu0 %v28281_v22 }
 0x5ea   :  { %21125 = vmatprep.subr.bf16.mxu0 %v28179_v40 }
 0x5ec   :  { %17007 = vmatmul.mubr.f32.vlgmr.msra.gmra.mrb[10].mxu0 %v25157_v50  ;;  %v25721_v50 = vld [vmem:[#allocation10 + $0x68] sm:$0xff] }
 0x5ed   :  { %21127 = vmatpush3.bf16.msra.mxu0 %v28261_v44  ;;  %17251 = vmatprep.mubr.msk.f32.mxu0 %vm23712_vm0, %v28198_v52 }
 0x5ee   :  { %21128 = vmatprep.subr.bf16.mxu0 %v28179_v40 }
 0x5f1   :  { %21130 = vmatpush3.bf16.msra.mxu0 %v28265_v6 }
 0x5f2   :  { %21131 = vmatprep.subr.bf16.mxu0 %v28179_v40 }
 0x5f5   :  { %21133 = vmatpush3.bf16.msra.mxu0 %v28269_v31 }
 0x5f6   :  { %21134 = vmatprep.subr.bf16.mxu0 %v28179_v40 }
 0x5f9   :  { %21136 = vmatpush3.bf16.msra.mxu0 %v28272_v32 }
 0x5fa   :  { %21137 = vmatprep.subr.bf16.mxu0 %v28179_v40 }
 0x5fd   :  { %21139 = vmatpush3.bf16.msra.mxu0 %v28275_v60 }
 0x5fe   :  { %21140 = vmatprep.subr.bf16.mxu0 %v28179_v40 }
 0x601   :  { %21142 = vmatpush3.bf16.msra.mxu0 %v28277_v48 }
 0x602   :  { %21143 = vmatprep.subr.bf16.mxu0 %v28179_v40 }
 0x605   :  { %21145 = vmatpush3.bf16.msra.mxu0 %v28279_v45 }
 0x606   :  { %21146 = vmatprep.subr.bf16.mxu0 %v28179_v40 }
 0x609   :  { %21148 = vmatpush3.bf16.msra.mxu0 %v28281_v22 }
 0x60a   :  { %21149 = vmatprep.subr.bf16.mxu0 %v28179_v40 }
 0x6bf   :  { %v3694_v33 = vpop.f32.mrb[10].mxu0 }
 0x6c0   :  { %v3698_v55 = vadd.f32 %v24891_v26, %v3694_v33  ;;  %v17008_v27 = vpop.f32.mrb[11].mxu0 }
 0x6c2   :  { %23486 = vtanh.f32 %v3698_v55 }
 0x6cc   :  { %v23487_v61 = vpop.eup %23486 }
 0x6cd   :  { %v25284_v15 = vand.u32 4294901760, %v23487_v61 }
 0x6cf   :  { %28305 = vst [vmem:[#allocation45_spill] sm:$0xff] %v25284_v15  ;;  %v25287_v35 = vsub.f32 %v23487_v61, %v25284_v15 }
 0x6d1   :  { %28306 = vst [vmem:[#allocation25_spill] sm:$0xff] %v25287_v35  ;;  %v25290_v28 = vand.u32 4294901760, %v25287_v35 }
 0x6d3   :  { %28307 = vst [vmem:[#allocation26_spill] sm:$0xff] %v25290_v28  ;;  %v3787_v39 = vsub.f32 %v25287_v35, %v25290_v28 }
 0x6d5   :  { %v25294_v14 = vand.u32 4294901760, %v3787_v39 }
 0x6d7   :  { %17042 = vmatmul.mubr.f32.vlgmr.msra.gmra.mrb[4].mxu1 %v25294_v14 }
 0x6d8   :  { %21007 = vmatpush3.bf16.msra.mxu1 %v28292_v49  ;;  %17076 = vmatprep.mubr.msk.f32.mxu1 %vm23712_vm0, %v28198_v52 }
 0x6d9   :  { %21008 = vmatprep.subr.bf16.mxu1 %v28179_v40 }
 0x6dc   :  { %21010 = vmatpush3.bf16.msra.mxu1 %v28293_v2 }
 0x6dd   :  { %21011 = vmatprep.subr.bf16.mxu1 %v28179_v40 }
 0x6e0   :  { %21013 = vmatpush3.bf16.msra.mxu1 %v28294_v41 }
 0x6e1   :  { %21014 = vmatprep.subr.bf16.mxu1 %v28179_v40 }
 0x6e4   :  { %21016 = vmatpush3.bf16.msra.mxu1 %v28295_v9 }
 0x6e5   :  { %21017 = vmatprep.subr.bf16.mxu1 %v28179_v40 }
 0x6e8   :  { %21019 = vmatpush3.bf16.msra.mxu1 %v28296_v51 }
 0x6e9   :  { %21020 = vmatprep.subr.bf16.mxu1 %v28179_v40 }
 0x6ec   :  { %21022 = vmatpush3.bf16.msra.mxu1 %v24464_v17 }
 0x6ed   :  { %21023 = vmatprep.subr.bf16.mxu1 %v28179_v40 }
 0x6f0   :  { %21025 = vmatpush3.bf16.msra.mxu1 %v28297_v29 }
 0x6f1   :  { %21026 = vmatprep.subr.bf16.mxu1 %v28179_v40 }
 0x6f4   :  { %21028 = vmatpush3.bf16.msra.mxu1 %v28298_v7 }
 0x6f5   :  { %21029 = vmatprep.subr.bf16.mxu1 %v28179_v40 }
 0x6f7   :  { %17077 = vmatmul.mubr.f32.vlgmr.msra.gmra.mrb[4].mxu1 %v25284_v15 }
 0x6f8   :  { %21031 = vmatpush3.bf16.msra.mxu1 %v24542_v23  ;;  %17111 = vmatprep.mubr.msk.f32.mxu1 %vm23712_vm0, %v28198_v52 }
 0x6f9   :  { %21032 = vmatprep.subr.bf16.mxu1 %v28179_v40 }
 0x6fc   :  { %21034 = vmatpush3.bf16.msra.mxu1 %v24642_v47 }
 0x6fd   :  { %21035 = vmatprep.subr.bf16.mxu1 %v28179_v40 }
 0x700   :  { %21037 = vmatpush3.bf16.msra.mxu1 %v24654_v21 }
 0x701   :  { %21038 = vmatprep.subr.bf16.mxu1 %v28179_v40 }
 0x704   :  { %21040 = vmatpush3.bf16.msra.mxu1 %v24664_v5 }
 0x705   :  { %21041 = vmatprep.subr.bf16.mxu1 %v28179_v40 }
 0x708   :  { %21043 = vmatpush3.bf16.msra.mxu1 %v24674_v37 }
 0x709   :  { %21044 = vmatprep.subr.bf16.mxu1 %v28179_v40 }
 0x70c   :  { %21046 = vmatpush3.bf16.msra.mxu1 %v24683_v20 }
 0x70d   :  { %21047 = vmatprep.subr.bf16.mxu1 %v28179_v40 }
 0x710   :  { %21049 = vmatpush3.bf16.msra.mxu1 %v24691_v24 }
 0x711   :  { %21050 = vmatprep.subr.bf16.mxu1 %v28179_v40 }
 0x714   :  { %21052 = vmatpush3.bf16.msra.mxu1 %v24699_v10 }
 0x715   :  { %21053 = vmatprep.subr.bf16.mxu1 %v28179_v40 }
 0x717   :  { %17112 = vmatmul.mubr.f32.vlgmr.msra.gmra.mrb[4].mxu1 %v25287_v35  ;;  %v25675_v35 = vld [vmem:[#allocation10 + $0x30] sm:$0xff] }
 0x718   :  { %21055 = vmatpush3.bf16.msra.mxu1 %v28261_v44  ;;  %17146 = vmatprep.mubr.msk.f32.mxu1 %vm23712_vm0, %v28198_v52 }
 0x719   :  { %21056 = vmatprep.subr.bf16.mxu1 %v28179_v40 }
 0x71c   :  { %21058 = vmatpush3.bf16.msra.mxu1 %v28265_v6 }
 0x71d   :  { %21059 = vmatprep.subr.bf16.mxu1 %v28179_v40 }
 0x720   :  { %21061 = vmatpush3.bf16.msra.mxu1 %v28269_v31 }
 0x721   :  { %21062 = vmatprep.subr.bf16.mxu1 %v28179_v40 }
 0x724   :  { %21064 = vmatpush3.bf16.msra.mxu1 %v28272_v32 }
 0x725   :  { %21065 = vmatprep.subr.bf16.mxu1 %v28179_v40 }
 0x728   :  { %21067 = vmatpush3.bf16.msra.mxu1 %v28275_v60 }
 0x729   :  { %21068 = vmatprep.subr.bf16.mxu1 %v28179_v40 }
 0x72c   :  { %21070 = vmatpush3.bf16.msra.mxu1 %v28277_v48 }
 0x72d   :  { %21071 = vmatprep.subr.bf16.mxu1 %v28179_v40 }
 0x730   :  { %21073 = vmatpush3.bf16.msra.mxu1 %v28279_v45 }
 0x731   :  { %21074 = vmatprep.subr.bf16.mxu1 %v28179_v40 }
 0x734   :  { %21076 = vmatpush3.bf16.msra.mxu1 %v28281_v22 }
 0x735   :  { %21077 = vmatprep.subr.bf16.mxu1 %v28179_v40 }
 0x737   :  { %17147 = vmatmul.mubr.f32.vlgmr.msra.gmra.mrb[4].mxu1 %v25290_v28 }
 0x738   :  { %21079 = vmatpush3.bf16.msra.mxu1 %v24556_v1  ;;  %17181 = vmatprep.mubr.msk.f32.mxu1 %vm23712_vm0, %v28198_v52 }
 0x739   :  { %21080 = vmatprep.subr.bf16.mxu1 %v28179_v40 }
 0x73c   :  { %21082 = vmatpush3.bf16.msra.mxu1 %v24568_v38 }
 0x73d   :  { %21083 = vmatprep.subr.bf16.mxu1 %v28179_v40 }
 0x740   :  { %21085 = vmatpush3.bf16.msra.mxu1 %v24581_v57 }
 0x741   :  { %21086 = vmatprep.subr.bf16.mxu1 %v28179_v40 }
 0x744   :  { %21088 = vmatpush3.bf16.msra.mxu1 %v24593_v56 }
 0x745   :  { %21089 = vmatprep.subr.bf16.mxu1 %v28179_v40 }
 0x748   :  { %21091 = vmatpush3.bf16.msra.mxu1 %v24606_v12 }
 0x749   :  { %21092 = vmatprep.subr.bf16.mxu1 %v28179_v40 }
 0x74c   :  { %21094 = vmatpush3.bf16.msra.mxu1 %v24619_v62 }
 0x74d   :  { %21095 = vmatprep.subr.bf16.mxu1 %v28179_v40 }
 0x750   :  { %21097 = vmatpush3.bf16.msra.mxu1 %v24631_v34 }
 0x751   :  { %21098 = vmatprep.subr.bf16.mxu1 %v28179_v40 }
 0x754   :  { %21100 = vmatpush3.bf16.msra.mxu1 %v24635_v54 }
 0x755   :  { %21101 = vmatprep.subr.bf16.mxu1 %v28179_v40 }
 0x757   :  { %17182 = vmatmul.mubr.f32.vlgmr.msra.gmra.mrb[4].mxu1 %v25284_v15 }
 0x758   :  { %21103 = vmatpush3.bf16.msra.mxu1 %v28261_v44  ;;  %17216 = vmatprep.mubr.msk.f32.mxu1 %vm23712_vm0, %v28198_v52 }
 0x759   :  { %21104 = vmatprep.subr.bf16.mxu1 %v28179_v40 }
 0x75c   :  { %21106 = vmatpush3.bf16.msra.mxu1 %v28265_v6 }
 0x75d   :  { %21107 = vmatprep.subr.bf16.mxu1 %v28179_v40 }
 0x760   :  { %21109 = vmatpush3.bf16.msra.mxu1 %v28269_v31 }
 0x761   :  { %21110 = vmatprep.subr.bf16.mxu1 %v28179_v40 }
 0x764   :  { %21112 = vmatpush3.bf16.msra.mxu1 %v28272_v32 }
 0x765   :  { %21113 = vmatprep.subr.bf16.mxu1 %v28179_v40 }
 0x768   :  { %21115 = vmatpush3.bf16.msra.mxu1 %v28275_v60 }
 0x769   :  { %21116 = vmatprep.subr.bf16.mxu1 %v28179_v40 }
 0x76c   :  { %21118 = vmatpush3.bf16.msra.mxu1 %v28277_v48 }
 0x76d   :  { %21119 = vmatprep.subr.bf16.mxu1 %v28179_v40 }
 0x770   :  { %21121 = vmatpush3.bf16.msra.mxu1 %v28279_v45 }
 0x771   :  { %21122 = vmatprep.subr.bf16.mxu1 %v28179_v40 }
 0x774   :  { %21124 = vmatpush3.bf16.msra.mxu1 %v28281_v22 }
 0x775   :  { %21269 = vmatprep.subr.bf16.mxu1 %v28179_v40 }
 0x777   :  { %17217 = vmatmul.mubr.f32.vlgmr.msra.gmra.mrb[4].mxu1 %v25284_v15  ;;  %v25719_v15 = vld [vmem:[#allocation10 + $0x60] sm:$0xff] }
 0x778   :  { %21271 = vmatpush3.bf16.msra.mxu1 %v28261_v44  ;;  %17461 = vmatprep.mubr.msk.f32.mxu1 %vm23712_vm0, %v28198_v52 }
 0x779   :  { %21272 = vmatprep.subr.bf16.mxu1 %v28179_v40 }
 0x77c   :  { %21274 = vmatpush3.bf16.msra.mxu1 %v28265_v6 }
 0x77d   :  { %21275 = vmatprep.subr.bf16.mxu1 %v28179_v40 }
 0x780   :  { %21277 = vmatpush3.bf16.msra.mxu1 %v28269_v31 }
 0x781   :  { %21278 = vmatprep.subr.bf16.mxu1 %v28179_v40 }
 0x784   :  { %21280 = vmatpush3.bf16.msra.mxu1 %v28272_v32 }
 0x785   :  { %21281 = vmatprep.subr.bf16.mxu1 %v28179_v40 }
 0x788   :  { %21283 = vmatpush3.bf16.msra.mxu1 %v28275_v60 }
 0x789   :  { %21284 = vmatprep.subr.bf16.mxu1 %v28179_v40 }
 0x78c   :  { %21286 = vmatpush3.bf16.msra.mxu1 %v28277_v48 }
 0x78d   :  { %21287 = vmatprep.subr.bf16.mxu1 %v28179_v40 }
 0x790   :  { %21289 = vmatpush3.bf16.msra.mxu1 %v28279_v45 }
 0x791   :  { %21290 = vmatprep.subr.bf16.mxu1 %v28179_v40 }
 0x794   :  { %21292 = vmatpush3.bf16.msra.mxu1 %v28281_v22 }
 0x795   :  { %21293 = vmatprep.subr.bf16.mxu1 %v28179_v40 }
 0x84a   :  { %v4340_v26 = vpop.f32.mrb[4].mxu1 }
 0x84b   :  { %v4344_v13 = vadd.f32 %v24897_v59, %v4340_v26  ;;  %v17218_v8 = vpop.f32.mrb[5].mxu1 }
 0x84d   :  { %23488 = vtanh.f32 %v4344_v13 }
 0x857   :  { %v23489_v18 = vpop.eup %23488 }
 0x858   :  { %v25411_v19 = vand.u32 4294901760, %v23489_v18 }
 0x85a   :  { %28308 = vst [vmem:[#allocation46_spill] sm:$0xff] %v25411_v19  ;;  %v25414_v33 = vsub.f32 %v23489_v18, %v25411_v19 }
 0x85c   :  { %28309 = vst [vmem:[#allocation48_spill] sm:$0xff] %v25414_v33  ;;  %v25417_v55 = vand.u32 4294901760, %v25414_v33 }
 0x85e   :  { %28310 = vst [vmem:[#allocation27_spill] sm:$0xff] %v25417_v55  ;;  %v4433_v27 = vsub.f32 %v25414_v33, %v25417_v55 }
 0x860   :  { %v25421_v61 = vand.u32 4294901760, %v4433_v27 }
 0x862   :  { %17252 = vmatmul.mubr.f32.vlgmr.msra.gmra.mrb[12].mxu0 %v25421_v61 }
 0x863   :  { %21151 = vmatpush3.bf16.msra.mxu0 %v28292_v49  ;;  %17286 = vmatprep.mubr.msk.f32.mxu0 %vm23712_vm0, %v28198_v52 }
 0x864   :  { %21152 = vmatprep.subr.bf16.mxu0 %v28179_v40 }
 0x867   :  { %21154 = vmatpush3.bf16.msra.mxu0 %v28293_v2 }
 0x868   :  { %21155 = vmatprep.subr.bf16.mxu0 %v28179_v40 }
 0x86b   :  { %21157 = vmatpush3.bf16.msra.mxu0 %v28294_v41 }
 0x86c   :  { %21158 = vmatprep.subr.bf16.mxu0 %v28179_v40 }
 0x86f   :  { %21160 = vmatpush3.bf16.msra.mxu0 %v28295_v9 }
 0x870   :  { %21161 = vmatprep.subr.bf16.mxu0 %v28179_v40 }
 0x873   :  { %21163 = vmatpush3.bf16.msra.mxu0 %v28296_v51 }
 0x874   :  { %21164 = vmatprep.subr.bf16.mxu0 %v28179_v40 }
 0x877   :  { %21166 = vmatpush3.bf16.msra.mxu0 %v24464_v17 }
 0x878   :  { %21167 = vmatprep.subr.bf16.mxu0 %v28179_v40 }
 0x87b   :  { %21169 = vmatpush3.bf16.msra.mxu0 %v28297_v29 }
 0x87c   :  { %21170 = vmatprep.subr.bf16.mxu0 %v28179_v40 }
 0x87f   :  { %21172 = vmatpush3.bf16.msra.mxu0 %v28298_v7 }
 0x880   :  { %21173 = vmatprep.subr.bf16.mxu0 %v28179_v40 }
 0x882   :  { %17287 = vmatmul.mubr.f32.vlgmr.msra.gmra.mrb[12].mxu0 %v25411_v19 }
 0x883   :  { %21175 = vmatpush3.bf16.msra.mxu0 %v24542_v23  ;;  %17321 = vmatprep.mubr.msk.f32.mxu0 %vm23712_vm0, %v28198_v52 }
 0x884   :  { %21176 = vmatprep.subr.bf16.mxu0 %v28179_v40 }
 0x887   :  { %21178 = vmatpush3.bf16.msra.mxu0 %v24642_v47 }
 0x888   :  { %21179 = vmatprep.subr.bf16.mxu0 %v28179_v40 }
 0x88b   :  { %21181 = vmatpush3.bf16.msra.mxu0 %v24654_v21 }
 0x88c   :  { %21182 = vmatprep.subr.bf16.mxu0 %v28179_v40 }
 0x88f   :  { %21184 = vmatpush3.bf16.msra.mxu0 %v24664_v5 }
 0x890   :  { %21185 = vmatprep.subr.bf16.mxu0 %v28179_v40 }
 0x893   :  { %21187 = vmatpush3.bf16.msra.mxu0 %v24674_v37 }
 0x894   :  { %21188 = vmatprep.subr.bf16.mxu0 %v28179_v40 }
 0x897   :  { %21190 = vmatpush3.bf16.msra.mxu0 %v24683_v20 }
 0x898   :  { %21191 = vmatprep.subr.bf16.mxu0 %v28179_v40 }
 0x89b   :  { %21193 = vmatpush3.bf16.msra.mxu0 %v24691_v24 }
 0x89c   :  { %21194 = vmatprep.subr.bf16.mxu0 %v28179_v40 }
 0x89f   :  { %21196 = vmatpush3.bf16.msra.mxu0 %v24699_v10 }
 0x8a0   :  { %21197 = vmatprep.subr.bf16.mxu0 %v28179_v40 }
 0x8a2   :  { %17322 = vmatmul.mubr.f32.vlgmr.msra.gmra.mrb[12].mxu0 %v25414_v33 }
 0x8a3   :  { %21199 = vmatpush3.bf16.msra.mxu0 %v28261_v44  ;;  %17356 = vmatprep.mubr.msk.f32.mxu0 %vm23712_vm0, %v28198_v52 }
 0x8a4   :  { %21200 = vmatprep.subr.bf16.mxu0 %v28179_v40 }
 0x8a7   :  { %21202 = vmatpush3.bf16.msra.mxu0 %v28265_v6 }
 0x8a8   :  { %21203 = vmatprep.subr.bf16.mxu0 %v28179_v40 }
 0x8ab   :  { %21205 = vmatpush3.bf16.msra.mxu0 %v28269_v31 }
 0x8ac   :  { %21206 = vmatprep.subr.bf16.mxu0 %v28179_v40 }
 0x8af   :  { %21208 = vmatpush3.bf16.msra.mxu0 %v28272_v32 }
 0x8b0   :  { %21209 = vmatprep.subr.bf16.mxu0 %v28179_v40 }
 0x8b3   :  { %21211 = vmatpush3.bf16.msra.mxu0 %v28275_v60 }
 0x8b4   :  { %21212 = vmatprep.subr.bf16.mxu0 %v28179_v40 }
 0x8b7   :  { %21214 = vmatpush3.bf16.msra.mxu0 %v28277_v48 }
 0x8b8   :  { %21215 = vmatprep.subr.bf16.mxu0 %v28179_v40 }
 0x8bb   :  { %21217 = vmatpush3.bf16.msra.mxu0 %v28279_v45 }
 0x8bc   :  { %21218 = vmatprep.subr.bf16.mxu0 %v28179_v40 }
 0x8bf   :  { %21220 = vmatpush3.bf16.msra.mxu0 %v28281_v22 }
 0x8c0   :  { %21221 = vmatprep.subr.bf16.mxu0 %v28179_v40 }
 0x8c2   :  { %17357 = vmatmul.mubr.f32.vlgmr.msra.gmra.mrb[12].mxu0 %v25417_v55 }
 0x8c3   :  { %21223 = vmatpush3.bf16.msra.mxu0 %v24556_v1  ;;  %17391 = vmatprep.mubr.msk.f32.mxu0 %vm23712_vm0, %v28198_v52 }
 0x8c4   :  { %21224 = vmatprep.subr.bf16.mxu0 %v28179_v40 }
 0x8c7   :  { %21226 = vmatpush3.bf16.msra.mxu0 %v24568_v38 }
 0x8c8   :  { %21227 = vmatprep.subr.bf16.mxu0 %v28179_v40 }
 0x8cb   :  { %21229 = vmatpush3.bf16.msra.mxu0 %v24581_v57 }
 0x8cc   :  { %21230 = vmatprep.subr.bf16.mxu0 %v28179_v40 }
 0x8cf   :  { %21232 = vmatpush3.bf16.msra.mxu0 %v24593_v56 }
 0x8d0   :  { %21233 = vmatprep.subr.bf16.mxu0 %v28179_v40 }
 0x8d3   :  { %21235 = vmatpush3.bf16.msra.mxu0 %v24606_v12 }
 0x8d4   :  { %21236 = vmatprep.subr.bf16.mxu0 %v28179_v40 }
 0x8d7   :  { %21238 = vmatpush3.bf16.msra.mxu0 %v24619_v62 }
 0x8d8   :  { %21239 = vmatprep.subr.bf16.mxu0 %v28179_v40 }
 0x8db   :  { %21241 = vmatpush3.bf16.msra.mxu0 %v24631_v34 }
 0x8dc   :  { %21242 = vmatprep.subr.bf16.mxu0 %v28179_v40 }
 0x8df   :  { %21244 = vmatpush3.bf16.msra.mxu0 %v24635_v54 }
 0x8e0   :  { %21245 = vmatprep.subr.bf16.mxu0 %v28179_v40 }
 0x8e2   :  { %17392 = vmatmul.mubr.f32.vlgmr.msra.gmra.mrb[12].mxu0 %v25411_v19 }
 0x8e3   :  { %21247 = vmatpush3.bf16.msra.mxu0 %v28261_v44  ;;  %17426 = vmatprep.mubr.msk.f32.mxu0 %vm23712_vm0, %v28198_v52 }
 0x8e4   :  { %21248 = vmatprep.subr.bf16.mxu0 %v28179_v40 }
 0x8e7   :  { %21250 = vmatpush3.bf16.msra.mxu0 %v28265_v6 }
 0x8e8   :  { %21251 = vmatprep.subr.bf16.mxu0 %v28179_v40 }
 0x8eb   :  { %21253 = vmatpush3.bf16.msra.mxu0 %v28269_v31 }
 0x8ec   :  { %21254 = vmatprep.subr.bf16.mxu0 %v28179_v40 }
 0x8ef   :  { %21256 = vmatpush3.bf16.msra.mxu0 %v28272_v32 }
 0x8f0   :  { %21257 = vmatprep.subr.bf16.mxu0 %v28179_v40 }
 0x8f3   :  { %21259 = vmatpush3.bf16.msra.mxu0 %v28275_v60 }
 0x8f4   :  { %21260 = vmatprep.subr.bf16.mxu0 %v28179_v40 }
 0x8f7   :  { %21262 = vmatpush3.bf16.msra.mxu0 %v28277_v48 }
 0x8f8   :  { %21263 = vmatprep.subr.bf16.mxu0 %v28179_v40 }
 0x8fb   :  { %21265 = vmatpush3.bf16.msra.mxu0 %v28279_v45 }
 0x8fc   :  { %21266 = vmatprep.subr.bf16.mxu0 %v28179_v40 }
 0x8ff   :  { %21268 = vmatpush3.bf16.msra.mxu0 %v28281_v22 }
 0x900   :  { %21413 = vmatprep.subr.bf16.mxu0 %v28179_v40 }
 0x902   :  { %17427 = vmatmul.mubr.f32.vlgmr.msra.gmra.mrb[12].mxu0 %v25411_v19  ;;  %v25693_v19 = vld [vmem:[#allocation10 + $0x48] sm:$0xff] }
 0x903   :  { %21415 = vmatpush3.bf16.msra.mxu0 %v28261_v44  ;;  %17671 = vmatprep.mubr.msk.f32.mxu0 %vm23712_vm0, %v28198_v52 }
 0x904   :  { %21416 = vmatprep.subr.bf16.mxu0 %v28179_v40 }
 0x907   :  { %21418 = vmatpush3.bf16.msra.mxu0 %v28265_v6 }
 0x908   :  { %21419 = vmatprep.subr.bf16.mxu0 %v28179_v40 }
 0x90b   :  { %21421 = vmatpush3.bf16.msra.mxu0 %v28269_v31 }
 0x90c   :  { %21422 = vmatprep.subr.bf16.mxu0 %v28179_v40 }
 0x90f   :  { %21424 = vmatpush3.bf16.msra.mxu0 %v28272_v32 }
 0x910   :  { %21425 = vmatprep.subr.bf16.mxu0 %v28179_v40 }
 0x913   :  { %21427 = vmatpush3.bf16.msra.mxu0 %v28275_v60 }
 0x914   :  { %21428 = vmatprep.subr.bf16.mxu0 %v28179_v40 }
 0x917   :  { %21430 = vmatpush3.bf16.msra.mxu0 %v28277_v48 }
 0x918   :  { %21431 = vmatprep.subr.bf16.mxu0 %v28179_v40 }
 0x91b   :  { %21433 = vmatpush3.bf16.msra.mxu0 %v28279_v45 }
 0x91c   :  { %21434 = vmatprep.subr.bf16.mxu0 %v28179_v40 }
 0x91f   :  { %21436 = vmatpush3.bf16.msra.mxu0 %v28281_v22 }
 0x920   :  { %21437 = vmatprep.subr.bf16.mxu0 %v28179_v40 }
 0x9d5   :  { %v4986_v59 = vpop.f32.mrb[12].mxu0 }
 0x9d6   :  { %v4990_v39 = vadd.f32 %v24895_v4, %v4986_v59  ;;  %v17428_v26 = vpop.f32.mrb[13].mxu0  ;;  %v25639_v4 = vld [vmem:[#allocation10] sm:$0xff] }
 0x9d7   :  { %v28038_v59 = vand.u32 4294901760, %v25639_v4  ;;  %v25647_v26 = vld [vmem:[#allocation10 + $0x10] sm:$0xff] }
 0x9d8   :  { %23490 = vtanh.f32 %v4990_v39  ;;  %v28042_v58 = vand.u32 4294901760, %v25647_v26 }
 0x9e2   :  { %v23491_v13 = vpop.eup %23490 }
 0x9e3   :  { %v25538_v8 = vand.u32 4294901760, %v23491_v13 }
 0x9e5   :  { %28311 = vst [vmem:[#allocation28_spill] sm:$0xff] %v25538_v8  ;;  %v25541_v18 = vsub.f32 %v23491_v13, %v25538_v8  ;;  %v25649_v13 = vld [vmem:[#allocation10 + $0x18] sm:$0xff] }
 0x9e6   :  { %v28041_v25 = vand.u32 4294901760, %v25649_v13 }
 0x9e7   :  { %28312 = vst [vmem:[#allocation52_spill] sm:$0xff] %v25541_v18  ;;  %v25544_v27 = vand.u32 4294901760, %v25541_v18 }
 0x9e8   :  { %v25671_v33 = vpack.c.bf16 %v28041_v25, %v28042_v58  ;;  %v28056_v58 = vand.u32 4294901760, %v25675_v35 }
 0x9e9   :  { %28313 = vst [vmem:[#allocation29_spill] sm:$0xff] %v25544_v27  ;;  %v5079_v55 = vsub.f32 %v25541_v18, %v25544_v27 }
 0x9ea   :  { %28315 = vst [vmem:[#allocation31_spill] sm:$0xff] %v25671_v33 }
 0x9eb   :  { %v25548_v28 = vand.u32 4294901760, %v5079_v55  ;;  %v25641_v55 = vld [vmem:[#allocation10 + $0x8] sm:$0xff] }
 0x9ec   :  { %v28037_v39 = vand.u32 4294901760, %v25641_v55 }
 0x9ed   :  { %17462 = vmatmul.mubr.f32.vlgmr.msra.gmra.mrb[6].mxu1 %v25548_v28 }
 0x9ee   :  { %21295 = vmatpush3.bf16.msra.mxu1 %v28292_v49  ;;  %17496 = vmatprep.mubr.msk.f32.mxu1 %vm23712_vm0, %v28198_v52 }
 0x9ef   :  { %21296 = vmatprep.subr.bf16.mxu1 %v28179_v40 }
 0x9f2   :  { %21298 = vmatpush3.bf16.msra.mxu1 %v28293_v2 }
 0x9f3   :  { %21299 = vmatprep.subr.bf16.mxu1 %v28179_v40 }
 0x9f6   :  { %21301 = vmatpush3.bf16.msra.mxu1 %v28294_v41 }
 0x9f7   :  { %21302 = vmatprep.subr.bf16.mxu1 %v28179_v40 }
 0x9fa   :  { %21304 = vmatpush3.bf16.msra.mxu1 %v28295_v9 }
 0x9fb   :  { %21305 = vmatprep.subr.bf16.mxu1 %v28179_v40 }
 0x9fe   :  { %21307 = vmatpush3.bf16.msra.mxu1 %v28296_v51 }
 0x9ff   :  { %21308 = vmatprep.subr.bf16.mxu1 %v28179_v40 }
 0xa02   :  { %21310 = vmatpush3.bf16.msra.mxu1 %v24464_v17 }
 0xa03   :  { %21311 = vmatprep.subr.bf16.mxu1 %v28179_v40 }
 0xa06   :  { %21313 = vmatpush3.bf16.msra.mxu1 %v28297_v29 }
 0xa07   :  { %21314 = vmatprep.subr.bf16.mxu1 %v28179_v40 }
 0xa0a   :  { %21316 = vmatpush3.bf16.msra.mxu1 %v28298_v7 }
 0xa0b   :  { %21317 = vmatprep.subr.bf16.mxu1 %v28179_v40 }
 0xa0d   :  { %17497 = vmatmul.mubr.f32.vlgmr.msra.gmra.mrb[6].mxu1 %v25538_v8 }
 0xa0e   :  { %21319 = vmatpush3.bf16.msra.mxu1 %v24542_v23  ;;  %17531 = vmatprep.mubr.msk.f32.mxu1 %vm23712_vm0, %v28198_v52 }
 0xa0f   :  { %21320 = vmatprep.subr.bf16.mxu1 %v28179_v40 }
 0xa12   :  { %21322 = vmatpush3.bf16.msra.mxu1 %v24642_v47 }
 0xa13   :  { %21323 = vmatprep.subr.bf16.mxu1 %v28179_v40 }
 0xa16   :  { %21325 = vmatpush3.bf16.msra.mxu1 %v24654_v21 }
 0xa17   :  { %21326 = vmatprep.subr.bf16.mxu1 %v28179_v40 }
 0xa1a   :  { %21328 = vmatpush3.bf16.msra.mxu1 %v24664_v5 }
 0xa1b   :  { %21329 = vmatprep.subr.bf16.mxu1 %v28179_v40 }
 0xa1e   :  { %21331 = vmatpush3.bf16.msra.mxu1 %v24674_v37 }
 0xa1f   :  { %21332 = vmatprep.subr.bf16.mxu1 %v28179_v40 }
 0xa22   :  { %21334 = vmatpush3.bf16.msra.mxu1 %v24683_v20 }
 0xa23   :  { %21335 = vmatprep.subr.bf16.mxu1 %v28179_v40 }
 0xa26   :  { %21337 = vmatpush3.bf16.msra.mxu1 %v24691_v24 }
 0xa27   :  { %21338 = vmatprep.subr.bf16.mxu1 %v28179_v40 }
 0xa2a   :  { %21340 = vmatpush3.bf16.msra.mxu1 %v24699_v10 }
 0xa2b   :  { %21341 = vmatprep.subr.bf16.mxu1 %v28179_v40 }
 0xa2d   :  { %17532 = vmatmul.mubr.f32.vlgmr.msra.gmra.mrb[6].mxu1 %v25541_v18  ;;  %v25663_v18 = vld [vmem:[#allocation10 + $0x28] sm:$0xff] }
 0xa2e   :  { %21343 = vmatpush3.bf16.msra.mxu1 %v28261_v44  ;;  %17566 = vmatprep.mubr.msk.f32.mxu1 %vm23712_vm0, %v28198_v52 }
 0xa2f   :  { %21344 = vmatprep.subr.bf16.mxu1 %v28179_v40 }
 0xa32   :  { %21346 = vmatpush3.bf16.msra.mxu1 %v28265_v6 }
 0xa33   :  { %21347 = vmatprep.subr.bf16.mxu1 %v28179_v40 }
 0xa36   :  { %21349 = vmatpush3.bf16.msra.mxu1 %v28269_v31 }
 0xa37   :  { %21350 = vmatprep.subr.bf16.mxu1 %v28179_v40 }
 0xa3a   :  { %21352 = vmatpush3.bf16.msra.mxu1 %v28272_v32 }
 0xa3b   :  { %21353 = vmatprep.subr.bf16.mxu1 %v28179_v40 }
 0xa3e   :  { %21355 = vmatpush3.bf16.msra.mxu1 %v28275_v60 }
 0xa3f   :  { %21356 = vmatprep.subr.bf16.mxu1 %v28179_v40 }
 0xa42   :  { %21358 = vmatpush3.bf16.msra.mxu1 %v28277_v48 }
 0xa43   :  { %21359 = vmatprep.subr.bf16.mxu1 %v28179_v40 }
 0xa46   :  { %21361 = vmatpush3.bf16.msra.mxu1 %v28279_v45 }
 0xa47   :  { %21362 = vmatprep.subr.bf16.mxu1 %v28179_v40 }
 0xa4a   :  { %21364 = vmatpush3.bf16.msra.mxu1 %v28281_v22 }
 0xa4b   :  { %21365 = vmatprep.subr.bf16.mxu1 %v28179_v40 }
 0xa4d   :  { %17567 = vmatmul.mubr.f32.vlgmr.msra.gmra.mrb[6].mxu1 %v25544_v27  ;;  %v25657_v27 = vpack.c.bf16 %v28037_v39, %v28038_v59  ;;  %v28048_v39 = vand.u32 4294901760, %v25661_v30  ;;  %v28047_v59 = vand.u32 4294901760, %v25663_v18 }
 0xa4e   :  { %21367 = vmatpush3.bf16.msra.mxu1 %v24556_v1  ;;  %17601 = vmatprep.mubr.msk.f32.mxu1 %vm23712_vm0, %v28198_v52 }
 0xa4f   :  { %21368 = vmatprep.subr.bf16.mxu1 %v28179_v40  ;;  %28314 = vst [vmem:[#allocation30_spill] sm:$0xff] %v25657_v27  ;;  %v25687_v25 = vpack.c.bf16 %v28047_v59, %v28048_v39  ;;  %v28064_v59 = vand.u32 4294901760, %v25691_v42  ;;  %v28063_v39 = vand.u32 4294901760, %v25693_v19 }
 0xa51   :  { %28316 = vst [vmem:[#allocation32_spill] sm:$0xff] %v25687_v25 }
 0xa52   :  { %21370 = vmatpush3.bf16.msra.mxu1 %v24568_v38 }
 0xa53   :  { %21371 = vmatprep.subr.bf16.mxu1 %v28179_v40 }
 0xa56   :  { %21373 = vmatpush3.bf16.msra.mxu1 %v24581_v57 }
 0xa57   :  { %21374 = vmatprep.subr.bf16.mxu1 %v28179_v40 }
 0xa5a   :  { %21376 = vmatpush3.bf16.msra.mxu1 %v24593_v56 }
 0xa5b   :  { %21377 = vmatprep.subr.bf16.mxu1 %v28179_v40 }
 0xa5e   :  { %21379 = vmatpush3.bf16.msra.mxu1 %v24606_v12 }
 0xa5f   :  { %21380 = vmatprep.subr.bf16.mxu1 %v28179_v40 }
 0xa62   :  { %21382 = vmatpush3.bf16.msra.mxu1 %v24619_v62 }
 0xa63   :  { %21383 = vmatprep.subr.bf16.mxu1 %v28179_v40 }
 0xa66   :  { %21385 = vmatpush3.bf16.msra.mxu1 %v24631_v34 }
 0xa67   :  { %21386 = vmatprep.subr.bf16.mxu1 %v28179_v40 }
 0xa6a   :  { %21388 = vmatpush3.bf16.msra.mxu1 %v24635_v54 }
 0xa6b   :  { %21389 = vmatprep.subr.bf16.mxu1 %v28179_v40 }
 0xa6d   :  { %17602 = vmatmul.mubr.f32.vlgmr.msra.gmra.mrb[6].mxu1 %v25538_v8 }
 0xa6e   :  { %21391 = vmatpush3.bf16.msra.mxu1 %v28261_v44  ;;  %17636 = vmatprep.mubr.msk.f32.mxu1 %vm23712_vm0, %v28198_v52 }
 0xa6f   :  { %21392 = vmatprep.subr.bf16.mxu1 %v28179_v40 }
 0xa72   :  { %21394 = vmatpush3.bf16.msra.mxu1 %v28265_v6 }
 0xa73   :  { %21395 = vmatprep.subr.bf16.mxu1 %v28179_v40 }
 0xa76   :  { %21397 = vmatpush3.bf16.msra.mxu1 %v28269_v31 }
 0xa77   :  { %21398 = vmatprep.subr.bf16.mxu1 %v28179_v40 }
 0xa7a   :  { %21400 = vmatpush3.bf16.msra.mxu1 %v28272_v32 }
 0xa7b   :  { %21401 = vmatprep.subr.bf16.mxu1 %v28179_v40 }
 0xa7e   :  { %21403 = vmatpush3.bf16.msra.mxu1 %v28275_v60 }
 0xa7f   :  { %21404 = vmatprep.subr.bf16.mxu1 %v28179_v40 }
 0xa82   :  { %21406 = vmatpush3.bf16.msra.mxu1 %v28277_v48 }
 0xa83   :  { %21407 = vmatprep.subr.bf16.mxu1 %v28179_v40 }
 0xa86   :  { %21409 = vmatpush3.bf16.msra.mxu1 %v28279_v45 }
 0xa87   :  { %21410 = vmatprep.subr.bf16.mxu1 %v28179_v40 }
 0xa8a   :  { %21412 = vmatpush3.bf16.msra.mxu1 %v28281_v22 }
 0xa8b   :  { %21558 = vmatprep.subr.bf16.mxu1 %v25657_v27 }
 0xa8d   :  { %17637 = vmatmul.mubr.f32.vlgmr.msra.gmra.mrb[6].mxu1 %v25538_v8  ;;  %v25707_v8 = vld [vmem:[#allocation10 + $0x58] sm:$0xff] }
 0xa8e   :  { %21560 = vmatpush3.bf16.msra.mxu1 %v25657_v27  ;;  %17881 = vmatprep.mubr.f32.mxu1 %v24913_v11  ;;  %v25701_v11 = vpack.c.bf16 %v28055_v3, %v28056_v58  ;;  %v25705_v27 = vld [vmem:[#allocation10 + $0x50] sm:$0xff]  ;;  %v28071_v58 = vand.u32 4294901760, %v25707_v8 }
 0xa8f   :  { %21562 = vmatprep.subr.bf16.mxu1 %v25671_v33  ;;  %v28072_v3 = vand.u32 4294901760, %v25705_v27 }
 0xa90   :  { %28317 = vst [vmem:[#allocation33_spill] sm:$0xff] %v25701_v11 }
 0xa92   :  { %21564 = vmatpush3.bf16.msra.mxu1 %v25671_v33  ;;  %v25715_v33 = vpack.c.bf16 %v28063_v39, %v28064_v59  ;;  %v28078_v39 = vand.u32 4294901760, %v25719_v15  ;;  %v28075_v59 = vand.u32 4294901760, %v25721_v50 }
 0xa93   :  { %21566 = vmatprep.subr.bf16.mxu1 %v25687_v25 }
 0xa94   :  { %28318 = vst [vmem:[#allocation34_spill] sm:$0xff] %v25715_v33 }
 0xa96   :  { %21568 = vmatpush3.bf16.msra.mxu1 %v25687_v25  ;;  %v25729_v25 = vpack.c.bf16 %v28071_v58, %v28072_v3  ;;  %v28077_v58 = vand.u32 4294901760, %v25733_v53  ;;  %v28076_v3 = vand.u32 4294901760, %v25735_v63 }
 0xa97   :  { %21570 = vmatprep.subr.bf16.mxu1 %v25701_v11 }
 0xa98   :  { %28319 = vst [vmem:[#allocation35_spill] sm:$0xff] %v25729_v25 }
 0xa9a   :  { %21572 = vmatpush3.bf16.msra.mxu1 %v25701_v11  ;;  %v25743_v11 = vpack.c.bf16 %v28075_v59, %v28078_v39 }
 0xa9b   :  { %21574 = vmatprep.subr.bf16.mxu1 %v25715_v33 }
 0xa9c   :  { %28320 = vst [vmem:[#allocation36_spill] sm:$0xff] %v25743_v11 }
 0xa9e   :  { %21576 = vmatpush3.bf16.msra.mxu1 %v25715_v33  ;;  %v25753_v33 = vpack.c.bf16 %v28076_v3, %v28077_v58 }
 0xa9f   :  { %21578 = vmatprep.subr.bf16.mxu1 %v25729_v25 }
 0xaa0   :  { %28321 = vst [vmem:[#allocation39_spill] sm:$0xff] %v25753_v33 }
 0xaa2   :  { %21580 = vmatpush3.bf16.msra.mxu1 %v25729_v25 }
 0xaa3   :  { %21582 = vmatprep.subr.bf16.mxu1 %v25743_v11 }
 0xaa6   :  { %21584 = vmatpush3.bf16.msra.mxu1 %v25743_v11 }
 0xaa7   :  { %21586 = vmatprep.subr.bf16.mxu1 %v25753_v33 }
 0xaaa   :  { %21588 = vmatpush3.bf16.msra.mxu1 %v25753_v33 }
 0xaad   :  { %17882 = vmatmul.mubr.f32.vlgmr.msra.gmra.mrb[8].mxu1 %v25040_v36 }
 0xaae   :  { %17884 = vmatprep.mubr.f32.mxu1 %v25167_v46 }
 0xab1   :  { %17885 = vmatmul.mubr.f32.gmra.mrb[10].mxu1 %v25294_v14 }
 0xab2   :  { %17887 = vmatprep.mubr.f32.mxu1 %v25421_v61 }
 0xab5   :  { %17888 = vmatmul.mubr.f32.gmra.mrb[12].mxu1 %v25548_v28 }
 0xb60   :  { %v5632_v59 = vpop.f32.mrb[6].mxu1 }
 0xb61   :  { %v5636_v3 = vadd.f32 %v24901_v16, %v5632_v59  ;;  %v17638_v58 = vpop.f32.mrb[7].mxu1  ;;  %v6312_v16 = vld [vmem:[#allocation12 + $0x58] sm:$0xff] }
 0xb63   :  { %23492 = vtanh.f32 %v5636_v3 }
 0xb6d   :  { %v23493_v39 = vpop.eup %23492 }
 0xb6e   :  { %v25764_v11 = vand.u32 4294901760, %v23493_v39 }
 0xb70   :  { %v25767_v33 = vsub.f32 %v23493_v39, %v25764_v11  ;;  %v25904_v39 = vld [vmem:[#allocation12 + $0x70] sm:$0xff] }
 0xb72   :  { %v25770_v36 = vand.u32 4294901760, %v25767_v33 }
 0xb74   :  { %28322 = vst [vmem:[#allocation40_spill] sm:$0xff] %v25770_v36  ;;  %v5725_v46 = vsub.f32 %v25767_v33, %v25770_v36 }
 0xb76   :  { %v5726_v14 = vand.u32 4294901760, %v5725_v46  ;;  %v25906_v46 = vld [vmem:[#allocation12 + $0x78] sm:$0xff] }
 0xb78   :  { %17672 = vmatmul.mubr.f32.vlgmr.msra.gmra.mrb[14].mxu0 %v5726_v14  ;;  %17890 = vmatprep.mubr.f32.mxu1 %v5726_v14 }
 0xb79   :  { %21439 = vmatpush3.bf16.msra.mxu0 %v28292_v49  ;;  %17706 = vmatprep.mubr.msk.f32.mxu0 %vm23712_vm0, %v28198_v52  ;;  %v25885_v49 = vld [vmem:[#allocation12 + $0x60] sm:$0xff] }
 0xb7a   :  { %21440 = vmatprep.subr.bf16.mxu0 %v28179_v40  ;;  %v28084_v3 = vand.u32 4294901760, %v25885_v49 }
 0xb7d   :  { %21442 = vmatpush3.bf16.msra.mxu0 %v28293_v2  ;;  %v25887_v2 = vld [vmem:[#allocation12 + $0x68] sm:$0xff] }
 0xb7e   :  { %21443 = vmatprep.subr.bf16.mxu0 %v28179_v40  ;;  %v28083_v58 = vand.u32 4294901760, %v25887_v2 }
 0xb81   :  { %21445 = vmatpush3.bf16.msra.mxu0 %v28294_v41 }
 0xb82   :  { %21446 = vmatprep.subr.bf16.mxu0 %v28179_v40 }
 0xb85   :  { %21448 = vmatpush3.bf16.msra.mxu0 %v28295_v9 }
 0xb86   :  { %21449 = vmatprep.subr.bf16.mxu0 %v28179_v40 }
 0xb89   :  { %21451 = vmatpush3.bf16.msra.mxu0 %v28296_v51 }
 0xb8a   :  { %21452 = vmatprep.subr.bf16.mxu0 %v28179_v40 }
 0xb8d   :  { %21454 = vmatpush3.bf16.msra.mxu0 %v24464_v17  ;;  %v6301_v17 = vld [vmem:[#allocation12] sm:$0xff] }
 0xb8e   :  { %21455 = vmatprep.subr.bf16.mxu0 %v28179_v40 }
 0xb91   :  { %21457 = vmatpush3.bf16.msra.mxu0 %v28297_v29 }
 0xb92   :  { %21458 = vmatprep.subr.bf16.mxu0 %v28179_v40 }
 0xb95   :  { %21460 = vmatpush3.bf16.msra.mxu0 %v28298_v7  ;;  %v7317_v7 = vand.u32 4294901760, %v6312_v16 }
 0xb96   :  { %21461 = vmatprep.subr.bf16.mxu0 %v28179_v40 }
 0xb98   :  { %17707 = vmatmul.mubr.f32.vlgmr.msra.gmra.mrb[14].mxu0 %v25764_v11 }
 0xb99   :  { %21463 = vmatpush3.bf16.msra.mxu0 %v24542_v23  ;;  %17741 = vmatprep.mubr.msk.f32.mxu0 %vm23712_vm0, %v28198_v52  ;;  %v7284_v23 = vand.u32 4294901760, %v6301_v17 }
 0xb9a   :  { %21464 = vmatprep.subr.bf16.mxu0 %v28179_v40 }
 0xb9b   :  { %v25889_v41 = vsub.f32 %v6301_v17, %v7284_v23 }
 0xb9d   :  { %21466 = vmatpush3.bf16.msra.mxu0 %v24642_v47  ;;  %v6306_v47 = vld [vmem:[#allocation12 + $0x28] sm:$0xff]  ;;  %v28085_v28 = vand.u32 4294901760, %v25889_v41 }
 0xb9e   :  { %21467 = vmatprep.subr.bf16.mxu0 %v28179_v40 }
 0xb9f   :  { %v7373_v61 = vsub.f32 %v25889_v41, %v28085_v28  ;;  %v28324_v28 = vand.u32 4294901760, %v25904_v39 }
 0xba1   :  { %21469 = vmatpush3.bf16.msra.mxu0 %v24654_v21  ;;  %v7374_v25 = vand.u32 4294901760, %v7373_v61 }
 0xba2   :  { %21470 = vmatprep.subr.bf16.mxu0 %v28179_v40 }
 0xba5   :  { %21472 = vmatpush3.bf16.msra.mxu0 %v24664_v5 }
 0xba6   :  { %21473 = vmatprep.subr.bf16.mxu0 %v28179_v40 }
 0xba9   :  { %21475 = vmatpush3.bf16.msra.mxu0 %v24674_v37  ;;  %v7299_v37 = vand.u32 4294901760, %v6306_v47 }
 0xbaa   :  { %21476 = vmatprep.subr.bf16.mxu0 %v28179_v40 }
 0xbad   :  { %21478 = vmatpush3.bf16.msra.mxu0 %v24683_v20  ;;  %v6307_v20 = vld [vmem:[#allocation12 + $0x30] sm:$0xff] }
 0xbae   :  { %21479 = vmatprep.subr.bf16.mxu0 %v28179_v40 }
 0xbb1   :  { %21481 = vmatpush3.bf16.msra.mxu0 %v24691_v24  ;;  %v6308_v24 = vld [vmem:[#allocation12 + $0x38] sm:$0xff] }
 0xbb2   :  { %21482 = vmatprep.subr.bf16.mxu0 %v28179_v40 }
 0xbb5   :  { %21484 = vmatpush3.bf16.msra.mxu0 %v24699_v10 }
 0xbb6   :  { %21485 = vmatprep.subr.bf16.mxu0 %v28179_v40 }
 0xbb8   :  { %17742 = vmatmul.mubr.f32.vlgmr.msra.gmra.mrb[14].mxu0 %v25767_v33 }
 0xbb9   :  { %21487 = vmatpush3.bf16.msra.mxu0 %v28261_v44  ;;  %17776 = vmatprep.mubr.msk.f32.mxu0 %vm23712_vm0, %v28198_v52 }
 0xbba   :  { %21488 = vmatprep.subr.bf16.mxu0 %v28179_v40 }
 0xbbd   :  { %21490 = vmatpush3.bf16.msra.mxu0 %v28265_v6 }
 0xbbe   :  { %21491 = vmatprep.subr.bf16.mxu0 %v28179_v40 }
 0xbc1   :  { %21493 = vmatpush3.bf16.msra.mxu0 %v28269_v31 }
 0xbc2   :  { %21494 = vmatprep.subr.bf16.mxu0 %v28179_v40 }
 0xbc5   :  { %21496 = vmatpush3.bf16.msra.mxu0 %v28272_v32 }
 0xbc6   :  { %21497 = vmatprep.subr.bf16.mxu0 %v28179_v40 }
 0xbc9   :  { %21499 = vmatpush3.bf16.msra.mxu0 %v28275_v60 }
 0xbca   :  { %21500 = vmatprep.subr.bf16.mxu0 %v28179_v40 }
 0xbcd   :  { %21502 = vmatpush3.bf16.msra.mxu0 %v28277_v48 }
 0xbce   :  { %21503 = vmatprep.subr.bf16.mxu0 %v28179_v40 }
 0xbd1   :  { %21505 = vmatpush3.bf16.msra.mxu0 %v28279_v45 }
 0xbd2   :  { %21506 = vmatprep.subr.bf16.mxu0 %v28179_v40 }
 0xbd5   :  { %21508 = vmatpush3.bf16.msra.mxu0 %v28281_v22 }
 0xbd6   :  { %21509 = vmatprep.subr.bf16.mxu0 %v28179_v40 }
 0xbd8   :  { %17777 = vmatmul.mubr.f32.vlgmr.msra.gmra.mrb[14].mxu0 %v25770_v36 }
 0xbd9   :  { %21511 = vmatpush3.bf16.msra.mxu0 %v24556_v1  ;;  %17811 = vmatprep.mubr.msk.f32.mxu0 %vm23712_vm0, %v28198_v52 }
 0xbda   :  { %21512 = vmatprep.subr.bf16.mxu0 %v28179_v40 }
 0xbdd   :  { %21514 = vmatpush3.bf16.msra.mxu0 %v24568_v38  ;;  %v6303_v38 = vld [vmem:[#allocation12 + $0x10] sm:$0xff] }
 0xbde   :  { %21515 = vmatprep.subr.bf16.mxu0 %v28179_v40 }
 0xbe1   :  { %21517 = vmatpush3.bf16.msra.mxu0 %v24581_v57  ;;  %v6304_v57 = vld [vmem:[#allocation12 + $0x18] sm:$0xff] }
 0xbe2   :  { %21518 = vmatprep.subr.bf16.mxu0 %v28179_v40 }
 0xbe5   :  { %21520 = vmatpush3.bf16.msra.mxu0 %v24593_v56 }
 0xbe6   :  { %21521 = vmatprep.subr.bf16.mxu0 %v28179_v40 }
 0xbe9   :  { %21523 = vmatpush3.bf16.msra.mxu0 %v24606_v12  ;;  %v7290_v12 = vand.u32 4294901760, %v6303_v38 }
 0xbea   :  { %21524 = vmatprep.subr.bf16.mxu0 %v28179_v40 }
 0xbeb   :  { %v25908_v14 = vsub.f32 %v6303_v38, %v7290_v12 }
 0xbed   :  { %21526 = vmatpush3.bf16.msra.mxu0 %v24619_v62  ;;  %v7293_v62 = vand.u32 4294901760, %v6304_v57 }
 0xbee   :  { %21527 = vmatprep.subr.bf16.mxu0 %v28179_v40 }
 0xbef   :  { %v25872_v21 = vpack.c.bf16 %v7293_v62, %v7290_v12  ;;  %v25910_v17 = vsub.f32 %v6304_v57, %v7293_v62 }
 0xbf1   :  { %21529 = vmatpush3.bf16.msra.mxu0 %v24631_v34  ;;  %v6305_v34 = vld [vmem:[#allocation12 + $0x20] sm:$0xff]  ;;  %v28089_v62 = vand.u32 4294901760, %v25910_v17 }
 0xbf2   :  { %21530 = vmatprep.subr.bf16.mxu0 %v28179_v40  ;;  %v7296_v5 = vand.u32 4294901760, %v6305_v34 }
 0xbf4   :  { %v25878_v10 = vpack.c.bf16 %v7299_v37, %v7296_v5 }
 0xbf5   :  { %21532 = vmatpush3.bf16.msra.mxu0 %v24635_v54  ;;  %v6302_v54 = vld [vmem:[#allocation12 + $0x8] sm:$0xff] }
 0xbf6   :  { %21533 = vmatprep.subr.bf16.mxu0 %v28179_v40  ;;  %v7287_v1 = vand.u32 4294901760, %v6302_v54 }
 0xbf8   :  { %17812 = vmatmul.mubr.f32.vlgmr.msra.gmra.mrb[14].mxu0 %v25764_v11  ;;  %v25867_v56 = vpack.c.bf16 %v7287_v1, %v7284_v23  ;;  %v25891_v9 = vsub.f32 %v6302_v54, %v7287_v1  ;;  %v25917_v54 = vpack.c.bf16 %v28083_v58, %v28084_v3  ;;  %v25930_v58 = vsub.f32 %v6305_v34, %v7296_v5 }
 0xbf9   :  { %21535 = vmatpush3.bf16.msra.mxu0 %v28261_v44  ;;  %17846 = vmatprep.mubr.msk.f32.mxu0 %vm23712_vm0, %v28198_v52  ;;  %v7302_v44 = vand.u32 4294901760, %v6307_v20  ;;  %v25932_v3 = vsub.f32 %v6306_v47, %v7299_v37  ;;  %v28326_v34 = vand.u32 4294901760, %v25908_v14  ;;  %v7394_v5 = vsub.f32 %v25910_v17, %v28089_v62 }
 0xbfa   :  { %21536 = vmatprep.subr.bf16.mxu0 %v28179_v40  ;;  %v28323_v38 = vand.u32 4294901760, %v25891_v9  ;;  %v28101_v37 = vand.u32 4294901760, %v25930_v58 }
 0xbfb   :  { %v25935_v1 = vsub.f32 %v6307_v20, %v7302_v44  ;;  %v7387_v47 = vsub.f32 %v25908_v14, %v28326_v34  ;;  %v28092_v20 = vand.u32 4294901760, %v25932_v3 }
 0xbfc   :  { %v7380_v57 = vsub.f32 %v25891_v9, %v28323_v38  ;;  %v28325_v38 = vand.u32 4294901760, %v25906_v46  ;;  %v7401_v34 = vsub.f32 %v25930_v58, %v28101_v37 }
 0xbfd   :  { %21538 = vmatpush3.bf16.msra.mxu0 %v28265_v6  ;;  %v7305_v6 = vand.u32 4294901760, %v6308_v24  ;;  %v7408_v62 = vsub.f32 %v25932_v3, %v28092_v20 }
 0xbfe   :  { %21539 = vmatprep.subr.bf16.mxu0 %v28179_v40  ;;  %v25943_v36 = vpack.c.bf16 %v28325_v38, %v28324_v28  ;;  %v7381_v12 = vand.u32 4294901760, %v7380_v57  ;;  %v7388_v57 = vand.u32 4294901760, %v7387_v47  ;;  %v7395_v38 = vand.u32 4294901760, %v7394_v5 }
 0xbff   :  { %v25937_v23 = vsub.f32 %v6308_v24, %v7305_v6  ;;  %v28090_v24 = vand.u32 4294901760, %v25935_v1  ;;  %v7402_v5 = vand.u32 4294901760, %v7401_v34  ;;  %v28328_v34 = vand.u32 4294901760, %v25887_v2 }
 0xc00   :  { %v25985_v47 = vpack.c.bf16 %v7395_v38, %v7388_v57  ;;  %v28327_v57 = vand.u32 4294901760, %v25885_v49 }
 0xc01   :  { %21541 = vmatpush3.bf16.msra.mxu0 %v28269_v31  ;;  %v6309_v31 = vld [vmem:[#allocation12 + $0x40] sm:$0xff] }
 0xc02   :  { %21542 = vmatprep.subr.bf16.mxu0 %v28179_v40  ;;  %v26004_v38 = vsub.f32 %v25885_v49, %v28327_v57  ;;  %v28329_v57 = vand.u32 4294901760, %v25904_v39 }
 0xc05   :  { %21544 = vmatpush3.bf16.msra.mxu0 %v28272_v32  ;;  %v6310_v32 = vld [vmem:[#allocation12 + $0x48] sm:$0xff] }
 0xc06   :  { %21545 = vmatprep.subr.bf16.mxu0 %v28179_v40 }
 0xc09   :  { %21547 = vmatpush3.bf16.msra.mxu0 %v28275_v60  ;;  %v25882_v60 = vpack.c.bf16 %v7305_v6, %v7302_v44  ;;  %v28091_v44 = vand.u32 4294901760, %v25937_v23  ;;  %v25957_v6 = vpack.c.bf16 %v7381_v12, %v7374_v25  ;;  %v7415_v25 = vsub.f32 %v25935_v1, %v28090_v24 }
 0xc0a   :  { %21548 = vmatprep.subr.bf16.mxu0 %v28179_v40  ;;  %v25982_v12 = vsub.f32 %v6312_v16, %v7317_v7  ;;  %v7409_v24 = vand.u32 4294901760, %v7408_v62 }
 0xc0c   :  { %v25999_v62 = vpack.c.bf16 %v7409_v24, %v7402_v5  ;;  %v28100_v5 = vand.u32 4294901760, %v26004_v38 }
 0xc0d   :  { %21550 = vmatpush3.bf16.msra.mxu0 %v28277_v48  ;;  %v7308_v48 = vand.u32 4294901760, %v6309_v31 }
 0xc0e   :  { %21551 = vmatprep.subr.bf16.mxu0 %v28179_v40 }
 0xc0f   :  { %v25959_v28 = vsub.f32 %v6309_v31, %v7308_v48  ;;  %v7422_v31 = vsub.f32 %v25937_v23, %v28091_v44  ;;  %v7416_v44 = vand.u32 4294901760, %v7415_v25  ;;  %v26009_v25 = vsub.f32 %v25887_v2, %v28328_v34 }
 0xc11   :  { %21553 = vmatpush3.bf16.msra.mxu0 %v28279_v45  ;;  %v7311_v45 = vand.u32 4294901760, %v6310_v32  ;;  %v7423_v20 = vand.u32 4294901760, %v7422_v31  ;;  %v28097_v2 = vand.u32 4294901760, %v26009_v25 }
 0xc12   :  { %21554 = vmatprep.subr.bf16.mxu0 %v28179_v40 }
 0xc13   :  { %v25894_v51 = vpack.c.bf16 %v7311_v45, %v7308_v48  ;;  %v25961_v61 = vsub.f32 %v6310_v32, %v7311_v45  ;;  %v28094_v32 = vand.u32 4294901760, %v25959_v28  ;;  %v26012_v31 = vpack.c.bf16 %v7423_v20, %v7416_v44 }
 0xc14   :  { %v26026_v20 = vsub.f32 %v25904_v39, %v28329_v57  ;;  %v28330_v44 = vand.u32 4294901760, %v25906_v46  ;;  %v7464_v39 = vsub.f32 %v26009_v25, %v28097_v2 }
 0xc15   :  { %21556 = vmatpush3.bf16.msra.mxu0 %v28281_v22  ;;  %v6311_v22 = vld [vmem:[#allocation12 + $0x50] sm:$0xff]  ;;  %v28093_v48 = vand.u32 4294901760, %v25961_v61 }
 0xc16   :  { %21749 = vmatprep.subr.bf16.mxu0 %v28179_v40  ;;  %v7314_v29 = vand.u32 4294901760, %v6311_v22  ;;  %v28099_v57 = vand.u32 4294901760, %v26026_v20 }
 0xc17   :  { %v7436_v16 = vsub.f32 %v25961_v61, %v28093_v48 }
 0xc18   :  { %17847 = vmatmul.mubr.f32.vlgmr.msra.gmra.mrb[14].mxu0 %v25764_v11  ;;  %v25902_v59 = vpack.c.bf16 %v7317_v7, %v7314_v29  ;;  %v25980_v45 = vsub.f32 %v6311_v22, %v7314_v29  ;;  %v7429_v22 = vsub.f32 %v25959_v28, %v28094_v32  ;;  %v28095_v7 = vand.u32 4294901760, %v25982_v12 }
 0xc19   :  { %21751 = vmatpush3.bf16.msra.mxu0 %v25867_v56  ;;  %18145 = vmatprep.mubr.msk.f32.mxu0 %vm23712_vm0, %v28198_v52  ;;  %v7437_v32 = vand.u32 4294901760, %v7436_v16 }
 0xc1a   :  { %21752 = vmatprep.subr.bf16.mxu0 %v28179_v40  ;;  %v28096_v29 = vand.u32 4294901760, %v25980_v45  ;;  %v7430_v48 = vand.u32 4294901760, %v7429_v22  ;;  %v7450_v49 = vsub.f32 %v25982_v12, %v28095_v7  ;;  %v26031_v22 = vsub.f32 %v25906_v46, %v28330_v44 }
 0xc1c   :  { %v7443_v24 = vsub.f32 %v25980_v45, %v28096_v29  ;;  %v26034_v16 = vpack.c.bf16 %v7437_v32, %v7430_v48  ;;  %v7451_v7 = vand.u32 4294901760, %v7450_v49  ;;  %v7457_v29 = vsub.f32 %v26004_v38, %v28100_v5 }
 0xc1d   :  { %21754 = vmatpush3.bf16.msra.mxu0 %v25872_v21  ;;  %v28098_v46 = vand.u32 4294901760, %v26031_v22  ;;  %v7471_v49 = vsub.f32 %v26026_v20, %v28099_v57  ;;  %v28335_v57 = vand.u32 4294901760, %v25641_v55  ;;  %v28338_v5 = vand.u32 4294901760, %v25649_v13 }
 0xc1e   :  { %21755 = vmatprep.subr.bf16.mxu0 %v28179_v40  ;;  %v7444_v34 = vand.u32 4294901760, %v7443_v24  ;;  %v7458_v48 = vand.u32 4294901760, %v7457_v29  ;;  %v7465_v24 = vand.u32 4294901760, %v7464_v39  ;;  %v28334_v39 = vand.u32 4294901760, %v25639_v4 }
 0xc1f   :  { %v7478_v44 = vsub.f32 %v26031_v22, %v28098_v46  ;;  %v26097_v37 = vsub.f32 %v25649_v13, %v28338_v5 }
 0xc20   :  { %v26046_v32 = vpack.c.bf16 %v7451_v7, %v7444_v34  ;;  %v26057_v2 = vpack.c.bf16 %v7465_v24, %v7458_v48  ;;  %v7472_v7 = vand.u32 4294901760, %v7471_v49  ;;  %v26067_v46 = vsub.f32 %v25639_v4, %v28334_v39 }
 0xc21   :  { %21757 = vmatpush3.bf16.msra.mxu0 %v25878_v10  ;;  %v7479_v34 = vand.u32 4294901760, %v7478_v44  ;;  %v26072_v48 = vsub.f32 %v25641_v55, %v28335_v57  ;;  %v26079_v44 = vpack.c.bf16 %v25891_v9, %v25889_v41 }
 0xc22   :  { %21758 = vmatprep.subr.bf16.mxu0 %v28179_v40  ;;  %28331 = vst [vmem:[#allocation41_spill] sm:$0xff] %v26046_v32  ;;  %28332 = vst [vmem:[#allocation42_spill] sm:$0xff] %v26057_v2  ;;  %v28102_v24 = vand.u32 4294901760, %v26067_v46 }
 0xc23   :  { %v26061_v29 = vpack.c.bf16 %v7479_v34, %v7472_v7  ;;  %v28103_v49 = vand.u32 4294901760, %v26072_v48  ;;  %28336 = vst [vmem:[#allocation47_spill] sm:$0xff] %v26079_v44  ;;  %v28337_v34 = vand.u32 4294901760, %v25647_v26 }
 0xc24   :  { %v6497_v4 = vsub.f32 %v26067_v46, %v28102_v24  ;;  %v26102_v24 = vpack.c.bf16 %v25910_v17, %v25908_v14 }
 0xc25   :  { %21760 = vmatpush3.bf16.msra.mxu0 %v25882_v60  ;;  %28333 = vst [vmem:[#allocation44_spill] sm:$0xff] %v26061_v29  ;;  %v6504_v55 = vsub.f32 %v26072_v48, %v28103_v49  ;;  %v26092_v39 = vsub.f32 %v25647_v26, %v28337_v34  ;;  %v26118_v34 = vpack.c.bf16 %v25932_v3, %v25930_v58 }
 0xc26   :  { %21761 = vmatprep.subr.bf16.mxu0 %v28179_v40  ;;  %v6498_v57 = vand.u32 4294901760, %v6497_v4  ;;  %28339 = vst [vmem:[#allocation53_spill] sm:$0xff] %v26102_v24 }
 0xc27   :  { %v6505_v7 = vand.u32 4294901760, %v6504_v55  ;;  %v28104_v26 = vand.u32 4294901760, %v26092_v39  ;;  %v28105_v55 = vand.u32 4294901760, %v26097_v37  ;;  %28340 = vst [vmem:[#allocation54_spill] sm:$0xff] %v26118_v34 }
 0xc29   :  { %21763 = vmatpush3.bf16.msra.mxu0 %v25894_v51  ;;  %v21589_v4 = vpack.c.bf16 %v6505_v7, %v6498_v57  ;;  %v6511_v13 = vsub.f32 %v26092_v39, %v28104_v26  ;;  %v6518_v5 = vsub.f32 %v26097_v37, %v28105_v55  ;;  %v26124_v26 = vpack.c.bf16 %v25937_v23, %v25935_v1 }
 0xc2a   :  { %21764 = vmatprep.subr.bf16.mxu0 %v28179_v40  ;;  %v28342_v55 = vand.u32 4294901760, %v25661_v30 }
 0xc2b   :  { %21590 = vmatprep.subr.bf16.mxu1 %v21589_v4  ;;  %v6512_v57 = vand.u32 4294901760, %v6511_v13  ;;  %v6519_v7 = vand.u32 4294901760, %v6518_v5  ;;  %28341 = vst [vmem:[#allocation55_spill] sm:$0xff] %v26124_v26  ;;  %v26140_v5 = vpack.c.bf16 %v25961_v61, %v25959_v28 }
 0xc2c   :  { %21592 = vmatpush3.bf16.msra.mxu1 %v21589_v4  ;;  %v28343_v4 = vand.u32 4294901760, %v25663_v18 }
 0xc2d   :  { %21766 = vmatpush3.bf16.msra.mxu0 %v25902_v59  ;;  %v21593_v49 = vpack.c.bf16 %v6519_v7, %v6512_v57  ;;  %28344 = vst [vmem:[#allocation56_spill] sm:$0xff] %v26140_v5 }
 0xc2e   :  { %21767 = vmatprep.subr.bf16.mxu0 %v28179_v40  ;;  %v26135_v13 = vsub.f32 %v25663_v18, %v28343_v4  ;;  %v28346_v4 = vand.u32 4294901760, %v25677_v43 }
 0xc2f   :  { %21594 = vmatprep.subr.bf16.mxu1 %v21593_v49 }
 0xc30   :  { %21596 = vmatpush3.bf16.msra.mxu1 %v21593_v49  ;;  %v28113_v57 = vand.u32 4294901760, %v26135_v13 }
 0xc31   :  { %21769 = vmatpush3.bf16.msra.mxu0 %v25917_v54 }
 0xc32   :  { %21770 = vmatprep.subr.bf16.mxu0 %v28179_v40  ;;  %v6532_v18 = vsub.f32 %v26135_v13, %v28113_v57 }
 0xc34   :  { %v6533_v57 = vand.u32 4294901760, %v6532_v18 }
 0xc35   :  { %21772 = vmatpush3.bf16.msra.mxu0 %v25943_v36 }
 0xc36   :  { %21773 = vmatprep.subr.bf16.mxu0 %v28179_v40 }
 0xc38   :  { %18146 = vmatmul.mubr.f32.vlgmr.msra.gmra.mrb[16].mxu0 %v28198_v52 }
 0xc39   :  { %21775 = vmatpush3.bf16.msra.mxu0 %v25957_v6  ;;  %18180 = vmatprep.mubr.msk.f32.mxu0 %vm23712_vm0, %v28198_v52 }
 0xc3a   :  { %21776 = vmatprep.subr.bf16.mxu0 %v28179_v40 }
 0xc3d   :  { %21778 = vmatpush3.bf16.msra.mxu0 %v25985_v47 }
 0xc3e   :  { %21779 = vmatprep.subr.bf16.mxu0 %v28179_v40 }
 0xc41   :  { %21781 = vmatpush3.bf16.msra.mxu0 %v25999_v62 }
 0xc42   :  { %21782 = vmatprep.subr.bf16.mxu0 %v28179_v40 }
 0xc45   :  { %21784 = vmatpush3.bf16.msra.mxu0 %v26012_v31 }
 0xc46   :  { %21785 = vmatprep.subr.bf16.mxu0 %v28179_v40 }
 0xc49   :  { %21787 = vmatpush3.bf16.msra.mxu0 %v26034_v16 }
 0xc4a   :  { %21788 = vmatprep.subr.bf16.mxu0 %v28179_v40 }
 0xc4d   :  { %21790 = vmatpush3.bf16.msra.mxu0 %v26046_v32 }
 0xc4e   :  { %21791 = vmatprep.subr.bf16.mxu0 %v28179_v40 }
 0xc51   :  { %21793 = vmatpush3.bf16.msra.mxu0 %v26057_v2  ;;  %v28351_v2 = vand.u32 4294901760, %v25705_v27 }
 0xc52   :  { %21794 = vmatprep.subr.bf16.mxu0 %v28179_v40 }
 0xc55   :  { %21796 = vmatpush3.bf16.msra.mxu0 %v26061_v29 }
 0xc56   :  { %21797 = vmatprep.subr.bf16.mxu0 %v28179_v40 }
 0xc58   :  { %18181 = vmatmul.mubr.f32.vlgmr.msra.gmra.mrb[16].mxu0 %v28198_v52 }
 0xc59   :  { %21799 = vmatpush3.bf16.msra.mxu0 %v26079_v44  ;;  %18215 = vmatprep.mubr.msk.f32.mxu0 %vm23712_vm0, %v28198_v52 }
 0xc5a   :  { %21800 = vmatprep.subr.bf16.mxu0 %v28179_v40 }
 0xc5d   :  { %21802 = vmatpush3.bf16.msra.mxu0 %v26102_v24  ;;  %v26130_v24 = vsub.f32 %v25661_v30, %v28342_v55  ;;  %v28345_v55 = vand.u32 4294901760, %v25675_v35 }
 0xc5e   :  { %21803 = vmatprep.subr.bf16.mxu0 %v28179_v40 }
 0xc5f   :  { %v28112_v49 = vand.u32 4294901760, %v26130_v24  ;;  %v26154_v7 = vsub.f32 %v25675_v35, %v28345_v55 }
 0xc61   :  { %21805 = vmatpush3.bf16.msra.mxu0 %v26118_v34  ;;  %v6525_v30 = vsub.f32 %v26130_v24, %v28112_v49  ;;  %v26164_v34 = vpack.c.bf16 %v25982_v12, %v25980_v45  ;;  %v28121_v44 = vand.u32 4294901760, %v26154_v7 }
 0xc62   :  { %21806 = vmatprep.subr.bf16.mxu0 %v28179_v40 }
 0xc63   :  { %28347 = vst [vmem:[#allocation57_spill] sm:$0xff] %v26164_v34  ;;  %v6526_v49 = vand.u32 4294901760, %v6525_v30  ;;  %v26183_v30 = vpack.c.bf16 %v26009_v25, %v26004_v38 }
 0xc65   :  { %21808 = vmatpush3.bf16.msra.mxu0 %v26124_v26  ;;  %v26159_v26 = vsub.f32 %v25677_v43, %v28346_v4  ;;  %v21597_v55 = vpack.c.bf16 %v6533_v57, %v6526_v49  ;;  %v6539_v43 = vsub.f32 %v26154_v7, %v28121_v44  ;;  %28349 = vst [vmem:[#allocation58_spill] sm:$0xff] %v26183_v30  ;;  %v28350_v49 = vand.u32 4294901760, %v25693_v19 }
 0xc66   :  { %21809 = vmatprep.subr.bf16.mxu0 %v28179_v40 }
 0xc67   :  { %v28120_v35 = vand.u32 4294901760, %v26159_v26  ;;  %v26188_v57 = vsub.f32 %v25693_v19, %v28350_v49  ;;  %21598 = vmatprep.subr.bf16.mxu1 %v21597_v55  ;;  %v6540_v18 = vand.u32 4294901760, %v6539_v43  ;;  %v26199_v19 = vsub.f32 %v25705_v27, %v28351_v2 }
 0xc68   :  { %21600 = vmatpush3.bf16.msra.mxu1 %v21597_v55  ;;  %v28352_v49 = vand.u32 4294901760, %v25707_v8  ;;  %v26209_v55 = vpack.c.bf16 %v26031_v22, %v26026_v20 }
 0xc69   :  { %21811 = vmatpush3.bf16.msra.mxu0 %v26140_v5  ;;  %v6546_v4 = vsub.f32 %v26159_v26, %v28120_v35  ;;  %v28348_v5 = vand.u32 4294901760, %v25691_v42  ;;  %v28130_v2 = vand.u32 4294901760, %v26199_v19 }
 0xc6a   :  { %21812 = vmatprep.subr.bf16.mxu0 %v28179_v40  ;;  %v26204_v43 = vsub.f32 %v25707_v8, %v28352_v49 }
 0xc6b   :  { %v26178_v29 = vsub.f32 %v25691_v42, %v28348_v5  ;;  %v6547_v35 = vand.u32 4294901760, %v6546_v4  ;;  %v28126_v42 = vand.u32 4294901760, %v26188_v57 }
 0xc6c   :  { %v28133_v4 = vand.u32 4294901760, %v26204_v43 }
 0xc6d   :  { %21814 = vmatpush3.bf16.msra.mxu0 %v26164_v34  ;;  %v28127_v44 = vand.u32 4294901760, %v26178_v29  ;;  %v21601_v5 = vpack.c.bf16 %v6547_v35, %v6540_v18  ;;  %v6560_v35 = vsub.f32 %v26188_v57, %v28126_v42  ;;  %v6567_v18 = vsub.f32 %v26199_v19, %v28130_v2 }
 0xc6e   :  { %21815 = vmatprep.subr.bf16.mxu0 %v28179_v40  ;;  %v6574_v49 = vsub.f32 %v26204_v43, %v28133_v4  ;;  %v28353_v42 = vand.u32 4294901760, %v25719_v15 }
 0xc6f   :  { %v6553_v34 = vsub.f32 %v26178_v29, %v28127_v44  ;;  %21602 = vmatprep.subr.bf16.mxu1 %v21601_v5  ;;  %v6561_v8 = vand.u32 4294901760, %v6560_v35  ;;  %v6568_v35 = vand.u32 4294901760, %v6567_v18 }
 0xc70   :  { %21604 = vmatpush3.bf16.msra.mxu1 %v21601_v5  ;;  %v26226_v44 = vsub.f32 %v25719_v15, %v28353_v42  ;;  %v6575_v2 = vand.u32 4294901760, %v6574_v49 }
 0xc71   :  { %21817 = vmatpush3.bf16.msra.mxu0 %v26183_v30  ;;  %v6554_v27 = vand.u32 4294901760, %v6553_v34  ;;  %v28354_v34 = vand.u32 4294901760, %v25721_v50 }
 0xc72   :  { %21818 = vmatprep.subr.bf16.mxu0 %v28179_v40  ;;  %v28137_v32 = vand.u32 4294901760, %v26226_v44  ;;  %v21609_v15 = vpack.c.bf16 %v6575_v2, %v6568_v35  ;;  %v28356_v2 = vand.u32 4294901760, %v25735_v63 }
 0xc73   :  { %v26231_v30 = vsub.f32 %v25721_v50, %v28354_v34  ;;  %v21605_v5 = vpack.c.bf16 %v6561_v8, %v6554_v27  ;;  %v28355_v27 = vand.u32 4294901760, %v25733_v53 }
 0xc74   :  { %v6581_v50 = vsub.f32 %v26226_v44, %v28137_v32  ;;  %v26255_v18 = vsub.f32 %v25735_v63, %v28356_v2  ;;  %v26285_v2 = vpack.c.bf16 %v26135_v13, %v26130_v24 }
 0xc75   :  { %21820 = vmatpush3.bf16.msra.mxu0 %v26209_v55  ;;  %v28134_v4 = vand.u32 4294901760, %v26231_v30  ;;  %21606 = vmatprep.subr.bf16.mxu1 %v21605_v5  ;;  %v26250_v8 = vsub.f32 %v25733_v53, %v28355_v27  ;;  %v26272_v27 = vpack.c.bf16 %v26072_v48, %v26067_v46 }
 0xc76   :  { %21821 = vmatprep.subr.bf16.mxu0 %v28179_v40  ;;  %21608 = vmatpush3.bf16.msra.mxu1 %v21605_v5  ;;  %v6582_v49 = vand.u32 4294901760, %v6581_v50  ;;  %v28135_v35 = vand.u32 4294901760, %v26255_v18 }
 0xc77   :  { %v6588_v42 = vsub.f32 %v26231_v30, %v28134_v4  ;;  %21610 = vmatprep.subr.bf16.mxu1 %v21609_v15  ;;  %v28136_v5 = vand.u32 4294901760, %v26250_v8 }
 0xc78   :  { %18216 = vmatmul.mubr.f32.vlgmr.msra.gmra.mrb[16].mxu0 %v28198_v52  ;;  %v6602_v63 = vsub.f32 %v26255_v18, %v28135_v35  ;;  %v28360_v35 = vand.u32 4294901760, %v25910_v17  ;;  %v26336_v17 = vpack.c.bf16 %v26255_v18, %v26250_v8 }
 0xc79   :  { %21823 = vmatpush3.bf16.msra.mxu0 %v25867_v56  ;;  %18250 = vmatprep.mubr.msk.f32.mxu0 %vm23712_vm0, %v28198_v52  ;;  %v6589_v34 = vand.u32 4294901760, %v6588_v42  ;;  %v6595_v53 = vsub.f32 %v26250_v8, %v28136_v5 }
 0xc7a   :  { %21824 = vmatprep.subr.bf16.mxu0 %v28179_v40  ;;  %21612 = vmatpush3.bf16.msra.mxu1 %v21609_v15  ;;  %v6603_v42 = vand.u32 4294901760, %v6602_v63  ;;  %v28358_v63 = vand.u32 4294901760, %v25891_v9  ;;  %v28361_v9 = vand.u32 4294901760, %v25930_v58  ;;  %v28366_v58 = vand.u32 4294901760, %v25961_v61 }
 0xc7b   :  { %v21613_v4 = vpack.c.bf16 %v6589_v34, %v6582_v49  ;;  %v6596_v50 = vand.u32 4294901760, %v6595_v53  ;;  %v26291_v49 = vpack.c.bf16 %v26159_v26, %v26154_v7  ;;  %v26297_v34 = vpack.c.bf16 %v26188_v57, %v26178_v29 }
 0xc7c   :  { %v28357_v53 = vand.u32 4294901760, %v25889_v41  ;;  %v26324_v41 = vpack.c.bf16 %v26231_v30, %v26226_v44  ;;  %v28370_v61 = vand.u32 4294901760, %v26009_v25 }
 0xc7d   :  { %21826 = vmatpush3.bf16.msra.mxu0 %v25872_v21  ;;  %21614 = vmatprep.subr.bf16.mxu1 %v21613_v4  ;;  %v21617_v15 = vpack.c.bf16 %v6603_v42, %v6596_v50  ;;  %v26310_v42 = vpack.c.bf16 %v26204_v43, %v26199_v19 }
 0xc7e   :  { %21827 = vmatprep.subr.bf16.mxu0 %v28179_v40  ;;  %21616 = vmatpush3.bf16.msra.mxu1 %v21613_v4  ;;  %v26279_v4 = vpack.c.bf16 %v26097_v37, %v26092_v39  ;;  %v26304_v50 = vpack.c.bf16 %v28358_v63, %v28357_v53  ;;  %v28362_v53 = vand.u32 4294901760, %v25932_v3  ;;  %v28364_v63 = vand.u32 4294901760, %v25937_v23 }
 0xc7f   :  { %21618 = vmatprep.subr.bf16.mxu1 %v21617_v15  ;;  %v28365_v3 = vand.u32 4294901760, %v25959_v28  ;;  %v28368_v23 = vand.u32 4294901760, %v25982_v12  ;;  %v28369_v28 = vand.u32 4294901760, %v26004_v38  ;;  %v28373_v12 = vand.u32 4294901760, %v26031_v22 }
 0xc81   :  { %21829 = vmatpush3.bf16.msra.mxu0 %v25878_v10 }
 0xc82   :  { %21830 = vmatprep.subr.bf16.mxu0 %v28179_v40  ;;  %21620 = vmatpush3.bf16.msra.mxu1 %v21617_v15  ;;  %v28359_v15 = vand.u32 4294901760, %v25908_v14  ;;  %v26331_v14 = vpack.c.bf16 %v28362_v53, %v28361_v9  ;;  %v26351_v9 = vpack.c.bf16 %v28366_v58, %v28365_v3 }
 0xc83   :  { %21622 = vmatprep.subr.bf16.mxu1 %v26272_v27 }
 0xc84   :  { %v26317_v5 = vpack.c.bf16 %v28360_v35, %v28359_v15  ;;  %v28363_v35 = vand.u32 4294901760, %v25935_v1  ;;  %v28367_v1 = vand.u32 4294901760, %v25980_v45  ;;  %v28372_v45 = vand.u32 4294901760, %v26026_v20 }
 0xc85   :  { %21832 = vmatpush3.bf16.msra.mxu0 %v25882_v60 }
 0xc86   :  { %21833 = vmatprep.subr.bf16.mxu0 %v28179_v40  ;;  %v26343_v15 = vpack.c.bf16 %v28364_v63, %v28363_v35  ;;  %v26359_v53 = vpack.c.bf16 %v28368_v23, %v28367_v1  ;;  %v26367_v35 = vpack.c.bf16 %v28370_v61, %v28369_v28  ;;  %v26375_v63 = vpack.c.bf16 %v28373_v12, %v28372_v45  ;;  %v28375_v28 = vld [vmem:[#allocation49_spill] sm:$0xff]  ;;  %v28376_v61 = vld [vmem:[#allocation51_spill] sm:$0xff] }
 0xc87   :  { %v28377_v45 = vld [vmem:[#allocation23_spill] sm:$0xff]  ;;  %v28378_v12 = vld [vmem:[#allocation45_spill] sm:$0xff] }
 0xc88   :  { %28371 = vst [vmem:[#allocation59_spill] sm:$0xff] %v26367_v35  ;;  %28374 = vst [vmem:[#allocation60_spill] sm:$0xff] %v26375_v63 }
 0xc89   :  { %21835 = vmatpush3.bf16.msra.mxu0 %v25894_v51 }
 0xc8a   :  { %21836 = vmatprep.subr.bf16.mxu0 %v28179_v40 }
 0xc8d   :  { %21838 = vmatpush3.bf16.msra.mxu0 %v25902_v59 }
 0xc8e   :  { %21839 = vmatprep.subr.bf16.mxu0 %v28179_v40 }
 0xc91   :  { %21841 = vmatpush3.bf16.msra.mxu0 %v25917_v54 }
 0xc92   :  { %21842 = vmatprep.subr.bf16.mxu0 %v28179_v40 }
 0xc95   :  { %21844 = vmatpush3.bf16.msra.mxu0 %v25943_v36 }
 0xc96   :  { %21845 = vmatprep.subr.bf16.mxu0 %v28179_v40 }
 0xc98   :  { %18251 = vmatmul.mubr.f32.vlgmr.msra.gmra.mrb[16].mxu0 %v28198_v52 }
 0xc99   :  { %21847 = vmatpush3.bf16.msra.mxu0 %v26304_v50  ;;  %18285 = vmatprep.mubr.msk.f32.mxu0 %vm23712_vm0, %v28198_v52 }
 0xc9a   :  { %21848 = vmatprep.subr.bf16.mxu0 %v28179_v40 }
 0xc9d   :  { %21850 = vmatpush3.bf16.msra.mxu0 %v26317_v5 }
 0xc9e   :  { %21851 = vmatprep.subr.bf16.mxu0 %v28179_v40 }
 0xca1   :  { %21853 = vmatpush3.bf16.msra.mxu0 %v26331_v14 }
 0xca2   :  { %21854 = vmatprep.subr.bf16.mxu0 %v28179_v40 }
 0xca5   :  { %21856 = vmatpush3.bf16.msra.mxu0 %v26343_v15 }
 0xca6   :  { %21857 = vmatprep.subr.bf16.mxu0 %v28179_v40 }
 0xca9   :  { %21859 = vmatpush3.bf16.msra.mxu0 %v26351_v9 }
 0xcaa   :  { %21860 = vmatprep.subr.bf16.mxu0 %v28179_v40 }
 0xcad   :  { %21862 = vmatpush3.bf16.msra.mxu0 %v26359_v53 }
 0xcae   :  { %21863 = vmatprep.subr.bf16.mxu0 %v28179_v40 }
 0xcb1   :  { %21865 = vmatpush3.bf16.msra.mxu0 %v26367_v35  ;;  %v28402_v35 = vand.u32 4294901760, %v26130_v24  ;;  %v28410_v24 = vand.u32 4294901760, %v26178_v29  ;;  %v28416_v29 = vand.u32 4294901760, %v26231_v30  ;;  %v13778_v30 = vld [vmem:[%s27902_s6] ss:$0 sm:$0xff] }
 0xcb2   :  { %21866 = vmatprep.subr.bf16.mxu0 %v28179_v40 }
 0xcb5   :  { %21868 = vmatpush3.bf16.msra.mxu0 %v26375_v63  ;;  %v28401_v63 = vld [vmem:[#allocation43_spill] sm:$0xff] }
 0xcb6   :  { %21869 = vmatprep.subr.bf16.mxu0 %v28179_v40 }
 0xcb8   :  { %18286 = vmatmul.mubr.f32.vlgmr.msra.gmra.mrb[16].mxu0 %v28198_v52 }
 0xcb9   :  { %21871 = vmatpush3.bf16.msra.mxu0 %v25867_v56  ;;  %18320 = vmatprep.mubr.msk.f32.mxu0 %vm23712_vm0, %v28198_v52 }
 0xcba   :  { %21872 = vmatprep.subr.bf16.mxu0 %v28179_v40 }
 0xcbd   :  { %21874 = vmatpush3.bf16.msra.mxu0 %v25872_v21 }
 0xcbe   :  { %21875 = vmatprep.subr.bf16.mxu0 %v28179_v40 }
 0xcc1   :  { %21877 = vmatpush3.bf16.msra.mxu0 %v25878_v10 }
 0xcc2   :  { %21878 = vmatprep.subr.bf16.mxu0 %v28179_v40 }
 0xcc5   :  { %21880 = vmatpush3.bf16.msra.mxu0 %v25882_v60 }
 0xcc6   :  { %21881 = vmatprep.subr.bf16.mxu0 %v28179_v40 }
 0xcc9   :  { %21883 = vmatpush3.bf16.msra.mxu0 %v25894_v51 }
 0xcca   :  { %21884 = vmatprep.subr.bf16.mxu0 %v28179_v40 }
 0xccd   :  { %21886 = vmatpush3.bf16.msra.mxu0 %v25902_v59 }
 0xcce   :  { %21887 = vmatprep.subr.bf16.mxu0 %v28179_v40 }
 0xcd1   :  { %21889 = vmatpush3.bf16.msra.mxu0 %v25917_v54 }
 0xcd2   :  { %21890 = vmatprep.subr.bf16.mxu0 %v28179_v40 }
 0xcd5   :  { %21892 = vmatpush3.bf16.msra.mxu0 %v25943_v36 }
 0xcd6   :  { %22037 = vmatprep.subr.bf16.mxu0 %v28179_v40 }
 0xcd8   :  { %18321 = vmatmul.mubr.f32.vlgmr.msra.gmra.mrb[16].mxu0 %v28198_v52 }
 0xcd9   :  { %22039 = vmatpush3.bf16.msra.mxu0 %v25867_v56  ;;  %18565 = vmatprep.mubr.msk.f32.mxu0 %vm23712_vm0, %v28198_v52 }
 0xcda   :  { %22040 = vmatprep.subr.bf16.mxu0 %v28179_v40 }
 0xcdd   :  { %22042 = vmatpush3.bf16.msra.mxu0 %v25872_v21 }
 0xcde   :  { %22043 = vmatprep.subr.bf16.mxu0 %v28179_v40 }
 0xce1   :  { %22045 = vmatpush3.bf16.msra.mxu0 %v25878_v10 }
 0xce2   :  { %22046 = vmatprep.subr.bf16.mxu0 %v28179_v40 }
 0xce5   :  { %22048 = vmatpush3.bf16.msra.mxu0 %v25882_v60 }
 0xce6   :  { %22049 = vmatprep.subr.bf16.mxu0 %v28179_v40 }
 0xce9   :  { %22051 = vmatpush3.bf16.msra.mxu0 %v25894_v51 }
 0xcea   :  { %22052 = vmatprep.subr.bf16.mxu0 %v28179_v40 }
 0xceb   :  { %v6278_v38 = vpop.f32.mrb[14].mxu0 }
 0xcec   :  { %v6282_v25 = vadd.f32 %v24899_v0, %v6278_v38  ;;  %v17848_v20 = vpop.f32.mrb[15].mxu0  ;;  %v28379_v38 = vld [vmem:[#allocation46_spill] sm:$0xff] }
 0xced   :  { %22054 = vmatpush3.bf16.msra.mxu0 %v25902_v59  ;;  %v28386_v20 = vld [vmem:[#allocation25_spill] sm:$0xff] }
 0xcee   :  { %23494 = vtanh.f32 %v6282_v25  ;;  %22055 = vmatprep.subr.bf16.mxu0 %v28179_v40  ;;  %v28380_v25 = vld [vmem:[#allocation28_spill] sm:$0xff] }
 0xcf1   :  { %22057 = vmatpush3.bf16.msra.mxu0 %v25917_v54 }
 0xcf2   :  { %22058 = vmatprep.subr.bf16.mxu0 %v28179_v40 }
 0xcf5   :  { %22060 = vmatpush3.bf16.msra.mxu0 %v25943_v36 }
 0xcf6   :  { %22061 = vmatprep.subr.bf16.mxu0 %v28179_v40 }
 0xcf8   :  { %v23495_v22 = vpop.eup %23494 }
 0xcf9   :  { %v26419_v3 = vand.u32 4294901760, %v23495_v22 }
 0xcfb   :  { %v26422_v58 = vsub.f32 %v23495_v22, %v26419_v3  ;;  %v28389_v22 = vld [vmem:[#allocation52_spill] sm:$0xff] }
 0xcfd   :  { %v28138_v0 = vand.u32 4294901760, %v26422_v58 }
 0xcff   :  { %v6486_v1 = vsub.f32 %v26422_v58, %v28138_v0  ;;  %v28400_v0 = vld [vmem:[#allocation38_spill] sm:$0xff] }
 0xd01   :  { %v6487_v23 = vand.u32 4294901760, %v6486_v1  ;;  %v28391_v1 = vld [vmem:[#allocation50_spill] sm:$0xff] }
 0xd03   :  { %17891 = vmatmul.mubr.f32.gmra.mrb[14].mxu1 %v6487_v23  ;;  %v28392_v23 = vld [vmem:[#allocation34_spill] sm:$0xff] }
 0xd04   :  { %17925 = vmatprep.mubr.f32.mxu1 %v28375_v28 }
 0xd07   :  { %17926 = vmatmul.mubr.f32.vlgmr.msra.gmra.mrb[8].mxu1 %v28376_v61 }
 0xd08   :  { %21624 = vmatpush3.bf16.msra.mxu1 %v26272_v27  ;;  %17928 = vmatprep.mubr.f32.mxu1 %v28377_v45  ;;  %v28381_v27 = vld [vmem:[#allocation37_spill] sm:$0xff] }
 0xd09   :  { %21626 = vmatprep.subr.bf16.mxu1 %v26279_v4 }
 0xd0b   :  { %17929 = vmatmul.mubr.f32.gmra.mrb[10].mxu1 %v28378_v12 }
 0xd0c   :  { %21628 = vmatpush3.bf16.msra.mxu1 %v26279_v4  ;;  %17931 = vmatprep.mubr.f32.mxu1 %v28379_v38  ;;  %v28382_v4 = vld [vmem:[#allocation30_spill] sm:$0xff] }
 0xd0d   :  { %21630 = vmatprep.subr.bf16.mxu1 %v26285_v2 }
 0xd0f   :  { %17932 = vmatmul.mubr.f32.gmra.mrb[12].mxu1 %v28380_v25 }
 0xd10   :  { %21632 = vmatpush3.bf16.msra.mxu1 %v26285_v2  ;;  %17934 = vmatprep.mubr.f32.mxu1 %v25764_v11  ;;  %v28383_v2 = vld [vmem:[#allocation22_spill] sm:$0xff] }
 0xd11   :  { %21634 = vmatprep.subr.bf16.mxu1 %v26291_v49 }
 0xd13   :  { %17935 = vmatmul.mubr.f32.gmra.mrb[14].mxu1 %v26419_v3 }
 0xd14   :  { %21636 = vmatpush3.bf16.msra.mxu1 %v26291_v49  ;;  %17969 = vmatprep.mubr.f32.mxu1 %v28381_v27  ;;  %v28384_v49 = vld [vmem:[#allocation24_spill] sm:$0xff]  ;;  %v28393_v27 = vld [vmem:[#allocation35_spill] sm:$0xff] }
 0xd15   :  { %21638 = vmatprep.subr.bf16.mxu1 %v26297_v34 }
 0xd18   :  { %21640 = vmatpush3.bf16.msra.mxu1 %v26297_v34  ;;  %v28385_v34 = vld [vmem:[#allocation31_spill] sm:$0xff] }
 0xd19   :  { %21642 = vmatprep.subr.bf16.mxu1 %v26310_v42 }
 0xd1c   :  { %21644 = vmatpush3.bf16.msra.mxu1 %v26310_v42  ;;  %v28387_v42 = vld [vmem:[#allocation48_spill] sm:$0xff] }
 0xd1d   :  { %21646 = vmatprep.subr.bf16.mxu1 %v26324_v41 }
 0xd20   :  { %21648 = vmatpush3.bf16.msra.mxu1 %v26324_v41  ;;  %v28388_v41 = vld [vmem:[#allocation32_spill] sm:$0xff] }
 0xd21   :  { %21650 = vmatprep.subr.bf16.mxu1 %v26336_v17 }
 0xd24   :  { %21652 = vmatpush3.bf16.msra.mxu1 %v26336_v17  ;;  %v28390_v17 = vld [vmem:[#allocation33_spill] sm:$0xff] }
 0xd25   :  { %21654 = vmatprep.subr.bf16.mxu1 %v28382_v4 }
 0xd27   :  { %17970 = vmatmul.mubr.f32.vlgmr.msra.gmra.mrb[8].mxu1 %v28383_v2  ;;  %v28394_v2 = vld [vmem:[#allocation36_spill] sm:$0xff] }
 0xd28   :  { %17972 = vmatprep.mubr.f32.mxu1 %v28384_v49  ;;  %21656 = vmatpush3.bf16.msra.mxu1 %v28382_v4  ;;  %v28396_v49 = vand.u32 4294901760, %v26067_v46  ;;  %v28403_v46 = vand.u32 4294901760, %v26135_v13  ;;  %v28411_v13 = vand.u32 4294901760, %v26188_v57 }
 0xd29   :  { %21658 = vmatprep.subr.bf16.mxu1 %v28385_v34 }
 0xd2b   :  { %17973 = vmatmul.mubr.f32.gmra.mrb[10].mxu1 %v28386_v20  ;;  %v28397_v20 = vand.u32 4294901760, %v26072_v48  ;;  %v21693_v48 = vpack.c.bf16 %v28403_v46, %v28402_v35  ;;  %v21701_v35 = vpack.c.bf16 %v28411_v13, %v28410_v24  ;;  %v28418_v46 = vand.u32 4294901760, %v26255_v18  ;;  %v28422_v24 = vld [vmem:[#allocation47_spill] sm:$0xff]  ;;  %v28423_v13 = vld [vmem:[#allocation53_spill] sm:$0xff] }
 0xd2c   :  { %17975 = vmatprep.mubr.f32.mxu1 %v28387_v42  ;;  %21660 = vmatpush3.bf16.msra.mxu1 %v28385_v34 }
 0xd2d   :  { %21662 = vmatprep.subr.bf16.mxu1 %v28388_v41  ;;  %v21685_v42 = vpack.c.bf16 %v28397_v20, %v28396_v49  ;;  %v28404_v49 = vld [vmem:[#allocation26_spill] sm:$0xff]  ;;  %v28405_v20 = vld [vmem:[#allocation27_spill] sm:$0xff] }
 0xd2f   :  { %17976 = vmatmul.mubr.f32.gmra.mrb[12].mxu1 %v28389_v22  ;;  %v28398_v22 = vand.u32 4294901760, %v26092_v39  ;;  %v28407_v39 = vand.u32 4294901760, %v26159_v26  ;;  %v28414_v26 = vand.u32 4294901760, %v26204_v43 }
 0xd30   :  { %17978 = vmatprep.mubr.f32.mxu1 %v25767_v33  ;;  %21664 = vmatpush3.bf16.msra.mxu1 %v28388_v41  ;;  %v28395_v33 = vld [vmem:[#allocation39_spill] sm:$0xff] }
 0xd31   :  { %21666 = vmatprep.subr.bf16.mxu1 %v28390_v17 }
 0xd33   :  { %17979 = vmatmul.mubr.f32.gmra.mrb[14].mxu1 %v26422_v58 }
 0xd34   :  { %21668 = vmatpush3.bf16.msra.mxu1 %v28390_v17  ;;  %18013 = vmatprep.mubr.f32.mxu1 %v28391_v1  ;;  %v28399_v1 = vand.u32 4294901760, %v26097_v37  ;;  %v28406_v37 = vand.u32 4294901760, %v26154_v7 }
 0xd35   :  { %21670 = vmatprep.subr.bf16.mxu1 %v28392_v23 }
 0xd36   :  { %v21689_v32 = vpack.c.bf16 %v28399_v1, %v28398_v22  ;;  %v28408_v22 = vld [vmem:[#allocation29_spill] sm:$0xff]  ;;  %v28415_v1 = vand.u32 4294901760, %v26226_v44 }
 0xd38   :  { %21672 = vmatpush3.bf16.msra.mxu1 %v28392_v23  ;;  %v21709_v57 = vpack.c.bf16 %v28416_v29, %v28415_v1  ;;  %v28429_v1 = vld [vmem:[#allocation59_spill] sm:$0xff]  ;;  %v28430_v29 = vld [vmem:[#allocation60_spill] sm:$0xff] }
 0xd39   :  { %21674 = vmatprep.subr.bf16.mxu1 %v28393_v27 }
 0xd3c   :  { %21676 = vmatpush3.bf16.msra.mxu1 %v28393_v27 }
 0xd3d   :  { %21678 = vmatprep.subr.bf16.mxu1 %v28394_v2 }
 0xd40   :  { %21680 = vmatpush3.bf16.msra.mxu1 %v28394_v2 }
 0xd41   :  { %21682 = vmatprep.subr.bf16.mxu1 %v28395_v33 }
 0xd44   :  { %21684 = vmatpush3.bf16.msra.mxu1 %v28395_v33 }
 0xd45   :  { %21686 = vmatprep.subr.bf16.mxu1 %v21685_v42 }
 0xd47   :  { %18014 = vmatmul.mubr.f32.vlgmr.msra.gmra.mrb[8].mxu1 %v28400_v0  ;;  %v21697_v0 = vpack.c.bf16 %v28407_v39, %v28406_v37 }
 0xd48   :  { %18016 = vmatprep.mubr.f32.mxu1 %v28401_v63  ;;  %21688 = vmatpush3.bf16.msra.mxu1 %v21685_v42  ;;  %v28409_v63 = vld [vmem:[#allocation40_spill] sm:$0xff]  ;;  %v28412_v42 = vand.u32 4294901760, %v26422_v58  ;;  %v28417_v58 = vand.u32 4294901760, %v26250_v8 }
 0xd49   :  { %21690 = vmatprep.subr.bf16.mxu1 %v21689_v32 }
 0xd4b   :  { %18017 = vmatmul.mubr.f32.gmra.mrb[10].mxu1 %v28404_v49 }
 0xd4c   :  { %18019 = vmatprep.mubr.f32.mxu1 %v28405_v20  ;;  %21692 = vmatpush3.bf16.msra.mxu1 %v21689_v32  ;;  %v28413_v32 = vand.u32 4294901760, %v26199_v19 }
 0xd4d   :  { %21694 = vmatprep.subr.bf16.mxu1 %v21693_v48 }
 0xd4e   :  { %v21705_v7 = vpack.c.bf16 %v28414_v26, %v28413_v32  ;;  %v28426_v32 = vld [vmem:[#allocation56_spill] sm:$0xff]  ;;  %v28427_v26 = vld [vmem:[#allocation57_spill] sm:$0xff] }
 0xd4f   :  { %18020 = vmatmul.mubr.f32.gmra.mrb[12].mxu1 %v28408_v22  ;;  %v28420_v22 = vld [vmem:[#allocation42_spill] sm:$0xff] }
 0xd50   :  { %18022 = vmatprep.mubr.f32.mxu1 %v28409_v63  ;;  %21696 = vmatpush3.bf16.msra.mxu1 %v21693_v48  ;;  %v21713_v48 = vpack.c.bf16 %v28418_v46, %v28417_v58  ;;  %v28421_v63 = vld [vmem:[#allocation44_spill] sm:$0xff] }
 0xd51   :  { %21698 = vmatprep.subr.bf16.mxu1 %v21697_v0 }
 0xd53   :  { %18023 = vmatmul.mubr.f32.gmra.mrb[14].mxu1 %v28412_v42  ;;  %v28425_v42 = vld [vmem:[#allocation55_spill] sm:$0xff] }
 0xd54   :  { %21700 = vmatpush3.bf16.msra.mxu1 %v21697_v0  ;;  %18057 = vmatprep.mubr.f32.mxu1 %v28375_v28  ;;  %v28419_v0 = vld [vmem:[#allocation41_spill] sm:$0xff] }
 0xd55   :  { %21702 = vmatprep.subr.bf16.mxu1 %v21701_v35 }
 0xd58   :  { %21704 = vmatpush3.bf16.msra.mxu1 %v21701_v35  ;;  %v28424_v35 = vld [vmem:[#allocation54_spill] sm:$0xff] }
 0xd59   :  { %21706 = vmatprep.subr.bf16.mxu1 %v21705_v7 }
 0xd5c   :  { %21708 = vmatpush3.bf16.msra.mxu1 %v21705_v7  ;;  %v28428_v7 = vld [vmem:[#allocation58_spill] sm:$0xff] }
 0xd5d   :  { %21710 = vmatprep.subr.bf16.mxu1 %v21709_v57 }
 0xd60   :  { %21712 = vmatpush3.bf16.msra.mxu1 %v21709_v57 }
 0xd61   :  { %21714 = vmatprep.subr.bf16.mxu1 %v21713_v48 }
 0xd64   :  { %21716 = vmatpush3.bf16.msra.mxu1 %v21713_v48 }
 0xd65   :  { %21718 = vmatprep.subr.bf16.mxu1 %v28382_v4 }
 0xd67   :  { %18058 = vmatmul.mubr.f32.vlgmr.msra.gmra.mrb[8].mxu1 %v28376_v61 }
 0xd68   :  { %18060 = vmatprep.mubr.f32.mxu1 %v28377_v45  ;;  %21720 = vmatpush3.bf16.msra.mxu1 %v28382_v4 }
 0xd69   :  { %21722 = vmatprep.subr.bf16.mxu1 %v28385_v34 }
 0xd6b   :  { %18061 = vmatmul.mubr.f32.gmra.mrb[10].mxu1 %v28378_v12 }
 0xd6c   :  { %18063 = vmatprep.mubr.f32.mxu1 %v28379_v38  ;;  %21724 = vmatpush3.bf16.msra.mxu1 %v28385_v34 }
 0xd6d   :  { %21726 = vmatprep.subr.bf16.mxu1 %v28388_v41 }
 0xd6f   :  { %18064 = vmatmul.mubr.f32.gmra.mrb[12].mxu1 %v28380_v25 }
 0xd70   :  { %18066 = vmatprep.mubr.f32.mxu1 %v25764_v11  ;;  %21728 = vmatpush3.bf16.msra.mxu1 %v28388_v41 }
 0xd71   :  { %21730 = vmatprep.subr.bf16.mxu1 %v28390_v17 }
 0xd73   :  { %18067 = vmatmul.mubr.f32.gmra.mrb[14].mxu1 %v26419_v3 }
 0xd74   :  { %21732 = vmatpush3.bf16.msra.mxu1 %v28390_v17  ;;  %18101 = vmatprep.mubr.f32.mxu1 %v28375_v28 }
 0xd75   :  { %21734 = vmatprep.subr.bf16.mxu1 %v28392_v23 }
 0xd78   :  { %21736 = vmatpush3.bf16.msra.mxu1 %v28392_v23 }
 0xd79   :  { %21738 = vmatprep.subr.bf16.mxu1 %v28393_v27 }
 0xd7c   :  { %21740 = vmatpush3.bf16.msra.mxu1 %v28393_v27 }
 0xd7d   :  { %21742 = vmatprep.subr.bf16.mxu1 %v28394_v2 }
 0xd80   :  { %21744 = vmatpush3.bf16.msra.mxu1 %v28394_v2 }
 0xd81   :  { %21746 = vmatprep.subr.bf16.mxu1 %v28395_v33 }
 0xd84   :  { %21748 = vmatpush3.bf16.msra.mxu1 %v28395_v33 }
 0xd85   :  { %21893 = vmatprep.subr.bf16.mxu1 %v28179_v40 }
 0xd87   :  { %18102 = vmatmul.mubr.f32.vlgmr.msra.gmra.mrb[8].mxu1 %v28376_v61 }
 0xd88   :  { %18104 = vmatprep.mubr.f32.mxu1 %v28377_v45  ;;  %21895 = vmatpush3.bf16.msra.mxu1 %v25867_v56 }
 0xd89   :  { %21896 = vmatprep.subr.bf16.mxu1 %v28179_v40 }
 0xd8b   :  { %18105 = vmatmul.mubr.f32.gmra.mrb[10].mxu1 %v28378_v12 }
 0xd8c   :  { %18107 = vmatprep.mubr.f32.mxu1 %v28379_v38  ;;  %21898 = vmatpush3.bf16.msra.mxu1 %v25872_v21 }
 0xd8d   :  { %21899 = vmatprep.subr.bf16.mxu1 %v28179_v40 }
 0xd8f   :  { %18108 = vmatmul.mubr.f32.gmra.mrb[12].mxu1 %v28380_v25 }
 0xd90   :  { %18110 = vmatprep.mubr.f32.mxu1 %v25764_v11  ;;  %21901 = vmatpush3.bf16.msra.mxu1 %v25878_v10 }
 0xd91   :  { %21902 = vmatprep.subr.bf16.mxu1 %v28179_v40 }
 0xd93   :  { %18111 = vmatmul.mubr.f32.gmra.mrb[14].mxu1 %v26419_v3 }
 0xd94   :  { %21904 = vmatpush3.bf16.msra.mxu1 %v25882_v60  ;;  %18355 = vmatprep.mubr.msk.f32.mxu1 %vm23712_vm0, %v28198_v52 }
 0xd95   :  { %21905 = vmatprep.subr.bf16.mxu1 %v28179_v40 }
 0xd98   :  { %21907 = vmatpush3.bf16.msra.mxu1 %v25894_v51 }
 0xd99   :  { %21908 = vmatprep.subr.bf16.mxu1 %v28179_v40 }
 0xd9c   :  { %21910 = vmatpush3.bf16.msra.mxu1 %v25902_v59 }
 0xd9d   :  { %21911 = vmatprep.subr.bf16.mxu1 %v28179_v40 }
 0xda0   :  { %21913 = vmatpush3.bf16.msra.mxu1 %v25917_v54 }
 0xda1   :  { %21914 = vmatprep.subr.bf16.mxu1 %v28179_v40 }
 0xda4   :  { %21916 = vmatpush3.bf16.msra.mxu1 %v25943_v36 }
 0xda5   :  { %21917 = vmatprep.subr.bf16.mxu1 %v28179_v40 }
 0xdab   :  { %v7907_v11 = vpop.f32.mrb[16].mxu0 }
 0xdac   :  { %v18322_v44 = vpop.f32.mrb[17].mxu0 }
 0xe5a   :  { %v18103_v19 = vpop.f32.mrb[8].mxu1 }
 0xe5b   :  { %v26570_v43 = vadd.f32 %v18103_v19, %v13778_v30  ;;  %v7228_v8 = vpop.f32.mrb[9].mxu1 }
 0xe5c   :  { %v23198_v18 = vadd.f32 %v13778_v30, %v7228_v8 }
 0xe5e   :  { %v7911_v3 = vadd.f32 %v23198_v18, %v7907_v11  ;;  %v18106_v28 = vpop.f32.mrb[10].mxu1 }
 0xe5f   :  { %v26572_v61 = vadd.f32 %v18106_v28, %v13778_v30  ;;  %v7240_v45 = vpop.f32.mrb[11].mxu1 }
 0xe60   :  { %23496 = vtanh.f32 %v7911_v3  ;;  %v26574_v12 = vadd.f32 %v13778_v30, %v7240_v45 }
 0xe62   :  { %v18109_v38 = vpop.f32.mrb[12].mxu1 }
 0xe63   :  { %v26576_v25 = vadd.f32 %v18109_v38, %v13778_v30  ;;  %v7252_v4 = vpop.f32.mrb[13].mxu1 }
 0xe64   :  { %v26578_v34 = vadd.f32 %v13778_v30, %v7252_v4 }
 0xe66   :  { %v18112_v41 = vpop.f32.mrb[14].mxu1 }
 0xe67   :  { %v26580_v17 = vadd.f32 %v18112_v41, %v13778_v30  ;;  %v7264_v23 = vpop.f32.mrb[15].mxu1 }
 0xe68   :  { %v26582_v27 = vadd.f32 %v13778_v30, %v7264_v23 }
 0xe6a   :  { %v23497_v2 = vpop.eup %23496 }
 0xe6b   :  { %v26584_v33 = vand.u32 4294901760, %v23497_v2 }
 0xe6d   :  { %v7997_v49 = vsub.f32 %v23497_v2, %v26584_v33 }
 0xe6f   :  { %v7998_v20 = vand.u32 4294901760, %v7997_v49 }
 0xe71   :  { %v7999_v37 = vsub.f32 %v7997_v49, %v7998_v20 }
 0xe73   :  { %v8000_v39 = vand.u32 4294901760, %v7999_v37 }
 0xe75   :  { %18356 = vmatmul.mubr.f32.vlgmr.msra.gmra.mrb[16].mxu1 %v8000_v39 }
 0xe76   :  { %21919 = vmatpush3.bf16.msra.mxu1 %v25957_v6  ;;  %18390 = vmatprep.mubr.msk.f32.mxu1 %vm23712_vm0, %v28198_v52 }
 0xe77   :  { %21920 = vmatprep.subr.bf16.mxu1 %v28179_v40 }
 0xe7a   :  { %21922 = vmatpush3.bf16.msra.mxu1 %v25985_v47 }
 0xe7b   :  { %21923 = vmatprep.subr.bf16.mxu1 %v28179_v40 }
 0xe7e   :  { %21925 = vmatpush3.bf16.msra.mxu1 %v25999_v62 }
 0xe7f   :  { %21926 = vmatprep.subr.bf16.mxu1 %v28179_v40 }
 0xe82   :  { %21928 = vmatpush3.bf16.msra.mxu1 %v26012_v31 }
 0xe83   :  { %21929 = vmatprep.subr.bf16.mxu1 %v28179_v40 }
 0xe86   :  { %21931 = vmatpush3.bf16.msra.mxu1 %v26034_v16 }
 0xe87   :  { %21932 = vmatprep.subr.bf16.mxu1 %v28179_v40 }
 0xe8a   :  { %21934 = vmatpush3.bf16.msra.mxu1 %v28419_v0 }
 0xe8b   :  { %21935 = vmatprep.subr.bf16.mxu1 %v28179_v40 }
 0xe8e   :  { %21937 = vmatpush3.bf16.msra.mxu1 %v28420_v22 }
 0xe8f   :  { %21938 = vmatprep.subr.bf16.mxu1 %v28179_v40 }
 0xe92   :  { %21940 = vmatpush3.bf16.msra.mxu1 %v28421_v63 }
 0xe93   :  { %21941 = vmatprep.subr.bf16.mxu1 %v28179_v40 }
 0xe95   :  { %18391 = vmatmul.mubr.f32.vlgmr.msra.gmra.mrb[16].mxu1 %v26584_v33 }
 0xe96   :  { %21943 = vmatpush3.bf16.msra.mxu1 %v28422_v24  ;;  %18425 = vmatprep.mubr.msk.f32.mxu1 %vm23712_vm0, %v28198_v52 }
 0xe97   :  { %21944 = vmatprep.subr.bf16.mxu1 %v28179_v40 }
 0xe9a   :  { %21946 = vmatpush3.bf16.msra.mxu1 %v28423_v13 }
 0xe9b   :  { %21947 = vmatprep.subr.bf16.mxu1 %v28179_v40 }
 0xe9e   :  { %21949 = vmatpush3.bf16.msra.mxu1 %v28424_v35 }
 0xe9f   :  { %21950 = vmatprep.subr.bf16.mxu1 %v28179_v40 }
 0xea2   :  { %21952 = vmatpush3.bf16.msra.mxu1 %v28425_v42 }
 0xea3   :  { %21953 = vmatprep.subr.bf16.mxu1 %v28179_v40 }
 0xea6   :  { %21955 = vmatpush3.bf16.msra.mxu1 %v28426_v32 }
 0xea7   :  { %21956 = vmatprep.subr.bf16.mxu1 %v28179_v40 }
 0xeaa   :  { %21958 = vmatpush3.bf16.msra.mxu1 %v28427_v26 }
 0xeab   :  { %21959 = vmatprep.subr.bf16.mxu1 %v28179_v40 }
 0xeae   :  { %21961 = vmatpush3.bf16.msra.mxu1 %v28428_v7 }
 0xeaf   :  { %21962 = vmatprep.subr.bf16.mxu1 %v28179_v40 }
 0xeb2   :  { %21964 = vmatpush3.bf16.msra.mxu1 %v26209_v55 }
 0xeb3   :  { %21965 = vmatprep.subr.bf16.mxu1 %v28179_v40 }
 0xeb5   :  { %18426 = vmatmul.mubr.f32.vlgmr.msra.gmra.mrb[16].mxu1 %v7997_v49 }
 0xeb6   :  { %21967 = vmatpush3.bf16.msra.mxu1 %v25867_v56  ;;  %18460 = vmatprep.mubr.msk.f32.mxu1 %vm23712_vm0, %v28198_v52 }
 0xeb7   :  { %21968 = vmatprep.subr.bf16.mxu1 %v28179_v40 }
 0xeba   :  { %21970 = vmatpush3.bf16.msra.mxu1 %v25872_v21 }
 0xebb   :  { %21971 = vmatprep.subr.bf16.mxu1 %v28179_v40 }
 0xebe   :  { %21973 = vmatpush3.bf16.msra.mxu1 %v25878_v10 }
 0xebf   :  { %21974 = vmatprep.subr.bf16.mxu1 %v28179_v40 }
 0xec2   :  { %21976 = vmatpush3.bf16.msra.mxu1 %v25882_v60 }
 0xec3   :  { %21977 = vmatprep.subr.bf16.mxu1 %v28179_v40 }
 0xec6   :  { %21979 = vmatpush3.bf16.msra.mxu1 %v25894_v51 }
 0xec7   :  { %21980 = vmatprep.subr.bf16.mxu1 %v28179_v40 }
 0xeca   :  { %21982 = vmatpush3.bf16.msra.mxu1 %v25902_v59 }
 0xecb   :  { %21983 = vmatprep.subr.bf16.mxu1 %v28179_v40 }
 0xece   :  { %21985 = vmatpush3.bf16.msra.mxu1 %v25917_v54 }
 0xecf   :  { %21986 = vmatprep.subr.bf16.mxu1 %v28179_v40 }
 0xed2   :  { %21988 = vmatpush3.bf16.msra.mxu1 %v25943_v36 }
 0xed3   :  { %21989 = vmatprep.subr.bf16.mxu1 %v28179_v40 }
 0xed5   :  { %18461 = vmatmul.mubr.f32.vlgmr.msra.gmra.mrb[16].mxu1 %v7998_v20 }
 0xed6   :  { %21991 = vmatpush3.bf16.msra.mxu1 %v26304_v50  ;;  %18495 = vmatprep.mubr.msk.f32.mxu1 %vm23712_vm0, %v28198_v52 }
 0xed7   :  { %21992 = vmatprep.subr.bf16.mxu1 %v28179_v40 }
 0xeda   :  { %21994 = vmatpush3.bf16.msra.mxu1 %v26317_v5 }
 0xedb   :  { %21995 = vmatprep.subr.bf16.mxu1 %v28179_v40 }
 0xede   :  { %21997 = vmatpush3.bf16.msra.mxu1 %v26331_v14 }
 0xedf   :  { %21998 = vmatprep.subr.bf16.mxu1 %v28179_v40 }
 0xee2   :  { %22000 = vmatpush3.bf16.msra.mxu1 %v26343_v15 }
 0xee3   :  { %22001 = vmatprep.subr.bf16.mxu1 %v28179_v40 }
 0xee6   :  { %22003 = vmatpush3.bf16.msra.mxu1 %v26351_v9 }
 0xee7   :  { %22004 = vmatprep.subr.bf16.mxu1 %v28179_v40 }
 0xeea   :  { %22006 = vmatpush3.bf16.msra.mxu1 %v26359_v53 }
 0xeeb   :  { %22007 = vmatprep.subr.bf16.mxu1 %v28179_v40 }
 0xeee   :  { %22009 = vmatpush3.bf16.msra.mxu1 %v28429_v1 }
 0xeef   :  { %22010 = vmatprep.subr.bf16.mxu1 %v28179_v40 }
 0xef2   :  { %22012 = vmatpush3.bf16.msra.mxu1 %v28430_v29 }
 0xef3   :  { %22013 = vmatprep.subr.bf16.mxu1 %v28179_v40 }
 0xef5   :  { %18496 = vmatmul.mubr.f32.vlgmr.msra.gmra.mrb[16].mxu1 %v26584_v33 }
 0xef6   :  { %22015 = vmatpush3.bf16.msra.mxu1 %v25867_v56  ;;  %18530 = vmatprep.mubr.msk.f32.mxu1 %vm23712_vm0, %v28198_v52 }
 0xef7   :  { %22016 = vmatprep.subr.bf16.mxu1 %v28179_v40 }
 0xefa   :  { %22018 = vmatpush3.bf16.msra.mxu1 %v25872_v21 }
 0xefb   :  { %22019 = vmatprep.subr.bf16.mxu1 %v28179_v40 }
 0xefe   :  { %22021 = vmatpush3.bf16.msra.mxu1 %v25878_v10 }
 0xeff   :  { %22022 = vmatprep.subr.bf16.mxu1 %v28179_v40 }
 0xf02   :  { %22024 = vmatpush3.bf16.msra.mxu1 %v25882_v60 }
 0xf03   :  { %22025 = vmatprep.subr.bf16.mxu1 %v28179_v40 }
 0xf06   :  { %22027 = vmatpush3.bf16.msra.mxu1 %v25894_v51 }
 0xf07   :  { %22028 = vmatprep.subr.bf16.mxu1 %v28179_v40 }
 0xf0a   :  { %22030 = vmatpush3.bf16.msra.mxu1 %v25902_v59 }
 0xf0b   :  { %22031 = vmatprep.subr.bf16.mxu1 %v28179_v40 }
 0xf0e   :  { %22033 = vmatpush3.bf16.msra.mxu1 %v25917_v54 }
 0xf0f   :  { %22034 = vmatprep.subr.bf16.mxu1 %v28179_v40 }
 0xf12   :  { %22036 = vmatpush3.bf16.msra.mxu1 %v25943_v36 }
 0xf13   :  { %22181 = vmatprep.subr.bf16.mxu1 %v28179_v40 }
 0xf15   :  { %18531 = vmatmul.mubr.f32.vlgmr.msra.gmra.mrb[16].mxu1 %v26584_v33 }
 0xf16   :  { %22183 = vmatpush3.bf16.msra.mxu1 %v25867_v56  ;;  %18775 = vmatprep.mubr.msk.f32.mxu1 %vm23712_vm0, %v28198_v52 }
 0xf17   :  { %22184 = vmatprep.subr.bf16.mxu1 %v28179_v40 }
 0xf1a   :  { %22186 = vmatpush3.bf16.msra.mxu1 %v25872_v21 }
 0xf1b   :  { %22187 = vmatprep.subr.bf16.mxu1 %v28179_v40 }
 0xf1e   :  { %22189 = vmatpush3.bf16.msra.mxu1 %v25878_v10 }
 0xf1f   :  { %22190 = vmatprep.subr.bf16.mxu1 %v28179_v40 }
 0xf22   :  { %22192 = vmatpush3.bf16.msra.mxu1 %v25882_v60 }
 0xf23   :  { %22193 = vmatprep.subr.bf16.mxu1 %v28179_v40 }
 0xf26   :  { %22195 = vmatpush3.bf16.msra.mxu1 %v25894_v51 }
 0xf27   :  { %22196 = vmatprep.subr.bf16.mxu1 %v28179_v40 }
 0xf2a   :  { %22198 = vmatpush3.bf16.msra.mxu1 %v25902_v59 }
 0xf2b   :  { %22199 = vmatprep.subr.bf16.mxu1 %v28179_v40 }
 0xf2e   :  { %22201 = vmatpush3.bf16.msra.mxu1 %v25917_v54 }
 0xf2f   :  { %22202 = vmatprep.subr.bf16.mxu1 %v28179_v40 }
 0xf32   :  { %22204 = vmatpush3.bf16.msra.mxu1 %v25943_v36 }
 0xf33   :  { %22205 = vmatprep.subr.bf16.mxu1 %v28179_v40 }
 0xfe8   :  { %v8552_v57 = vpop.f32.mrb[16].mxu1 }
 0xfe9   :  { %v8556_v58 = vadd.f32 %v26570_v43, %v8552_v57  ;;  %v18532_v46 = vpop.f32.mrb[17].mxu1 }
 0xfeb   :  { %23498 = vtanh.f32 %v8556_v58 }
 0xff5   :  { %v23499_v48 = vpop.eup %23498 }
 0xff6   :  { %v26699_v11 = vand.u32 4294901760, %v23499_v48 }
 0xff8   :  { %v8642_v44 = vsub.f32 %v23499_v48, %v26699_v11 }
 0xffa   :  { %v8643_v30 = vand.u32 4294901760, %v8642_v44 }
 0xffc   :  { %v8644_v19 = vsub.f32 %v8642_v44, %v8643_v30 }
 0xffe   :  { %v8645_v8 = vand.u32 4294901760, %v8644_v19 }
0x1000   :  { %18566 = vmatmul.mubr.f32.vlgmr.msra.gmra.mrb[18].mxu0 %v8645_v8 }
0x1001   :  { %22063 = vmatpush3.bf16.msra.mxu0 %v25957_v6  ;;  %18600 = vmatprep.mubr.msk.f32.mxu0 %vm23712_vm0, %v28198_v52 }
0x1002   :  { %22064 = vmatprep.subr.bf16.mxu0 %v28179_v40 }
0x1005   :  { %22066 = vmatpush3.bf16.msra.mxu0 %v25985_v47 }
0x1006   :  { %22067 = vmatprep.subr.bf16.mxu0 %v28179_v40 }
0x1009   :  { %22069 = vmatpush3.bf16.msra.mxu0 %v25999_v62 }
0x100a   :  { %22070 = vmatprep.subr.bf16.mxu0 %v28179_v40 }
0x100d   :  { %22072 = vmatpush3.bf16.msra.mxu0 %v26012_v31 }
0x100e   :  { %22073 = vmatprep.subr.bf16.mxu0 %v28179_v40 }
0x1011   :  { %22075 = vmatpush3.bf16.msra.mxu0 %v26034_v16 }
0x1012   :  { %22076 = vmatprep.subr.bf16.mxu0 %v28179_v40 }
0x1015   :  { %22078 = vmatpush3.bf16.msra.mxu0 %v28419_v0 }
0x1016   :  { %22079 = vmatprep.subr.bf16.mxu0 %v28179_v40 }
0x1019   :  { %22081 = vmatpush3.bf16.msra.mxu0 %v28420_v22 }
0x101a   :  { %22082 = vmatprep.subr.bf16.mxu0 %v28179_v40 }
0x101d   :  { %22084 = vmatpush3.bf16.msra.mxu0 %v28421_v63 }
0x101e   :  { %22085 = vmatprep.subr.bf16.mxu0 %v28179_v40 }
0x1020   :  { %18601 = vmatmul.mubr.f32.vlgmr.msra.gmra.mrb[18].mxu0 %v26699_v11 }
0x1021   :  { %22087 = vmatpush3.bf16.msra.mxu0 %v28422_v24  ;;  %18635 = vmatprep.mubr.msk.f32.mxu0 %vm23712_vm0, %v28198_v52 }
0x1022   :  { %22088 = vmatprep.subr.bf16.mxu0 %v28179_v40 }
0x1025   :  { %22090 = vmatpush3.bf16.msra.mxu0 %v28423_v13 }
0x1026   :  { %22091 = vmatprep.subr.bf16.mxu0 %v28179_v40 }
0x1029   :  { %22093 = vmatpush3.bf16.msra.mxu0 %v28424_v35 }
0x102a   :  { %22094 = vmatprep.subr.bf16.mxu0 %v28179_v40 }
0x102d   :  { %22096 = vmatpush3.bf16.msra.mxu0 %v28425_v42 }
0x102e   :  { %22097 = vmatprep.subr.bf16.mxu0 %v28179_v40 }
0x1031   :  { %22099 = vmatpush3.bf16.msra.mxu0 %v28426_v32 }
0x1032   :  { %22100 = vmatprep.subr.bf16.mxu0 %v28179_v40 }
0x1035   :  { %22102 = vmatpush3.bf16.msra.mxu0 %v28427_v26 }
0x1036   :  { %22103 = vmatprep.subr.bf16.mxu0 %v28179_v40 }
0x1039   :  { %22105 = vmatpush3.bf16.msra.mxu0 %v28428_v7 }
0x103a   :  { %22106 = vmatprep.subr.bf16.mxu0 %v28179_v40 }
0x103d   :  { %22108 = vmatpush3.bf16.msra.mxu0 %v26209_v55 }
0x103e   :  { %22109 = vmatprep.subr.bf16.mxu0 %v28179_v40 }
0x1040   :  { %18636 = vmatmul.mubr.f32.vlgmr.msra.gmra.mrb[18].mxu0 %v8642_v44 }
0x1041   :  { %22111 = vmatpush3.bf16.msra.mxu0 %v25867_v56  ;;  %18670 = vmatprep.mubr.msk.f32.mxu0 %vm23712_vm0, %v28198_v52 }
0x1042   :  { %22112 = vmatprep.subr.bf16.mxu0 %v28179_v40 }
0x1045   :  { %22114 = vmatpush3.bf16.msra.mxu0 %v25872_v21 }
0x1046   :  { %22115 = vmatprep.subr.bf16.mxu0 %v28179_v40 }
0x1049   :  { %22117 = vmatpush3.bf16.msra.mxu0 %v25878_v10 }
0x104a   :  { %22118 = vmatprep.subr.bf16.mxu0 %v28179_v40 }
0x104d   :  { %22120 = vmatpush3.bf16.msra.mxu0 %v25882_v60 }
0x104e   :  { %22121 = vmatprep.subr.bf16.mxu0 %v28179_v40 }
0x1051   :  { %22123 = vmatpush3.bf16.msra.mxu0 %v25894_v51 }
0x1052   :  { %22124 = vmatprep.subr.bf16.mxu0 %v28179_v40 }
0x1055   :  { %22126 = vmatpush3.bf16.msra.mxu0 %v25902_v59 }
0x1056   :  { %22127 = vmatprep.subr.bf16.mxu0 %v28179_v40 }
0x1059   :  { %22129 = vmatpush3.bf16.msra.mxu0 %v25917_v54 }
0x105a   :  { %22130 = vmatprep.subr.bf16.mxu0 %v28179_v40 }
0x105d   :  { %22132 = vmatpush3.bf16.msra.mxu0 %v25943_v36 }
0x105e   :  { %22133 = vmatprep.subr.bf16.mxu0 %v28179_v40 }
0x1060   :  { %18671 = vmatmul.mubr.f32.vlgmr.msra.gmra.mrb[18].mxu0 %v8643_v30 }
0x1061   :  { %22135 = vmatpush3.bf16.msra.mxu0 %v26304_v50  ;;  %18705 = vmatprep.mubr.msk.f32.mxu0 %vm23712_vm0, %v28198_v52 }
0x1062   :  { %22136 = vmatprep.subr.bf16.mxu0 %v28179_v40 }
0x1065   :  { %22138 = vmatpush3.bf16.msra.mxu0 %v26317_v5 }
0x1066   :  { %22139 = vmatprep.subr.bf16.mxu0 %v28179_v40 }
0x1069   :  { %22141 = vmatpush3.bf16.msra.mxu0 %v26331_v14 }
0x106a   :  { %22142 = vmatprep.subr.bf16.mxu0 %v28179_v40 }
0x106d   :  { %22144 = vmatpush3.bf16.msra.mxu0 %v26343_v15 }
0x106e   :  { %22145 = vmatprep.subr.bf16.mxu0 %v28179_v40 }
0x1071   :  { %22147 = vmatpush3.bf16.msra.mxu0 %v26351_v9 }
0x1072   :  { %22148 = vmatprep.subr.bf16.mxu0 %v28179_v40 }
0x1075   :  { %22150 = vmatpush3.bf16.msra.mxu0 %v26359_v53 }
0x1076   :  { %22151 = vmatprep.subr.bf16.mxu0 %v28179_v40 }
0x1079   :  { %22153 = vmatpush3.bf16.msra.mxu0 %v28429_v1 }
0x107a   :  { %22154 = vmatprep.subr.bf16.mxu0 %v28179_v40 }
0x107d   :  { %22156 = vmatpush3.bf16.msra.mxu0 %v28430_v29 }
0x107e   :  { %22157 = vmatprep.subr.bf16.mxu0 %v28179_v40 }
0x1080   :  { %18706 = vmatmul.mubr.f32.vlgmr.msra.gmra.mrb[18].mxu0 %v26699_v11 }
0x1081   :  { %22159 = vmatpush3.bf16.msra.mxu0 %v25867_v56  ;;  %18740 = vmatprep.mubr.msk.f32.mxu0 %vm23712_vm0, %v28198_v52 }
0x1082   :  { %22160 = vmatprep.subr.bf16.mxu0 %v28179_v40 }
0x1085   :  { %22162 = vmatpush3.bf16.msra.mxu0 %v25872_v21 }
0x1086   :  { %22163 = vmatprep.subr.bf16.mxu0 %v28179_v40 }
0x1089   :  { %22165 = vmatpush3.bf16.msra.mxu0 %v25878_v10 }
0x108a   :  { %22166 = vmatprep.subr.bf16.mxu0 %v28179_v40 }
0x108d   :  { %22168 = vmatpush3.bf16.msra.mxu0 %v25882_v60 }
0x108e   :  { %22169 = vmatprep.subr.bf16.mxu0 %v28179_v40 }
0x1091   :  { %22171 = vmatpush3.bf16.msra.mxu0 %v25894_v51 }
0x1092   :  { %22172 = vmatprep.subr.bf16.mxu0 %v28179_v40 }
0x1095   :  { %22174 = vmatpush3.bf16.msra.mxu0 %v25902_v59 }
0x1096   :  { %22175 = vmatprep.subr.bf16.mxu0 %v28179_v40 }
0x1099   :  { %22177 = vmatpush3.bf16.msra.mxu0 %v25917_v54 }
0x109a   :  { %22178 = vmatprep.subr.bf16.mxu0 %v28179_v40 }
0x109d   :  { %22180 = vmatpush3.bf16.msra.mxu0 %v25943_v36 }
0x109e   :  { %22325 = vmatprep.subr.bf16.mxu0 %v28179_v40 }
0x10a0   :  { %18741 = vmatmul.mubr.f32.vlgmr.msra.gmra.mrb[18].mxu0 %v26699_v11 }
0x10a1   :  { %22327 = vmatpush3.bf16.msra.mxu0 %v25867_v56  ;;  %18985 = vmatprep.mubr.msk.f32.mxu0 %vm23712_vm0, %v28198_v52 }
0x10a2   :  { %22328 = vmatprep.subr.bf16.mxu0 %v28179_v40 }
0x10a5   :  { %22330 = vmatpush3.bf16.msra.mxu0 %v25872_v21 }
0x10a6   :  { %22331 = vmatprep.subr.bf16.mxu0 %v28179_v40 }
0x10a9   :  { %22333 = vmatpush3.bf16.msra.mxu0 %v25878_v10 }
0x10aa   :  { %22334 = vmatprep.subr.bf16.mxu0 %v28179_v40 }
0x10ad   :  { %22336 = vmatpush3.bf16.msra.mxu0 %v25882_v60 }
0x10ae   :  { %22337 = vmatprep.subr.bf16.mxu0 %v28179_v40 }
0x10b1   :  { %22339 = vmatpush3.bf16.msra.mxu0 %v25894_v51 }
0x10b2   :  { %22340 = vmatprep.subr.bf16.mxu0 %v28179_v40 }
0x10b5   :  { %22342 = vmatpush3.bf16.msra.mxu0 %v25902_v59 }
0x10b6   :  { %22343 = vmatprep.subr.bf16.mxu0 %v28179_v40 }
0x10b9   :  { %22345 = vmatpush3.bf16.msra.mxu0 %v25917_v54 }
0x10ba   :  { %22346 = vmatprep.subr.bf16.mxu0 %v28179_v40 }
0x10bd   :  { %22348 = vmatpush3.bf16.msra.mxu0 %v25943_v36 }
0x10be   :  { %22349 = vmatprep.subr.bf16.mxu0 %v28179_v40 }
0x1173   :  { %v9197_v43 = vpop.f32.mrb[18].mxu0 }
0x1174   :  { %v9201_v18 = vadd.f32 %v26574_v12, %v9197_v43  ;;  %v18742_v3 = vpop.f32.mrb[19].mxu0 }
0x1176   :  { %23500 = vtanh.f32 %v9201_v18 }
0x1180   :  { %v23501_v28 = vpop.eup %23500 }
0x1181   :  { %v26814_v45 = vand.u32 4294901760, %v23501_v28 }
0x1183   :  { %v9287_v38 = vsub.f32 %v23501_v28, %v26814_v45 }
0x1185   :  { %v9288_v4 = vand.u32 4294901760, %v9287_v38 }
0x1187   :  { %v9289_v41 = vsub.f32 %v9287_v38, %v9288_v4 }
0x1189   :  { %v9290_v23 = vand.u32 4294901760, %v9289_v41 }
0x118b   :  { %18776 = vmatmul.mubr.f32.vlgmr.msra.gmra.mrb[18].mxu1 %v9290_v23 }
0x118c   :  { %22207 = vmatpush3.bf16.msra.mxu1 %v25957_v6  ;;  %18810 = vmatprep.mubr.msk.f32.mxu1 %vm23712_vm0, %v28198_v52 }
0x118d   :  { %22208 = vmatprep.subr.bf16.mxu1 %v28179_v40 }
0x1190   :  { %22210 = vmatpush3.bf16.msra.mxu1 %v25985_v47 }
0x1191   :  { %22211 = vmatprep.subr.bf16.mxu1 %v28179_v40 }
0x1194   :  { %22213 = vmatpush3.bf16.msra.mxu1 %v25999_v62 }
0x1195   :  { %22214 = vmatprep.subr.bf16.mxu1 %v28179_v40 }
0x1198   :  { %22216 = vmatpush3.bf16.msra.mxu1 %v26012_v31 }
0x1199   :  { %22217 = vmatprep.subr.bf16.mxu1 %v28179_v40 }
0x119c   :  { %22219 = vmatpush3.bf16.msra.mxu1 %v26034_v16 }
0x119d   :  { %22220 = vmatprep.subr.bf16.mxu1 %v28179_v40 }
0x11a0   :  { %22222 = vmatpush3.bf16.msra.mxu1 %v28419_v0 }
0x11a1   :  { %22223 = vmatprep.subr.bf16.mxu1 %v28179_v40 }
0x11a4   :  { %22225 = vmatpush3.bf16.msra.mxu1 %v28420_v22 }
0x11a5   :  { %22226 = vmatprep.subr.bf16.mxu1 %v28179_v40 }
0x11a8   :  { %22228 = vmatpush3.bf16.msra.mxu1 %v28421_v63 }
0x11a9   :  { %22229 = vmatprep.subr.bf16.mxu1 %v28179_v40 }
0x11ab   :  { %18811 = vmatmul.mubr.f32.vlgmr.msra.gmra.mrb[18].mxu1 %v26814_v45 }
0x11ac   :  { %22231 = vmatpush3.bf16.msra.mxu1 %v28422_v24  ;;  %18845 = vmatprep.mubr.msk.f32.mxu1 %vm23712_vm0, %v28198_v52 }
0x11ad   :  { %22232 = vmatprep.subr.bf16.mxu1 %v28179_v40 }
0x11b0   :  { %22234 = vmatpush3.bf16.msra.mxu1 %v28423_v13 }
0x11b1   :  { %22235 = vmatprep.subr.bf16.mxu1 %v28179_v40 }
0x11b4   :  { %22237 = vmatpush3.bf16.msra.mxu1 %v28424_v35 }
0x11b5   :  { %22238 = vmatprep.subr.bf16.mxu1 %v28179_v40 }
0x11b8   :  { %22240 = vmatpush3.bf16.msra.mxu1 %v28425_v42 }
0x11b9   :  { %22241 = vmatprep.subr.bf16.mxu1 %v28179_v40 }
0x11bc   :  { %22243 = vmatpush3.bf16.msra.mxu1 %v28426_v32 }
0x11bd   :  { %22244 = vmatprep.subr.bf16.mxu1 %v28179_v40 }
0x11c0   :  { %22246 = vmatpush3.bf16.msra.mxu1 %v28427_v26 }
0x11c1   :  { %22247 = vmatprep.subr.bf16.mxu1 %v28179_v40 }
0x11c4   :  { %22249 = vmatpush3.bf16.msra.mxu1 %v28428_v7 }
0x11c5   :  { %22250 = vmatprep.subr.bf16.mxu1 %v28179_v40 }
0x11c8   :  { %22252 = vmatpush3.bf16.msra.mxu1 %v26209_v55 }
0x11c9   :  { %22253 = vmatprep.subr.bf16.mxu1 %v28179_v40 }
0x11cb   :  { %18846 = vmatmul.mubr.f32.vlgmr.msra.gmra.mrb[18].mxu1 %v9287_v38 }
0x11cc   :  { %22255 = vmatpush3.bf16.msra.mxu1 %v25867_v56  ;;  %18880 = vmatprep.mubr.msk.f32.mxu1 %vm23712_vm0, %v28198_v52 }
0x11cd   :  { %22256 = vmatprep.subr.bf16.mxu1 %v28179_v40 }
0x11d0   :  { %22258 = vmatpush3.bf16.msra.mxu1 %v25872_v21 }
0x11d1   :  { %22259 = vmatprep.subr.bf16.mxu1 %v28179_v40 }
0x11d4   :  { %22261 = vmatpush3.bf16.msra.mxu1 %v25878_v10 }
0x11d5   :  { %22262 = vmatprep.subr.bf16.mxu1 %v28179_v40 }
0x11d8   :  { %22264 = vmatpush3.bf16.msra.mxu1 %v25882_v60 }
0x11d9   :  { %22265 = vmatprep.subr.bf16.mxu1 %v28179_v40 }
0x11dc   :  { %22267 = vmatpush3.bf16.msra.mxu1 %v25894_v51 }
0x11dd   :  { %22268 = vmatprep.subr.bf16.mxu1 %v28179_v40 }
0x11e0   :  { %22270 = vmatpush3.bf16.msra.mxu1 %v25902_v59 }
0x11e1   :  { %22271 = vmatprep.subr.bf16.mxu1 %v28179_v40 }
0x11e4   :  { %22273 = vmatpush3.bf16.msra.mxu1 %v25917_v54 }
0x11e5   :  { %22274 = vmatprep.subr.bf16.mxu1 %v28179_v40 }
0x11e8   :  { %22276 = vmatpush3.bf16.msra.mxu1 %v25943_v36 }
0x11e9   :  { %22277 = vmatprep.subr.bf16.mxu1 %v28179_v40 }
0x11eb   :  { %18881 = vmatmul.mubr.f32.vlgmr.msra.gmra.mrb[18].mxu1 %v9288_v4 }
0x11ec   :  { %22279 = vmatpush3.bf16.msra.mxu1 %v26304_v50  ;;  %18915 = vmatprep.mubr.msk.f32.mxu1 %vm23712_vm0, %v28198_v52 }
0x11ed   :  { %22280 = vmatprep.subr.bf16.mxu1 %v28179_v40 }
0x11f0   :  { %22282 = vmatpush3.bf16.msra.mxu1 %v26317_v5 }
0x11f1   :  { %22283 = vmatprep.subr.bf16.mxu1 %v28179_v40 }
0x11f4   :  { %22285 = vmatpush3.bf16.msra.mxu1 %v26331_v14 }
0x11f5   :  { %22286 = vmatprep.subr.bf16.mxu1 %v28179_v40 }
0x11f8   :  { %22288 = vmatpush3.bf16.msra.mxu1 %v26343_v15 }
0x11f9   :  { %22289 = vmatprep.subr.bf16.mxu1 %v28179_v40 }
0x11fc   :  { %22291 = vmatpush3.bf16.msra.mxu1 %v26351_v9 }
0x11fd   :  { %22292 = vmatprep.subr.bf16.mxu1 %v28179_v40 }
0x1200   :  { %22294 = vmatpush3.bf16.msra.mxu1 %v26359_v53 }
0x1201   :  { %22295 = vmatprep.subr.bf16.mxu1 %v28179_v40 }
0x1204   :  { %22297 = vmatpush3.bf16.msra.mxu1 %v28429_v1 }
0x1205   :  { %22298 = vmatprep.subr.bf16.mxu1 %v28179_v40 }
0x1208   :  { %22300 = vmatpush3.bf16.msra.mxu1 %v28430_v29 }
0x1209   :  { %22301 = vmatprep.subr.bf16.mxu1 %v28179_v40 }
0x120b   :  { %18916 = vmatmul.mubr.f32.vlgmr.msra.gmra.mrb[18].mxu1 %v26814_v45 }
0x120c   :  { %22303 = vmatpush3.bf16.msra.mxu1 %v25867_v56  ;;  %18950 = vmatprep.mubr.msk.f32.mxu1 %vm23712_vm0, %v28198_v52 }
0x120d   :  { %22304 = vmatprep.subr.bf16.mxu1 %v28179_v40 }
0x1210   :  { %22306 = vmatpush3.bf16.msra.mxu1 %v25872_v21 }
0x1211   :  { %22307 = vmatprep.subr.bf16.mxu1 %v28179_v40 }
0x1214   :  { %22309 = vmatpush3.bf16.msra.mxu1 %v25878_v10 }
0x1215   :  { %22310 = vmatprep.subr.bf16.mxu1 %v28179_v40 }
0x1218   :  { %22312 = vmatpush3.bf16.msra.mxu1 %v25882_v60 }
0x1219   :  { %22313 = vmatprep.subr.bf16.mxu1 %v28179_v40 }
0x121c   :  { %22315 = vmatpush3.bf16.msra.mxu1 %v25894_v51 }
0x121d   :  { %22316 = vmatprep.subr.bf16.mxu1 %v28179_v40 }
0x1220   :  { %22318 = vmatpush3.bf16.msra.mxu1 %v25902_v59 }
0x1221   :  { %22319 = vmatprep.subr.bf16.mxu1 %v28179_v40 }
0x1224   :  { %22321 = vmatpush3.bf16.msra.mxu1 %v25917_v54 }
0x1225   :  { %22322 = vmatprep.subr.bf16.mxu1 %v28179_v40 }
0x1228   :  { %22324 = vmatpush3.bf16.msra.mxu1 %v25943_v36 }
0x1229   :  { %22469 = vmatprep.subr.bf16.mxu1 %v28179_v40 }
0x122b   :  { %18951 = vmatmul.mubr.f32.vlgmr.msra.gmra.mrb[18].mxu1 %v26814_v45 }
0x122c   :  { %22471 = vmatpush3.bf16.msra.mxu1 %v25867_v56  ;;  %19195 = vmatprep.mubr.msk.f32.mxu1 %vm23712_vm0, %v28198_v52 }
0x122d   :  { %22472 = vmatprep.subr.bf16.mxu1 %v28179_v40 }
0x1230   :  { %22474 = vmatpush3.bf16.msra.mxu1 %v25872_v21 }
0x1231   :  { %22475 = vmatprep.subr.bf16.mxu1 %v28179_v40 }
0x1234   :  { %22477 = vmatpush3.bf16.msra.mxu1 %v25878_v10 }
0x1235   :  { %22478 = vmatprep.subr.bf16.mxu1 %v28179_v40 }
0x1238   :  { %22480 = vmatpush3.bf16.msra.mxu1 %v25882_v60 }
0x1239   :  { %22481 = vmatprep.subr.bf16.mxu1 %v28179_v40 }
0x123c   :  { %22483 = vmatpush3.bf16.msra.mxu1 %v25894_v51 }
0x123d   :  { %22484 = vmatprep.subr.bf16.mxu1 %v28179_v40 }
0x1240   :  { %22486 = vmatpush3.bf16.msra.mxu1 %v25902_v59 }
0x1241   :  { %22487 = vmatprep.subr.bf16.mxu1 %v28179_v40 }
0x1244   :  { %22489 = vmatpush3.bf16.msra.mxu1 %v25917_v54 }
0x1245   :  { %22490 = vmatprep.subr.bf16.mxu1 %v28179_v40 }
0x1248   :  { %22492 = vmatpush3.bf16.msra.mxu1 %v25943_v36 }
0x1249   :  { %22493 = vmatprep.subr.bf16.mxu1 %v28179_v40 }
0x12fe   :  { %v9842_v12 = vpop.f32.mrb[18].mxu1 }
0x12ff   :  { %v9846_v2 = vadd.f32 %v26572_v61, %v9842_v12  ;;  %v18952_v33 = vpop.f32.mrb[19].mxu1 }
0x1301   :  { %23502 = vtanh.f32 %v9846_v2 }
0x130b   :  { %v23503_v49 = vpop.eup %23502 }
0x130c   :  { %v26929_v20 = vand.u32 4294901760, %v23503_v49 }
0x130e   :  { %v9932_v37 = vsub.f32 %v23503_v49, %v26929_v20 }
0x1310   :  { %v9933_v39 = vand.u32 4294901760, %v9932_v37 }
0x1312   :  { %v9934_v57 = vsub.f32 %v9932_v37, %v9933_v39 }
0x1314   :  { %v9935_v58 = vand.u32 4294901760, %v9934_v57 }
0x1316   :  { %18986 = vmatmul.mubr.f32.vlgmr.msra.gmra.mrb[20].mxu0 %v9935_v58 }
0x1317   :  { %22351 = vmatpush3.bf16.msra.mxu0 %v25957_v6  ;;  %19020 = vmatprep.mubr.msk.f32.mxu0 %vm23712_vm0, %v28198_v52 }
0x1318   :  { %22352 = vmatprep.subr.bf16.mxu0 %v28179_v40 }
0x131b   :  { %22354 = vmatpush3.bf16.msra.mxu0 %v25985_v47 }
0x131c   :  { %22355 = vmatprep.subr.bf16.mxu0 %v28179_v40 }
0x131f   :  { %22357 = vmatpush3.bf16.msra.mxu0 %v25999_v62 }
0x1320   :  { %22358 = vmatprep.subr.bf16.mxu0 %v28179_v40 }
0x1323   :  { %22360 = vmatpush3.bf16.msra.mxu0 %v26012_v31 }
0x1324   :  { %22361 = vmatprep.subr.bf16.mxu0 %v28179_v40 }
0x1327   :  { %22363 = vmatpush3.bf16.msra.mxu0 %v26034_v16 }
0x1328   :  { %22364 = vmatprep.subr.bf16.mxu0 %v28179_v40 }
0x132b   :  { %22366 = vmatpush3.bf16.msra.mxu0 %v28419_v0 }
0x132c   :  { %22367 = vmatprep.subr.bf16.mxu0 %v28179_v40 }
0x132f   :  { %22369 = vmatpush3.bf16.msra.mxu0 %v28420_v22 }
0x1330   :  { %22370 = vmatprep.subr.bf16.mxu0 %v28179_v40 }
0x1333   :  { %22372 = vmatpush3.bf16.msra.mxu0 %v28421_v63 }
0x1334   :  { %22373 = vmatprep.subr.bf16.mxu0 %v28179_v40 }
0x1336   :  { %19021 = vmatmul.mubr.f32.vlgmr.msra.gmra.mrb[20].mxu0 %v26929_v20 }
0x1337   :  { %22375 = vmatpush3.bf16.msra.mxu0 %v28422_v24  ;;  %19055 = vmatprep.mubr.msk.f32.mxu0 %vm23712_vm0, %v28198_v52 }
0x1338   :  { %22376 = vmatprep.subr.bf16.mxu0 %v28179_v40 }
0x133b   :  { %22378 = vmatpush3.bf16.msra.mxu0 %v28423_v13 }
0x133c   :  { %22379 = vmatprep.subr.bf16.mxu0 %v28179_v40 }
0x133f   :  { %22381 = vmatpush3.bf16.msra.mxu0 %v28424_v35 }
0x1340   :  { %22382 = vmatprep.subr.bf16.mxu0 %v28179_v40 }
0x1343   :  { %22384 = vmatpush3.bf16.msra.mxu0 %v28425_v42 }
0x1344   :  { %22385 = vmatprep.subr.bf16.mxu0 %v28179_v40 }
0x1347   :  { %22387 = vmatpush3.bf16.msra.mxu0 %v28426_v32 }
0x1348   :  { %22388 = vmatprep.subr.bf16.mxu0 %v28179_v40 }
0x134b   :  { %22390 = vmatpush3.bf16.msra.mxu0 %v28427_v26 }
0x134c   :  { %22391 = vmatprep.subr.bf16.mxu0 %v28179_v40 }
0x134f   :  { %22393 = vmatpush3.bf16.msra.mxu0 %v28428_v7 }
0x1350   :  { %22394 = vmatprep.subr.bf16.mxu0 %v28179_v40 }
0x1353   :  { %22396 = vmatpush3.bf16.msra.mxu0 %v26209_v55 }
0x1354   :  { %22397 = vmatprep.subr.bf16.mxu0 %v28179_v40 }
0x1356   :  { %19056 = vmatmul.mubr.f32.vlgmr.msra.gmra.mrb[20].mxu0 %v9932_v37 }
0x1357   :  { %22399 = vmatpush3.bf16.msra.mxu0 %v25867_v56  ;;  %19090 = vmatprep.mubr.msk.f32.mxu0 %vm23712_vm0, %v28198_v52 }
0x1358   :  { %22400 = vmatprep.subr.bf16.mxu0 %v28179_v40 }
0x135b   :  { %22402 = vmatpush3.bf16.msra.mxu0 %v25872_v21 }
0x135c   :  { %22403 = vmatprep.subr.bf16.mxu0 %v28179_v40 }
0x135f   :  { %22405 = vmatpush3.bf16.msra.mxu0 %v25878_v10 }
0x1360   :  { %22406 = vmatprep.subr.bf16.mxu0 %v28179_v40 }
0x1363   :  { %22408 = vmatpush3.bf16.msra.mxu0 %v25882_v60 }
0x1364   :  { %22409 = vmatprep.subr.bf16.mxu0 %v28179_v40 }
0x1367   :  { %22411 = vmatpush3.bf16.msra.mxu0 %v25894_v51 }
0x1368   :  { %22412 = vmatprep.subr.bf16.mxu0 %v28179_v40 }
0x136b   :  { %22414 = vmatpush3.bf16.msra.mxu0 %v25902_v59 }
0x136c   :  { %22415 = vmatprep.subr.bf16.mxu0 %v28179_v40 }
0x136f   :  { %22417 = vmatpush3.bf16.msra.mxu0 %v25917_v54 }
0x1370   :  { %22418 = vmatprep.subr.bf16.mxu0 %v28179_v40 }
0x1373   :  { %22420 = vmatpush3.bf16.msra.mxu0 %v25943_v36 }
0x1374   :  { %22421 = vmatprep.subr.bf16.mxu0 %v28179_v40 }
0x1376   :  { %19091 = vmatmul.mubr.f32.vlgmr.msra.gmra.mrb[20].mxu0 %v9933_v39 }
0x1377   :  { %22423 = vmatpush3.bf16.msra.mxu0 %v26304_v50  ;;  %19125 = vmatprep.mubr.msk.f32.mxu0 %vm23712_vm0, %v28198_v52 }
0x1378   :  { %22424 = vmatprep.subr.bf16.mxu0 %v28179_v40 }
0x137b   :  { %22426 = vmatpush3.bf16.msra.mxu0 %v26317_v5 }
0x137c   :  { %22427 = vmatprep.subr.bf16.mxu0 %v28179_v40 }
0x137f   :  { %22429 = vmatpush3.bf16.msra.mxu0 %v26331_v14 }
0x1380   :  { %22430 = vmatprep.subr.bf16.mxu0 %v28179_v40 }
0x1383   :  { %22432 = vmatpush3.bf16.msra.mxu0 %v26343_v15 }
0x1384   :  { %22433 = vmatprep.subr.bf16.mxu0 %v28179_v40 }
0x1387   :  { %22435 = vmatpush3.bf16.msra.mxu0 %v26351_v9 }
0x1388   :  { %22436 = vmatprep.subr.bf16.mxu0 %v28179_v40 }
0x138b   :  { %22438 = vmatpush3.bf16.msra.mxu0 %v26359_v53 }
0x138c   :  { %22439 = vmatprep.subr.bf16.mxu0 %v28179_v40 }
0x138f   :  { %22441 = vmatpush3.bf16.msra.mxu0 %v28429_v1 }
0x1390   :  { %22442 = vmatprep.subr.bf16.mxu0 %v28179_v40 }
0x1393   :  { %22444 = vmatpush3.bf16.msra.mxu0 %v28430_v29 }
0x1394   :  { %22445 = vmatprep.subr.bf16.mxu0 %v28179_v40 }
0x1396   :  { %19126 = vmatmul.mubr.f32.vlgmr.msra.gmra.mrb[20].mxu0 %v26929_v20 }
0x1397   :  { %22447 = vmatpush3.bf16.msra.mxu0 %v25867_v56  ;;  %19160 = vmatprep.mubr.msk.f32.mxu0 %vm23712_vm0, %v28198_v52 }
0x1398   :  { %22448 = vmatprep.subr.bf16.mxu0 %v28179_v40 }
0x139b   :  { %22450 = vmatpush3.bf16.msra.mxu0 %v25872_v21 }
0x139c   :  { %22451 = vmatprep.subr.bf16.mxu0 %v28179_v40 }
0x139f   :  { %22453 = vmatpush3.bf16.msra.mxu0 %v25878_v10 }
0x13a0   :  { %22454 = vmatprep.subr.bf16.mxu0 %v28179_v40 }
0x13a3   :  { %22456 = vmatpush3.bf16.msra.mxu0 %v25882_v60 }
0x13a4   :  { %22457 = vmatprep.subr.bf16.mxu0 %v28179_v40 }
0x13a7   :  { %22459 = vmatpush3.bf16.msra.mxu0 %v25894_v51 }
0x13a8   :  { %22460 = vmatprep.subr.bf16.mxu0 %v28179_v40 }
0x13ab   :  { %22462 = vmatpush3.bf16.msra.mxu0 %v25902_v59 }
0x13ac   :  { %22463 = vmatprep.subr.bf16.mxu0 %v28179_v40 }
0x13af   :  { %22465 = vmatpush3.bf16.msra.mxu0 %v25917_v54 }
0x13b0   :  { %22466 = vmatprep.subr.bf16.mxu0 %v28179_v40 }
0x13b3   :  { %22468 = vmatpush3.bf16.msra.mxu0 %v25943_v36 }
0x13b4   :  { %22613 = vmatprep.subr.bf16.mxu0 %v28179_v40 }
0x13b6   :  { %19161 = vmatmul.mubr.f32.vlgmr.msra.gmra.mrb[20].mxu0 %v26929_v20 }
0x13b7   :  { %22615 = vmatpush3.bf16.msra.mxu0 %v25867_v56  ;;  %19405 = vmatprep.mubr.msk.f32.mxu0 %vm23712_vm0, %v28198_v52 }
0x13b8   :  { %22616 = vmatprep.subr.bf16.mxu0 %v28179_v40 }
0x13bb   :  { %22618 = vmatpush3.bf16.msra.mxu0 %v25872_v21 }
0x13bc   :  { %22619 = vmatprep.subr.bf16.mxu0 %v28179_v40 }
0x13bf   :  { %22621 = vmatpush3.bf16.msra.mxu0 %v25878_v10 }
0x13c0   :  { %22622 = vmatprep.subr.bf16.mxu0 %v28179_v40 }
0x13c3   :  { %22624 = vmatpush3.bf16.msra.mxu0 %v25882_v60 }
0x13c4   :  { %22625 = vmatprep.subr.bf16.mxu0 %v28179_v40 }
0x13c7   :  { %22627 = vmatpush3.bf16.msra.mxu0 %v25894_v51 }
0x13c8   :  { %22628 = vmatprep.subr.bf16.mxu0 %v28179_v40 }
0x13cb   :  { %22630 = vmatpush3.bf16.msra.mxu0 %v25902_v59 }
0x13cc   :  { %22631 = vmatprep.subr.bf16.mxu0 %v28179_v40 }
0x13cf   :  { %22633 = vmatpush3.bf16.msra.mxu0 %v25917_v54 }
0x13d0   :  { %22634 = vmatprep.subr.bf16.mxu0 %v28179_v40 }
0x13d3   :  { %22636 = vmatpush3.bf16.msra.mxu0 %v25943_v36 }
0x13d4   :  { %22637 = vmatprep.subr.bf16.mxu0 %v28179_v40 }
0x1489   :  { %v10487_v61 = vpop.f32.mrb[20].mxu0 }
0x148a   :  { %v10491_v46 = vadd.f32 %v26578_v34, %v10487_v61  ;;  %v19162_v48 = vpop.f32.mrb[21].mxu0 }
0x148c   :  { %23504 = vtanh.f32 %v10491_v46 }
0x1496   :  { %v23505_v11 = vpop.eup %23504 }
0x1497   :  { %v27044_v44 = vand.u32 4294901760, %v23505_v11 }
0x1499   :  { %v10577_v30 = vsub.f32 %v23505_v11, %v27044_v44 }
0x149b   :  { %v10578_v19 = vand.u32 4294901760, %v10577_v30 }
0x149d   :  { %v10579_v8 = vsub.f32 %v10577_v30, %v10578_v19 }
0x149f   :  { %v10580_v43 = vand.u32 4294901760, %v10579_v8 }
0x14a1   :  { %19196 = vmatmul.mubr.f32.vlgmr.msra.gmra.mrb[20].mxu1 %v10580_v43 }
0x14a2   :  { %22495 = vmatpush3.bf16.msra.mxu1 %v25957_v6  ;;  %19230 = vmatprep.mubr.msk.f32.mxu1 %vm23712_vm0, %v28198_v52 }
0x14a3   :  { %22496 = vmatprep.subr.bf16.mxu1 %v28179_v40 }
0x14a6   :  { %22498 = vmatpush3.bf16.msra.mxu1 %v25985_v47 }
0x14a7   :  { %22499 = vmatprep.subr.bf16.mxu1 %v28179_v40 }
0x14aa   :  { %22501 = vmatpush3.bf16.msra.mxu1 %v25999_v62 }
0x14ab   :  { %22502 = vmatprep.subr.bf16.mxu1 %v28179_v40 }
0x14ae   :  { %22504 = vmatpush3.bf16.msra.mxu1 %v26012_v31 }
0x14af   :  { %22505 = vmatprep.subr.bf16.mxu1 %v28179_v40 }
0x14b2   :  { %22507 = vmatpush3.bf16.msra.mxu1 %v26034_v16 }
0x14b3   :  { %22508 = vmatprep.subr.bf16.mxu1 %v28179_v40 }
0x14b6   :  { %22510 = vmatpush3.bf16.msra.mxu1 %v28419_v0 }
0x14b7   :  { %22511 = vmatprep.subr.bf16.mxu1 %v28179_v40 }
0x14ba   :  { %22513 = vmatpush3.bf16.msra.mxu1 %v28420_v22 }
0x14bb   :  { %22514 = vmatprep.subr.bf16.mxu1 %v28179_v40 }
0x14be   :  { %22516 = vmatpush3.bf16.msra.mxu1 %v28421_v63 }
0x14bf   :  { %22517 = vmatprep.subr.bf16.mxu1 %v28179_v40 }
0x14c1   :  { %19231 = vmatmul.mubr.f32.vlgmr.msra.gmra.mrb[20].mxu1 %v27044_v44 }
0x14c2   :  { %22519 = vmatpush3.bf16.msra.mxu1 %v28422_v24  ;;  %19265 = vmatprep.mubr.msk.f32.mxu1 %vm23712_vm0, %v28198_v52 }
0x14c3   :  { %22520 = vmatprep.subr.bf16.mxu1 %v28179_v40 }
0x14c6   :  { %22522 = vmatpush3.bf16.msra.mxu1 %v28423_v13 }
0x14c7   :  { %22523 = vmatprep.subr.bf16.mxu1 %v28179_v40 }
0x14ca   :  { %22525 = vmatpush3.bf16.msra.mxu1 %v28424_v35 }
0x14cb   :  { %22526 = vmatprep.subr.bf16.mxu1 %v28179_v40 }
0x14ce   :  { %22528 = vmatpush3.bf16.msra.mxu1 %v28425_v42 }
0x14cf   :  { %22529 = vmatprep.subr.bf16.mxu1 %v28179_v40 }
0x14d2   :  { %22531 = vmatpush3.bf16.msra.mxu1 %v28426_v32 }
0x14d3   :  { %22532 = vmatprep.subr.bf16.mxu1 %v28179_v40 }
0x14d6   :  { %22534 = vmatpush3.bf16.msra.mxu1 %v28427_v26 }
0x14d7   :  { %22535 = vmatprep.subr.bf16.mxu1 %v28179_v40 }
0x14da   :  { %22537 = vmatpush3.bf16.msra.mxu1 %v28428_v7 }
0x14db   :  { %22538 = vmatprep.subr.bf16.mxu1 %v28179_v40 }
0x14de   :  { %22540 = vmatpush3.bf16.msra.mxu1 %v26209_v55 }
0x14df   :  { %22541 = vmatprep.subr.bf16.mxu1 %v28179_v40 }
0x14e1   :  { %19266 = vmatmul.mubr.f32.vlgmr.msra.gmra.mrb[20].mxu1 %v10577_v30 }
0x14e2   :  { %22543 = vmatpush3.bf16.msra.mxu1 %v25867_v56  ;;  %19300 = vmatprep.mubr.msk.f32.mxu1 %vm23712_vm0, %v28198_v52 }
0x14e3   :  { %22544 = vmatprep.subr.bf16.mxu1 %v28179_v40 }
0x14e6   :  { %22546 = vmatpush3.bf16.msra.mxu1 %v25872_v21 }
0x14e7   :  { %22547 = vmatprep.subr.bf16.mxu1 %v28179_v40 }
0x14ea   :  { %22549 = vmatpush3.bf16.msra.mxu1 %v25878_v10 }
0x14eb   :  { %22550 = vmatprep.subr.bf16.mxu1 %v28179_v40 }
0x14ee   :  { %22552 = vmatpush3.bf16.msra.mxu1 %v25882_v60 }
0x14ef   :  { %22553 = vmatprep.subr.bf16.mxu1 %v28179_v40 }
0x14f2   :  { %22555 = vmatpush3.bf16.msra.mxu1 %v25894_v51 }
0x14f3   :  { %22556 = vmatprep.subr.bf16.mxu1 %v28179_v40 }
0x14f6   :  { %22558 = vmatpush3.bf16.msra.mxu1 %v25902_v59 }
0x14f7   :  { %22559 = vmatprep.subr.bf16.mxu1 %v28179_v40 }
0x14fa   :  { %22561 = vmatpush3.bf16.msra.mxu1 %v25917_v54 }
0x14fb   :  { %22562 = vmatprep.subr.bf16.mxu1 %v28179_v40 }
0x14fe   :  { %22564 = vmatpush3.bf16.msra.mxu1 %v25943_v36 }
0x14ff   :  { %22565 = vmatprep.subr.bf16.mxu1 %v28179_v40 }
0x1501   :  { %19301 = vmatmul.mubr.f32.vlgmr.msra.gmra.mrb[20].mxu1 %v10578_v19 }
0x1502   :  { %22567 = vmatpush3.bf16.msra.mxu1 %v26304_v50  ;;  %19335 = vmatprep.mubr.msk.f32.mxu1 %vm23712_vm0, %v28198_v52 }
0x1503   :  { %22568 = vmatprep.subr.bf16.mxu1 %v28179_v40 }
0x1506   :  { %22570 = vmatpush3.bf16.msra.mxu1 %v26317_v5 }
0x1507   :  { %22571 = vmatprep.subr.bf16.mxu1 %v28179_v40 }
0x150a   :  { %22573 = vmatpush3.bf16.msra.mxu1 %v26331_v14 }
0x150b   :  { %22574 = vmatprep.subr.bf16.mxu1 %v28179_v40 }
0x150e   :  { %22576 = vmatpush3.bf16.msra.mxu1 %v26343_v15 }
0x150f   :  { %22577 = vmatprep.subr.bf16.mxu1 %v28179_v40 }
0x1512   :  { %22579 = vmatpush3.bf16.msra.mxu1 %v26351_v9 }
0x1513   :  { %22580 = vmatprep.subr.bf16.mxu1 %v28179_v40 }
0x1516   :  { %22582 = vmatpush3.bf16.msra.mxu1 %v26359_v53 }
0x1517   :  { %22583 = vmatprep.subr.bf16.mxu1 %v28179_v40 }
0x151a   :  { %22585 = vmatpush3.bf16.msra.mxu1 %v28429_v1 }
0x151b   :  { %22586 = vmatprep.subr.bf16.mxu1 %v28179_v40 }
0x151e   :  { %22588 = vmatpush3.bf16.msra.mxu1 %v28430_v29 }
0x151f   :  { %22589 = vmatprep.subr.bf16.mxu1 %v28179_v40 }
0x1521   :  { %19336 = vmatmul.mubr.f32.vlgmr.msra.gmra.mrb[20].mxu1 %v27044_v44 }
0x1522   :  { %22591 = vmatpush3.bf16.msra.mxu1 %v25867_v56  ;;  %19370 = vmatprep.mubr.msk.f32.mxu1 %vm23712_vm0, %v28198_v52 }
0x1523   :  { %22592 = vmatprep.subr.bf16.mxu1 %v28179_v40 }
0x1526   :  { %22594 = vmatpush3.bf16.msra.mxu1 %v25872_v21 }
0x1527   :  { %22595 = vmatprep.subr.bf16.mxu1 %v28179_v40 }
0x152a   :  { %22597 = vmatpush3.bf16.msra.mxu1 %v25878_v10 }
0x152b   :  { %22598 = vmatprep.subr.bf16.mxu1 %v28179_v40 }
0x152e   :  { %22600 = vmatpush3.bf16.msra.mxu1 %v25882_v60 }
0x152f   :  { %22601 = vmatprep.subr.bf16.mxu1 %v28179_v40 }
0x1532   :  { %22603 = vmatpush3.bf16.msra.mxu1 %v25894_v51 }
0x1533   :  { %22604 = vmatprep.subr.bf16.mxu1 %v28179_v40 }
0x1536   :  { %22606 = vmatpush3.bf16.msra.mxu1 %v25902_v59 }
0x1537   :  { %22607 = vmatprep.subr.bf16.mxu1 %v28179_v40 }
0x153a   :  { %22609 = vmatpush3.bf16.msra.mxu1 %v25917_v54 }
0x153b   :  { %22610 = vmatprep.subr.bf16.mxu1 %v28179_v40 }
0x153e   :  { %22612 = vmatpush3.bf16.msra.mxu1 %v25943_v36 }
0x153f   :  { %22757 = vmatprep.subr.bf16.mxu1 %v28179_v40 }
0x1541   :  { %19371 = vmatmul.mubr.f32.vlgmr.msra.gmra.mrb[20].mxu1 %v27044_v44  ;;  %v12443_v44 = vld [vmem:[#allocation13 + $0x70] sm:$0xff] }
0x1542   :  { %22759 = vmatpush3.bf16.msra.mxu1 %v25867_v56  ;;  %19615 = vmatprep.mubr.msk.f32.mxu1 %vm23712_vm0, %v28198_v52 }
0x1543   :  { %22760 = vmatprep.subr.bf16.mxu1 %v28179_v40 }
0x1546   :  { %22762 = vmatpush3.bf16.msra.mxu1 %v25872_v21 }
0x1547   :  { %22763 = vmatprep.subr.bf16.mxu1 %v28179_v40 }
0x154a   :  { %22765 = vmatpush3.bf16.msra.mxu1 %v25878_v10 }
0x154b   :  { %22766 = vmatprep.subr.bf16.mxu1 %v28179_v40 }
0x154e   :  { %22768 = vmatpush3.bf16.msra.mxu1 %v25882_v60 }
0x154f   :  { %22769 = vmatprep.subr.bf16.mxu1 %v28179_v40 }
0x1552   :  { %22771 = vmatpush3.bf16.msra.mxu1 %v25894_v51 }
0x1553   :  { %22772 = vmatprep.subr.bf16.mxu1 %v28179_v40 }
0x1556   :  { %22774 = vmatpush3.bf16.msra.mxu1 %v25902_v59 }
0x1557   :  { %22775 = vmatprep.subr.bf16.mxu1 %v28179_v40 }
0x155a   :  { %22777 = vmatpush3.bf16.msra.mxu1 %v25917_v54 }
0x155b   :  { %22778 = vmatprep.subr.bf16.mxu1 %v28179_v40 }
0x155e   :  { %22780 = vmatpush3.bf16.msra.mxu1 %v25943_v36 }
0x155f   :  { %22781 = vmatprep.subr.bf16.mxu1 %v28179_v40 }
0x1614   :  { %v11132_v34 = vpop.f32.mrb[20].mxu1 }
0x1615   :  { %v11136_v18 = vadd.f32 %v26576_v25, %v11132_v34  ;;  %v19372_v3 = vpop.f32.mrb[21].mxu1  ;;  %v12444_v34 = vld [vmem:[#allocation13 + $0x78] sm:$0xff] }
0x1617   :  { %23506 = vtanh.f32 %v11136_v18 }
0x1621   :  { %v23507_v28 = vpop.eup %23506 }
0x1622   :  { %v27159_v45 = vand.u32 4294901760, %v23507_v28 }
0x1624   :  { %v11222_v38 = vsub.f32 %v23507_v28, %v27159_v45 }
0x1626   :  { %v11223_v4 = vand.u32 4294901760, %v11222_v38 }
0x1628   :  { %v11224_v41 = vsub.f32 %v11222_v38, %v11223_v4 }
0x162a   :  { %v11225_v23 = vand.u32 4294901760, %v11224_v41 }
0x162c   :  { %19406 = vmatmul.mubr.f32.vlgmr.msra.gmra.mrb[22].mxu0 %v11225_v23  ;;  %v12495_v23 = vand.u32 4294901760, %v12443_v44 }
0x162d   :  { %22639 = vmatpush3.bf16.msra.mxu0 %v25957_v6  ;;  %19440 = vmatprep.mubr.msk.f32.mxu0 %vm23712_vm0, %v28198_v52 }
0x162e   :  { %22640 = vmatprep.subr.bf16.mxu0 %v28179_v40 }
0x1631   :  { %22642 = vmatpush3.bf16.msra.mxu0 %v25985_v47 }
0x1632   :  { %22643 = vmatprep.subr.bf16.mxu0 %v28179_v40 }
0x1635   :  { %22645 = vmatpush3.bf16.msra.mxu0 %v25999_v62 }
0x1636   :  { %22646 = vmatprep.subr.bf16.mxu0 %v28179_v40 }
0x1639   :  { %22648 = vmatpush3.bf16.msra.mxu0 %v26012_v31 }
0x163a   :  { %22649 = vmatprep.subr.bf16.mxu0 %v28179_v40 }
0x163d   :  { %22651 = vmatpush3.bf16.msra.mxu0 %v26034_v16 }
0x163e   :  { %22652 = vmatprep.subr.bf16.mxu0 %v28179_v40 }
0x1641   :  { %22654 = vmatpush3.bf16.msra.mxu0 %v28419_v0 }
0x1642   :  { %22655 = vmatprep.subr.bf16.mxu0 %v28179_v40 }
0x1645   :  { %22657 = vmatpush3.bf16.msra.mxu0 %v28420_v22 }
0x1646   :  { %22658 = vmatprep.subr.bf16.mxu0 %v28179_v40 }
0x1649   :  { %22660 = vmatpush3.bf16.msra.mxu0 %v28421_v63 }
0x164a   :  { %22661 = vmatprep.subr.bf16.mxu0 %v28179_v40 }
0x164c   :  { %19441 = vmatmul.mubr.f32.vlgmr.msra.gmra.mrb[22].mxu0 %v27159_v45 }
0x164d   :  { %22663 = vmatpush3.bf16.msra.mxu0 %v28422_v24  ;;  %19475 = vmatprep.mubr.msk.f32.mxu0 %vm23712_vm0, %v28198_v52 }
0x164e   :  { %22664 = vmatprep.subr.bf16.mxu0 %v28179_v40 }
0x1651   :  { %22666 = vmatpush3.bf16.msra.mxu0 %v28423_v13 }
0x1652   :  { %22667 = vmatprep.subr.bf16.mxu0 %v28179_v40 }
0x1655   :  { %22669 = vmatpush3.bf16.msra.mxu0 %v28424_v35 }
0x1656   :  { %22670 = vmatprep.subr.bf16.mxu0 %v28179_v40 }
0x1659   :  { %22672 = vmatpush3.bf16.msra.mxu0 %v28425_v42 }
0x165a   :  { %22673 = vmatprep.subr.bf16.mxu0 %v28179_v40 }
0x165d   :  { %22675 = vmatpush3.bf16.msra.mxu0 %v28426_v32 }
0x165e   :  { %22676 = vmatprep.subr.bf16.mxu0 %v28179_v40 }
0x1661   :  { %22678 = vmatpush3.bf16.msra.mxu0 %v28427_v26 }
0x1662   :  { %22679 = vmatprep.subr.bf16.mxu0 %v28179_v40 }
0x1665   :  { %22681 = vmatpush3.bf16.msra.mxu0 %v28428_v7 }
0x1666   :  { %22682 = vmatprep.subr.bf16.mxu0 %v28179_v40 }
0x1669   :  { %22684 = vmatpush3.bf16.msra.mxu0 %v26209_v55 }
0x166a   :  { %22685 = vmatprep.subr.bf16.mxu0 %v28179_v40 }
0x166c   :  { %19476 = vmatmul.mubr.f32.vlgmr.msra.gmra.mrb[22].mxu0 %v11222_v38 }
0x166d   :  { %22687 = vmatpush3.bf16.msra.mxu0 %v25867_v56  ;;  %19510 = vmatprep.mubr.msk.f32.mxu0 %vm23712_vm0, %v28198_v52 }
0x166e   :  { %22688 = vmatprep.subr.bf16.mxu0 %v28179_v40 }
0x1671   :  { %22690 = vmatpush3.bf16.msra.mxu0 %v25872_v21 }
0x1672   :  { %22691 = vmatprep.subr.bf16.mxu0 %v28179_v40 }
0x1675   :  { %22693 = vmatpush3.bf16.msra.mxu0 %v25878_v10 }
0x1676   :  { %22694 = vmatprep.subr.bf16.mxu0 %v28179_v40 }
0x1679   :  { %22696 = vmatpush3.bf16.msra.mxu0 %v25882_v60 }
0x167a   :  { %22697 = vmatprep.subr.bf16.mxu0 %v28179_v40 }
0x167d   :  { %22699 = vmatpush3.bf16.msra.mxu0 %v25894_v51 }
0x167e   :  { %22700 = vmatprep.subr.bf16.mxu0 %v28179_v40 }
0x1681   :  { %22702 = vmatpush3.bf16.msra.mxu0 %v25902_v59 }
0x1682   :  { %22703 = vmatprep.subr.bf16.mxu0 %v28179_v40 }
0x1685   :  { %22705 = vmatpush3.bf16.msra.mxu0 %v25917_v54 }
0x1686   :  { %22706 = vmatprep.subr.bf16.mxu0 %v28179_v40 }
0x1689   :  { %22708 = vmatpush3.bf16.msra.mxu0 %v25943_v36 }
0x168a   :  { %22709 = vmatprep.subr.bf16.mxu0 %v28179_v40 }
0x168c   :  { %19511 = vmatmul.mubr.f32.vlgmr.msra.gmra.mrb[22].mxu0 %v11223_v4 }
0x168d   :  { %22711 = vmatpush3.bf16.msra.mxu0 %v26304_v50  ;;  %19545 = vmatprep.mubr.msk.f32.mxu0 %vm23712_vm0, %v28198_v52 }
0x168e   :  { %22712 = vmatprep.subr.bf16.mxu0 %v28179_v40 }
0x1691   :  { %22714 = vmatpush3.bf16.msra.mxu0 %v26317_v5 }
0x1692   :  { %22715 = vmatprep.subr.bf16.mxu0 %v28179_v40 }
0x1695   :  { %22717 = vmatpush3.bf16.msra.mxu0 %v26331_v14 }
0x1696   :  { %22718 = vmatprep.subr.bf16.mxu0 %v28179_v40 }
0x1699   :  { %22720 = vmatpush3.bf16.msra.mxu0 %v26343_v15 }
0x169a   :  { %22721 = vmatprep.subr.bf16.mxu0 %v28179_v40 }
0x169d   :  { %22723 = vmatpush3.bf16.msra.mxu0 %v26351_v9 }
0x169e   :  { %22724 = vmatprep.subr.bf16.mxu0 %v28179_v40 }
0x16a1   :  { %22726 = vmatpush3.bf16.msra.mxu0 %v26359_v53 }
0x16a2   :  { %22727 = vmatprep.subr.bf16.mxu0 %v28179_v40 }
0x16a5   :  { %22729 = vmatpush3.bf16.msra.mxu0 %v28429_v1 }
0x16a6   :  { %22730 = vmatprep.subr.bf16.mxu0 %v28179_v40 }
0x16a9   :  { %22732 = vmatpush3.bf16.msra.mxu0 %v28430_v29 }
0x16aa   :  { %22733 = vmatprep.subr.bf16.mxu0 %v28179_v40 }
0x16ac   :  { %19546 = vmatmul.mubr.f32.vlgmr.msra.gmra.mrb[22].mxu0 %v27159_v45 }
0x16ad   :  { %22735 = vmatpush3.bf16.msra.mxu0 %v25867_v56  ;;  %19580 = vmatprep.mubr.msk.f32.mxu0 %vm23712_vm0, %v28198_v52 }
0x16ae   :  { %22736 = vmatprep.subr.bf16.mxu0 %v28179_v40 }
0x16b1   :  { %22738 = vmatpush3.bf16.msra.mxu0 %v25872_v21 }
0x16b2   :  { %22739 = vmatprep.subr.bf16.mxu0 %v28179_v40 }
0x16b5   :  { %22741 = vmatpush3.bf16.msra.mxu0 %v25878_v10 }
0x16b6   :  { %22742 = vmatprep.subr.bf16.mxu0 %v28179_v40 }
0x16b9   :  { %22744 = vmatpush3.bf16.msra.mxu0 %v25882_v60 }
0x16ba   :  { %22745 = vmatprep.subr.bf16.mxu0 %v28179_v40 }
0x16bd   :  { %22747 = vmatpush3.bf16.msra.mxu0 %v25894_v51 }
0x16be   :  { %22748 = vmatprep.subr.bf16.mxu0 %v28179_v40 }
0x16c1   :  { %22750 = vmatpush3.bf16.msra.mxu0 %v25902_v59 }
0x16c2   :  { %22751 = vmatprep.subr.bf16.mxu0 %v28179_v40 }
0x16c5   :  { %22753 = vmatpush3.bf16.msra.mxu0 %v25917_v54 }
0x16c6   :  { %22754 = vmatprep.subr.bf16.mxu0 %v28179_v40 }
0x16c9   :  { %22756 = vmatpush3.bf16.msra.mxu0 %v25943_v36 }
0x16ca   :  { %22901 = vmatprep.subr.bf16.mxu0 %v28179_v40 }
0x16cc   :  { %19581 = vmatmul.mubr.f32.vlgmr.msra.gmra.mrb[22].mxu0 %v27159_v45 }
0x16cd   :  { %19825 = vmatprep.mubr.msk.f32.mxu0 %vm23712_vm0, %v28198_v52 }
0x179f   :  { %v11777_v25 = vpop.f32.mrb[22].mxu0 }
0x17a0   :  { %v11781_v12 = vadd.f32 %v26582_v27, %v11777_v25  ;;  %v19582_v2 = vpop.f32.mrb[23].mxu0  ;;  %v12437_v27 = vld [vmem:[#allocation13 + $0x40] sm:$0xff]  ;;  %v12498_v25 = vand.u32 4294901760, %v12444_v34 }
0x17a2   :  { %23508 = vtanh.f32 %v11781_v12 }
0x17ac   :  { %v23509_v33 = vpop.eup %23508 }
0x17ad   :  { %v27258_v49 = vand.u32 4294901760, %v23509_v33 }
0x17af   :  { %v11867_v20 = vsub.f32 %v23509_v33, %v27258_v49  ;;  %v27413_v33 = vsub.f32 %v12443_v44, %v12495_v23 }
0x17b1   :  { %v11868_v37 = vand.u32 4294901760, %v11867_v20 }
0x17b3   :  { %v11869_v39 = vsub.f32 %v11867_v20, %v11868_v37 }
0x17b5   :  { %v11870_v57 = vand.u32 4294901760, %v11869_v39 }
0x17b7   :  { %19616 = vmatmul.mubr.f32.vlgmr.msra.gmra.mrb[22].mxu1 %v11870_v57 }
0x17b8   :  { %22783 = vmatpush3.bf16.msra.mxu1 %v25957_v6  ;;  %19650 = vmatprep.mubr.msk.f32.mxu1 %vm23712_vm0, %v28198_v52  ;;  %v12432_v6 = vld [vmem:[#allocation13 + $0x18] sm:$0xff] }
0x17b9   :  { %22784 = vmatprep.subr.bf16.mxu1 %v28179_v40 }
0x17bc   :  { %22786 = vmatpush3.bf16.msra.mxu1 %v25985_v47  ;;  %v12462_v47 = vand.u32 4294901760, %v12432_v6 }
0x17bd   :  { %22787 = vmatprep.subr.bf16.mxu1 %v28179_v40 }
0x17be   :  { %v27386_v11 = vsub.f32 %v12432_v6, %v12462_v47 }
0x17c0   :  { %22789 = vmatpush3.bf16.msra.mxu1 %v25999_v62  ;;  %v12433_v62 = vld [vmem:[#allocation13 + $0x20] sm:$0xff] }
0x17c1   :  { %22790 = vmatprep.subr.bf16.mxu1 %v28179_v40 }
0x17c4   :  { %22792 = vmatpush3.bf16.msra.mxu1 %v26012_v31  ;;  %v12434_v31 = vld [vmem:[#allocation13 + $0x28] sm:$0xff] }
0x17c5   :  { %22793 = vmatprep.subr.bf16.mxu1 %v28179_v40 }
0x17c8   :  { %22795 = vmatpush3.bf16.msra.mxu1 %v26034_v16  ;;  %v12465_v16 = vand.u32 4294901760, %v12433_v62 }
0x17c9   :  { %22796 = vmatprep.subr.bf16.mxu1 %v28179_v40 }
0x17ca   :  { %v27388_v30 = vsub.f32 %v12433_v62, %v12465_v16 }
0x17cc   :  { %22798 = vmatpush3.bf16.msra.mxu1 %v28419_v0  ;;  %v12438_v0 = vld [vmem:[#allocation13 + $0x48] sm:$0xff]  ;;  %v12574_v62 = vand.u32 4294901760, %v27388_v30 }
0x17cd   :  { %22799 = vmatprep.subr.bf16.mxu1 %v28179_v40 }
0x17d0   :  { %22801 = vmatpush3.bf16.msra.mxu1 %v28420_v22  ;;  %v12477_v22 = vand.u32 4294901760, %v12437_v27 }
0x17d1   :  { %22802 = vmatprep.subr.bf16.mxu1 %v28179_v40 }
0x17d2   :  { %v27396_v18 = vsub.f32 %v12437_v27, %v12477_v22 }
0x17d4   :  { %22804 = vmatpush3.bf16.msra.mxu1 %v28421_v63  ;;  %v12480_v63 = vand.u32 4294901760, %v12438_v0 }
0x17d5   :  { %22805 = vmatprep.subr.bf16.mxu1 %v28179_v40 }
0x17d6   :  { %v27398_v3 = vsub.f32 %v12438_v0, %v12480_v63 }
0x17d7   :  { %19651 = vmatmul.mubr.f32.vlgmr.msra.gmra.mrb[22].mxu1 %v27258_v49 }
0x17d8   :  { %22807 = vmatpush3.bf16.msra.mxu1 %v28422_v24  ;;  %19685 = vmatprep.mubr.msk.f32.mxu1 %vm23712_vm0, %v28198_v52  ;;  %v27372_v24 = vpack.c.bf16 %v12480_v63, %v12477_v22 }
0x17d9   :  { %22808 = vmatprep.subr.bf16.mxu1 %v28179_v40 }
0x17dc   :  { %22810 = vmatpush3.bf16.msra.mxu1 %v28423_v13  ;;  %v12439_v13 = vld [vmem:[#allocation13 + $0x50] sm:$0xff] }
0x17dd   :  { %22811 = vmatprep.subr.bf16.mxu1 %v28179_v40 }
0x17e0   :  { %22813 = vmatpush3.bf16.msra.mxu1 %v28424_v35  ;;  %v12440_v35 = vld [vmem:[#allocation13 + $0x58] sm:$0xff] }
0x17e1   :  { %22814 = vmatprep.subr.bf16.mxu1 %v28179_v40 }
0x17e4   :  { %22816 = vmatpush3.bf16.msra.mxu1 %v28425_v42  ;;  %v12483_v42 = vand.u32 4294901760, %v12439_v13 }
0x17e5   :  { %22817 = vmatprep.subr.bf16.mxu1 %v28179_v40 }
0x17e6   :  { %v27400_v28 = vsub.f32 %v12439_v13, %v12483_v42 }
0x17e8   :  { %22819 = vmatpush3.bf16.msra.mxu1 %v28426_v32  ;;  %v12486_v32 = vand.u32 4294901760, %v12440_v35 }
0x17e9   :  { %22820 = vmatprep.subr.bf16.mxu1 %v28179_v40 }
0x17ea   :  { %v27402_v45 = vsub.f32 %v12440_v35, %v12486_v32 }
0x17ec   :  { %22822 = vmatpush3.bf16.msra.mxu1 %v28427_v26  ;;  %v27376_v26 = vpack.c.bf16 %v12486_v32, %v12483_v42  ;;  %v12602_v42 = vand.u32 4294901760, %v27396_v18  ;;  %v12609_v32 = vand.u32 4294901760, %v27398_v3 }
0x17ed   :  { %22823 = vmatprep.subr.bf16.mxu1 %v28179_v40 }
0x17f0   :  { %22825 = vmatpush3.bf16.msra.mxu1 %v28428_v7  ;;  %v12441_v7 = vld [vmem:[#allocation13 + $0x60] sm:$0xff] }
0x17f1   :  { %22826 = vmatprep.subr.bf16.mxu1 %v28179_v40 }
0x17f4   :  { %22828 = vmatpush3.bf16.msra.mxu1 %v26209_v55  ;;  %v12468_v55 = vand.u32 4294901760, %v12434_v31 }
0x17f5   :  { %22829 = vmatprep.subr.bf16.mxu1 %v28179_v40 }
0x17f6   :  { %v27390_v19 = vsub.f32 %v12434_v31, %v12468_v55 }
0x17f7   :  { %19686 = vmatmul.mubr.f32.vlgmr.msra.gmra.mrb[22].mxu1 %v11867_v20  ;;  %v27418_v20 = vsub.f32 %v12444_v34, %v12498_v25  ;;  %v12616_v34 = vand.u32 4294901760, %v27400_v28 }
0x17f8   :  { %22831 = vmatpush3.bf16.msra.mxu1 %v25867_v56  ;;  %19720 = vmatprep.mubr.msk.f32.mxu1 %vm23712_vm0, %v28198_v52  ;;  %v12581_v31 = vand.u32 4294901760, %v27390_v19 }
0x17f9   :  { %22832 = vmatprep.subr.bf16.mxu1 %v28179_v40 }
0x17fc   :  { %22834 = vmatpush3.bf16.msra.mxu1 %v25872_v21 }
0x17fd   :  { %22835 = vmatprep.subr.bf16.mxu1 %v28179_v40 }
0x1800   :  { %22837 = vmatpush3.bf16.msra.mxu1 %v25878_v10 }
0x1801   :  { %22838 = vmatprep.subr.bf16.mxu1 %v28179_v40 }
0x1804   :  { %22840 = vmatpush3.bf16.msra.mxu1 %v25882_v60 }
0x1805   :  { %22841 = vmatprep.subr.bf16.mxu1 %v28179_v40 }
0x1808   :  { %22843 = vmatpush3.bf16.msra.mxu1 %v25894_v51 }
0x1809   :  { %22844 = vmatprep.subr.bf16.mxu1 %v28179_v40 }
0x180c   :  { %22846 = vmatpush3.bf16.msra.mxu1 %v25902_v59 }
0x180d   :  { %22847 = vmatprep.subr.bf16.mxu1 %v28179_v40 }
0x1810   :  { %22849 = vmatpush3.bf16.msra.mxu1 %v25917_v54 }
0x1811   :  { %22850 = vmatprep.subr.bf16.mxu1 %v28179_v40 }
0x1814   :  { %22852 = vmatpush3.bf16.msra.mxu1 %v25943_v36 }
0x1815   :  { %22853 = vmatprep.subr.bf16.mxu1 %v28179_v40 }
0x1817   :  { %19721 = vmatmul.mubr.f32.vlgmr.msra.gmra.mrb[22].mxu1 %v11868_v37 }
0x1818   :  { %22855 = vmatpush3.bf16.msra.mxu1 %v26304_v50  ;;  %19755 = vmatprep.mubr.msk.f32.mxu1 %vm23712_vm0, %v28198_v52  ;;  %v12435_v50 = vld [vmem:[#allocation13 + $0x30] sm:$0xff] }
0x1819   :  { %22856 = vmatprep.subr.bf16.mxu1 %v28179_v40 }
0x181c   :  { %22858 = vmatpush3.bf16.msra.mxu1 %v26317_v5  ;;  %v27364_v5 = vpack.c.bf16 %v12468_v55, %v12465_v16  ;;  %v12575_v55 = vsub.f32 %v27388_v30, %v12574_v62 }
0x181d   :  { %22859 = vmatprep.subr.bf16.mxu1 %v28179_v40 }
0x1820   :  { %22861 = vmatpush3.bf16.msra.mxu1 %v26331_v14  ;;  %v12436_v14 = vld [vmem:[#allocation13 + $0x38] sm:$0xff] }
0x1821   :  { %22862 = vmatprep.subr.bf16.mxu1 %v28179_v40 }
0x1824   :  { %22864 = vmatpush3.bf16.msra.mxu1 %v26343_v15  ;;  %v12471_v15 = vand.u32 4294901760, %v12435_v50 }
0x1825   :  { %22865 = vmatprep.subr.bf16.mxu1 %v28179_v40 }
0x1826   :  { %v27392_v8 = vsub.f32 %v12435_v50, %v12471_v15  ;;  %v12582_v50 = vsub.f32 %v27390_v19, %v12581_v31 }
0x1828   :  { %22867 = vmatpush3.bf16.msra.mxu1 %v26351_v9  ;;  %v12474_v9 = vand.u32 4294901760, %v12436_v14 }
0x1829   :  { %22868 = vmatprep.subr.bf16.mxu1 %v28179_v40 }
0x182a   :  { %v27394_v43 = vsub.f32 %v12436_v14, %v12474_v9  ;;  %v12576_v14 = vand.u32 4294901760, %v12575_v55 }
0x182c   :  { %22870 = vmatpush3.bf16.msra.mxu1 %v26359_v53  ;;  %v27368_v53 = vpack.c.bf16 %v12474_v9, %v12471_v15  ;;  %v12583_v15 = vand.u32 4294901760, %v12582_v50  ;;  %v12588_v9 = vand.u32 4294901760, %v27392_v8  ;;  %v12595_v27 = vand.u32 4294901760, %v27394_v43 }
0x182d   :  { %22871 = vmatprep.subr.bf16.mxu1 %v28179_v40 }
0x182e   :  { %v22932_v0 = vpack.c.bf16 %v12583_v15, %v12576_v14  ;;  %v12589_v22 = vsub.f32 %v27392_v8, %v12588_v9  ;;  %v12596_v63 = vsub.f32 %v27394_v43, %v12595_v27  ;;  %v28144_v15 = vand.u32 4294901760, %v27413_v33 }
0x1830   :  { %22873 = vmatpush3.bf16.msra.mxu1 %v28429_v1  ;;  %v12442_v1 = vld [vmem:[#allocation13 + $0x68] sm:$0xff]  ;;  %v12590_v13 = vand.u32 4294901760, %v12589_v22  ;;  %v12597_v35 = vand.u32 4294901760, %v12596_v63  ;;  %v28143_v22 = vand.u32 4294901760, %v27418_v20 }
0x1831   :  { %22874 = vmatprep.subr.bf16.mxu1 %v28179_v40  ;;  %v12492_v58 = vand.u32 4294901760, %v12442_v1 }
0x1833   :  { %v27408_v41 = vsub.f32 %v12442_v1, %v12492_v58  ;;  %v12603_v1 = vsub.f32 %v27396_v18, %v12602_v42 }
0x1834   :  { %22876 = vmatpush3.bf16.msra.mxu1 %v28430_v29  ;;  %v12489_v29 = vand.u32 4294901760, %v12441_v7 }
0x1835   :  { %22877 = vmatprep.subr.bf16.mxu1 %v28179_v40 }
0x1836   :  { %v27404_v38 = vpack.c.bf16 %v12492_v58, %v12489_v29  ;;  %v27406_v4 = vsub.f32 %v12441_v7, %v12489_v29  ;;  %v22935_v7 = vpack.c.bf16 %v12597_v35, %v12590_v13  ;;  %v12610_v29 = vsub.f32 %v27398_v3, %v12609_v32 }
0x1837   :  { %19756 = vmatmul.mubr.f32.vlgmr.msra.gmra.mrb[22].mxu1 %v27258_v49  ;;  %v12604_v58 = vand.u32 4294901760, %v12603_v1  ;;  %v12645_v13 = vsub.f32 %v27413_v33, %v28144_v15  ;;  %v12652_v35 = vsub.f32 %v27418_v20, %v28143_v22 }
0x1838   :  { %22879 = vmatpush3.bf16.msra.mxu1 %v25867_v56  ;;  %19790 = vmatprep.mubr.msk.f32.mxu1 %vm23712_vm0, %v28198_v52  ;;  %v12429_v56 = vld [vmem:[#allocation13] sm:$0xff]  ;;  %v12611_v44 = vand.u32 4294901760, %v12610_v29 }
0x1839   :  { %22880 = vmatprep.subr.bf16.mxu1 %v28179_v40  ;;  %v12646_v1 = vand.u32 4294901760, %v12645_v13  ;;  %v12653_v29 = vand.u32 4294901760, %v12652_v35 }
0x183c   :  { %22882 = vmatpush3.bf16.msra.mxu1 %v25872_v21  ;;  %v12430_v21 = vld [vmem:[#allocation13 + $0x8] sm:$0xff] }
0x183d   :  { %22883 = vmatprep.subr.bf16.mxu1 %v28179_v40 }
0x1840   :  { %22885 = vmatpush3.bf16.msra.mxu1 %v25878_v10  ;;  %v12453_v10 = vand.u32 4294901760, %v12429_v56 }
0x1841   :  { %22886 = vmatprep.subr.bf16.mxu1 %v28179_v40 }
0x1842   :  { %v27380_v61 = vsub.f32 %v12429_v56, %v12453_v10  ;;  %v12567_v56 = vand.u32 4294901760, %v27386_v11 }
0x1844   :  { %22888 = vmatpush3.bf16.msra.mxu1 %v25882_v60  ;;  %v12456_v60 = vand.u32 4294901760, %v12430_v21  ;;  %v12546_v12 = vand.u32 4294901760, %v27380_v61 }
0x1845   :  { %22889 = vmatprep.subr.bf16.mxu1 %v28179_v40 }
0x1846   :  { %v27382_v46 = vsub.f32 %v12430_v21, %v12456_v60  ;;  %v12547_v37 = vsub.f32 %v27380_v61, %v12546_v12 }
0x1848   :  { %22891 = vmatpush3.bf16.msra.mxu1 %v25894_v51  ;;  %v27356_v51 = vpack.c.bf16 %v12456_v60, %v12453_v10  ;;  %v12553_v2 = vand.u32 4294901760, %v27382_v46  ;;  %v12548_v21 = vand.u32 4294901760, %v12547_v37  ;;  %v12617_v37 = vsub.f32 %v27400_v28, %v12616_v34 }
0x1849   :  { %22892 = vmatprep.subr.bf16.mxu1 %v28179_v40 }
0x184a   :  { %22903 = vmatpush3.bf16.msra.mxu0 %v27356_v51  ;;  %v12554_v39 = vsub.f32 %v27382_v46, %v12553_v2 }
0x184b   :  { %22904 = vmatprep.subr.bf16.mxu0 %v28179_v40 }
0x184c   :  { %22894 = vmatpush3.bf16.msra.mxu1 %v25902_v59  ;;  %v12431_v59 = vld [vmem:[#allocation13 + $0x10] sm:$0xff]  ;;  %v12555_v10 = vand.u32 4294901760, %v12554_v39 }
0x184d   :  { %22895 = vmatprep.subr.bf16.mxu1 %v28179_v40 }
0x184e   :  { %v27436_v6 = vpack.c.bf16 %v12555_v10, %v12548_v21  ;;  %v12618_v21 = vand.u32 4294901760, %v12617_v37 }
0x1850   :  { %22897 = vmatpush3.bf16.msra.mxu1 %v25917_v54  ;;  %v12459_v54 = vand.u32 4294901760, %v12431_v59 }
0x1851   :  { %22898 = vmatprep.subr.bf16.mxu1 %v28179_v40 }
0x1852   :  { %v27384_v48 = vsub.f32 %v12431_v59, %v12459_v54  ;;  %v12568_v59 = vsub.f32 %v27386_v11, %v12567_v56 }
0x1854   :  { %22900 = vmatpush3.bf16.msra.mxu1 %v25943_v36  ;;  %v27360_v36 = vpack.c.bf16 %v12462_v47, %v12459_v54  ;;  %v12560_v57 = vand.u32 4294901760, %v27384_v48  ;;  %v12569_v47 = vand.u32 4294901760, %v12568_v59  ;;  %v28145_v59 = vand.u32 4294901760, %v27408_v41 }
0x1855   :  { %23045 = vmatprep.subr.bf16.mxu1 %v28179_v40  ;;  %v22953_v37 = vpack.c.bf16 %v27386_v11, %v27384_v48  ;;  %v28431_v11 = vand.u32 4294901760, %v27402_v45 }
0x1856   :  { %22906 = vmatpush3.bf16.msra.mxu0 %v27360_v36  ;;  %v12561_v60 = vsub.f32 %v27384_v48, %v12560_v57  ;;  %v12638_v55 = vsub.f32 %v27408_v41, %v28145_v59  ;;  %v23010_v48 = vpack.c.bf16 %v12609_v32, %v12602_v42  ;;  %v13107_v42 = vld [vmem:[#allocation15 + $0x68] sm:$0xff] }
0x1857   :  { %19791 = vmatmul.mubr.f32.vlgmr.msra.gmra.mrb[22].mxu1 %v27258_v49  ;;  %22907 = vmatprep.subr.bf16.mxu0 %v28179_v40  ;;  %v27416_v49 = vpack.c.bf16 %v12498_v25, %v12495_v23  ;;  %v28147_v23 = vand.u32 4294901760, %v27402_v45  ;;  %v22938_v25 = vpack.c.bf16 %v12611_v44, %v12604_v58  ;;  %v22947_v58 = vpack.c.bf16 %v12653_v29, %v12646_v1 }
0x1858   :  { %20035 = vmatprep.mubr.msk.f32.mxu1 %vm23712_vm0, %v28198_v52  ;;  %v12562_v54 = vand.u32 4294901760, %v12561_v60  ;;  %v28146_v60 = vand.u32 4294901760, %v27406_v4  ;;  %v12639_v14 = vand.u32 4294901760, %v12638_v55  ;;  %v22950_v44 = vpack.c.bf16 %v27382_v46, %v27380_v61 }
0x1859   :  { %v12624_v39 = vsub.f32 %v27402_v45, %v28147_v23  ;;  %v22968_v55 = vpack.c.bf16 %v27408_v41, %v27406_v4  ;;  %v23004_v61 = vpack.c.bf16 %v12581_v31, %v12574_v62  ;;  %v23007_v46 = vpack.c.bf16 %v12595_v27, %v12588_v9  ;;  %v13106_v27 = vld [vmem:[#allocation15 + $0x60] sm:$0xff] }
0x185a   :  { %22909 = vmatpush3.bf16.msra.mxu0 %v27364_v5  ;;  %v27440_v16 = vpack.c.bf16 %v12569_v47, %v12562_v54  ;;  %v12631_v47 = vsub.f32 %v27406_v4, %v28146_v60  ;;  %v13154_v32 = vand.u32 4294901760, %v13106_v27 }
0x185b   :  { %22910 = vmatprep.subr.bf16.mxu0 %v28179_v40  ;;  %v12625_v10 = vand.u32 4294901760, %v12624_v39  ;;  %v22956_v39 = vpack.c.bf16 %v27390_v19, %v27388_v30  ;;  %v23013_v30 = vpack.c.bf16 %v28431_v11, %v12616_v34  ;;  %v28432_v19 = vand.u32 4294901760, %v27406_v4 }
0x185c   :  { %v12632_v50 = vand.u32 4294901760, %v12631_v47  ;;  %v22965_v47 = vpack.c.bf16 %v27402_v45, %v27400_v28  ;;  %v13101_v45 = vld [vmem:[#allocation15 + $0x38] sm:$0xff]  ;;  %v13157_v34 = vand.u32 4294901760, %v13107_v42 }
0x185d   :  { %v22941_v54 = vpack.c.bf16 %v12625_v10, %v12618_v21  ;;  %v22959_v21 = vpack.c.bf16 %v27394_v43, %v27392_v8  ;;  %v22962_v10 = vpack.c.bf16 %v27398_v3, %v27396_v18  ;;  %v28433_v8 = vand.u32 4294901760, %v27408_v41  ;;  %v13102_v41 = vld [vmem:[#allocation15 + $0x40] sm:$0xff] }
0x185e   :  { %22912 = vmatpush3.bf16.msra.mxu0 %v27368_v53  ;;  %v22944_v63 = vpack.c.bf16 %v12639_v14, %v12632_v50  ;;  %v22971_v50 = vpack.c.bf16 %v27418_v20, %v27413_v33  ;;  %v28434_v18 = vand.u32 4294901760, %v27413_v33  ;;  %v28435_v3 = vand.u32 4294901760, %v27418_v20 }
0x185f   :  { %22913 = vmatprep.subr.bf16.mxu0 %v28179_v40  ;;  %v23016_v43 = vpack.c.bf16 %v28433_v8, %v28432_v19  ;;  %v13139_v4 = vand.u32 4294901760, %v13101_v45  ;;  %v13142_v33 = vand.u32 4294901760, %v13102_v41 }
0x1862   :  { %22915 = vmatpush3.bf16.msra.mxu0 %v27372_v24 }
0x1863   :  { %22916 = vmatprep.subr.bf16.mxu0 %v28179_v40 }
0x1866   :  { %22918 = vmatpush3.bf16.msra.mxu0 %v27376_v26 }
0x1867   :  { %22919 = vmatprep.subr.bf16.mxu0 %v28179_v40 }
0x186a   :  { %22921 = vmatpush3.bf16.msra.mxu0 %v27404_v38 }
0x186b   :  { %22922 = vmatprep.subr.bf16.mxu0 %v28179_v40 }
0x186e   :  { %22924 = vmatpush3.bf16.msra.mxu0 %v27416_v49 }
0x186f   :  { %22925 = vmatprep.subr.bf16.mxu0 %v28179_v40 }
0x192a   :  { %v12422_v14 = vpop.f32.mrb[22].mxu1 }
0x192b   :  { %v12426_v13 = vadd.f32 %v26580_v17, %v12422_v14  ;;  %v19792_v35 = vpop.f32.mrb[23].mxu1  ;;  %v13094_v17 = vld [vmem:[#allocation15] sm:$0xff] }
0x192d   :  { %23510 = vtanh.f32 %v12426_v13 }
0x1937   :  { %v23511_v1 = vpop.eup %23510 }
0x1938   :  { %23512 = vtanh.f32 %v23511_v1 }
0x1942   :  { %v23513_v29 = vpop.eup %23512 }
0x1943   :  { %v27505_v22 = vand.u32 4294901760, %v23513_v29 }
0x1945   :  { %v27508_v15 = vsub.f32 %v23513_v29, %v27505_v22 }
0x1947   :  { %v12535_v59 = vand.u32 4294901760, %v27508_v15 }
0x1949   :  { %v12536_v60 = vsub.f32 %v27508_v15, %v12535_v59 }
0x194b   :  { %v12537_v23 = vand.u32 4294901760, %v12536_v60 }
0x194d   :  { %19826 = vmatmul.mubr.f32.vlgmr.msra.gmra.mrb[24].mxu0 %v12537_v23  ;;  %v13097_v23 = vld [vmem:[#allocation15 + $0x18] sm:$0xff] }
0x194e   :  { %22927 = vmatpush3.bf16.msra.mxu0 %v27436_v6  ;;  %19860 = vmatprep.mubr.msk.f32.mxu0 %vm23712_vm0, %v28198_v52  ;;  %v13095_v6 = vld [vmem:[#allocation15 + $0x8] sm:$0xff]  ;;  %v13127_v60 = vand.u32 4294901760, %v13097_v23 }
0x194f   :  { %22928 = vmatprep.subr.bf16.mxu0 %v28179_v40 }
0x1950   :  { %v27538_v13 = vsub.f32 %v13097_v23, %v13127_v60 }
0x1952   :  { %22930 = vmatpush3.bf16.msra.mxu0 %v27440_v16  ;;  %v13096_v16 = vld [vmem:[#allocation15 + $0x10] sm:$0xff] }
0x1953   :  { %22931 = vmatprep.subr.bf16.mxu0 %v28179_v40 }
0x1956   :  { %22933 = vmatpush3.bf16.msra.mxu0 %v22932_v0  ;;  %v13118_v0 = vand.u32 4294901760, %v13094_v17 }
0x1957   :  { %22934 = vmatprep.subr.bf16.mxu0 %v28179_v40 }
0x195a   :  { %22936 = vmatpush3.bf16.msra.mxu0 %v22935_v7  ;;  %v13121_v7 = vand.u32 4294901760, %v13095_v6 }
0x195b   :  { %22937 = vmatprep.subr.bf16.mxu0 %v28179_v40 }
0x195e   :  { %22939 = vmatpush3.bf16.msra.mxu0 %v22938_v25  ;;  %v13124_v25 = vand.u32 4294901760, %v13096_v16 }
0x195f   :  { %22940 = vmatprep.subr.bf16.mxu0 %v28179_v40 }
0x1960   :  { %v27536_v14 = vsub.f32 %v13096_v16, %v13124_v25 }
0x1962   :  { %22942 = vmatpush3.bf16.msra.mxu0 %v22941_v54  ;;  %v27530_v54 = vpack.c.bf16 %v13121_v7, %v13118_v0 }
0x1963   :  { %22943 = vmatprep.subr.bf16.mxu0 %v28179_v40 }
0x1964   :  { %23047 = vmatpush3.bf16.msra.mxu1 %v27530_v54 }
0x1965   :  { %23048 = vmatprep.subr.bf16.mxu1 %v28179_v40 }
0x1966   :  { %22945 = vmatpush3.bf16.msra.mxu0 %v22944_v63  ;;  %v27532_v63 = vsub.f32 %v13094_v17, %v13118_v0  ;;  %v27677_v17 = vsub.f32 %v13106_v27, %v13154_v32 }
0x1967   :  { %22946 = vmatprep.subr.bf16.mxu0 %v28179_v40 }
0x196a   :  { %22948 = vmatpush3.bf16.msra.mxu0 %v22947_v58  ;;  %v27534_v58 = vsub.f32 %v13095_v6, %v13121_v7  ;;  %v27679_v6 = vsub.f32 %v13107_v42, %v13157_v34  ;;  %v13211_v7 = vand.u32 4294901760, %v27532_v63 }
0x196b   :  { %22949 = vmatprep.subr.bf16.mxu0 %v28179_v40 }
0x196c   :  { %v13218_v23 = vand.u32 4294901760, %v27534_v58 }
0x196d   :  { %19861 = vmatmul.mubr.f32.vlgmr.msra.gmra.mrb[24].mxu0 %v27505_v22 }
0x196e   :  { %22951 = vmatpush3.bf16.msra.mxu0 %v22950_v44  ;;  %19895 = vmatprep.mubr.msk.f32.mxu0 %vm23712_vm0, %v28198_v52  ;;  %v27541_v44 = vpack.c.bf16 %v13127_v60, %v13124_v25 }
0x196f   :  { %22952 = vmatprep.subr.bf16.mxu0 %v28179_v40 }
0x1970   :  { %23050 = vmatpush3.bf16.msra.mxu1 %v27541_v44 }
0x1971   :  { %23051 = vmatprep.subr.bf16.mxu1 %v28179_v40 }
0x1972   :  { %22954 = vmatpush3.bf16.msra.mxu0 %v22953_v37  ;;  %v22998_v37 = vpack.c.bf16 %v12553_v2, %v12546_v12  ;;  %v23019_v12 = vpack.c.bf16 %v28435_v3, %v28434_v18  ;;  %v13103_v2 = vld [vmem:[#allocation15 + $0x48] sm:$0xff] }
0x1973   :  { %22955 = vmatprep.subr.bf16.mxu0 %v28179_v40 }
0x1976   :  { %22957 = vmatpush3.bf16.msra.mxu0 %v22956_v39  ;;  %v23001_v39 = vpack.c.bf16 %v12567_v56, %v12560_v57  ;;  %v13104_v57 = vld [vmem:[#allocation15 + $0x50] sm:$0xff]  ;;  %v13105_v56 = vld [vmem:[#allocation15 + $0x58] sm:$0xff] }
0x1977   :  { %22958 = vmatprep.subr.bf16.mxu0 %v28179_v40  ;;  %v13148_v62 = vand.u32 4294901760, %v13104_v57  ;;  %v13151_v31 = vand.u32 4294901760, %v13105_v56 }
0x1979   :  { %v27653_v9 = vpack.c.bf16 %v13151_v31, %v13148_v62  ;;  %v27672_v1 = vsub.f32 %v13104_v57, %v13148_v62  ;;  %v27674_v29 = vsub.f32 %v13105_v56, %v13151_v31 }
0x197a   :  { %22960 = vmatpush3.bf16.msra.mxu0 %v22959_v21 }
0x197b   :  { %22961 = vmatprep.subr.bf16.mxu0 %v28179_v40 }
0x197e   :  { %22963 = vmatpush3.bf16.msra.mxu0 %v22962_v10 }
0x197f   :  { %22964 = vmatprep.subr.bf16.mxu0 %v28179_v40 }
0x1982   :  { %22966 = vmatpush3.bf16.msra.mxu0 %v22965_v47 }
0x1983   :  { %22967 = vmatprep.subr.bf16.mxu0 %v28179_v40 }
0x1986   :  { %22969 = vmatpush3.bf16.msra.mxu0 %v22968_v55  ;;  %v27665_v55 = vsub.f32 %v13101_v45, %v13139_v4 }
0x1987   :  { %22970 = vmatprep.subr.bf16.mxu0 %v28179_v40 }
0x198a   :  { %22972 = vmatpush3.bf16.msra.mxu0 %v22971_v50  ;;  %v27668_v50 = vsub.f32 %v13102_v41, %v13142_v33 }
0x198b   :  { %22973 = vmatprep.subr.bf16.mxu0 %v28179_v40 }
0x198c   :  { %v13267_v56 = vand.u32 4294901760, %v27668_v50 }
0x198d   :  { %19896 = vmatmul.mubr.f32.vlgmr.msra.gmra.mrb[24].mxu0 %v27508_v15  ;;  %v13108_v15 = vld [vmem:[#allocation15 + $0x70] sm:$0xff] }
0x198e   :  { %22975 = vmatpush3.bf16.msra.mxu0 %v27356_v51  ;;  %19930 = vmatprep.mubr.msk.f32.mxu0 %vm23712_vm0, %v28198_v52  ;;  %v13160_v16 = vand.u32 4294901760, %v13108_v15  ;;  %v13268_v27 = vsub.f32 %v27668_v50, %v13267_v56 }
0x198f   :  { %22976 = vmatprep.subr.bf16.mxu0 %v28179_v40 }
0x1990   :  { %v27685_v60 = vsub.f32 %v13108_v15, %v13160_v16  ;;  %v13281_v15 = vand.u32 4294901760, %v27672_v1 }
0x1992   :  { %22978 = vmatpush3.bf16.msra.mxu0 %v27360_v36 }
0x1993   :  { %22979 = vmatprep.subr.bf16.mxu0 %v28179_v40 }
0x1996   :  { %22981 = vmatpush3.bf16.msra.mxu0 %v27364_v5 }
0x1997   :  { %22982 = vmatprep.subr.bf16.mxu0 %v28179_v40 }
0x199a   :  { %22984 = vmatpush3.bf16.msra.mxu0 %v27368_v53 }
0x199b   :  { %22985 = vmatprep.subr.bf16.mxu0 %v28179_v40 }
0x199e   :  { %22987 = vmatpush3.bf16.msra.mxu0 %v27372_v24 }
0x199f   :  { %22988 = vmatprep.subr.bf16.mxu0 %v28179_v40 }
0x19a2   :  { %22990 = vmatpush3.bf16.msra.mxu0 %v27376_v26 }
0x19a3   :  { %22991 = vmatprep.subr.bf16.mxu0 %v28179_v40 }
0x19a6   :  { %22993 = vmatpush3.bf16.msra.mxu0 %v27404_v38 }
0x19a7   :  { %22994 = vmatprep.subr.bf16.mxu0 %v28179_v40 }
0x19aa   :  { %22996 = vmatpush3.bf16.msra.mxu0 %v27416_v49 }
0x19ab   :  { %22997 = vmatprep.subr.bf16.mxu0 %v28179_v40 }
0x19ad   :  { %19931 = vmatmul.mubr.f32.vlgmr.msra.gmra.mrb[24].mxu0 %v12535_v59  ;;  %v27657_v59 = vpack.c.bf16 %v13157_v34, %v13154_v32  ;;  %v13269_v32 = vand.u32 4294901760, %v13268_v27 }
0x19ae   :  { %22999 = vmatpush3.bf16.msra.mxu0 %v22998_v37  ;;  %19965 = vmatprep.mubr.msk.f32.mxu0 %vm23712_vm0, %v28198_v52 }
0x19af   :  { %23000 = vmatprep.subr.bf16.mxu0 %v28179_v40 }
0x19b2   :  { %23002 = vmatpush3.bf16.msra.mxu0 %v23001_v39  ;;  %v13212_v39 = vsub.f32 %v27532_v63, %v13211_v7 }
0x19b3   :  { %23003 = vmatprep.subr.bf16.mxu0 %v28179_v40 }
0x19b4   :  { %v13213_v11 = vand.u32 4294901760, %v13212_v39 }
0x19b6   :  { %23005 = vmatpush3.bf16.msra.mxu0 %v23004_v61  ;;  %v13219_v61 = vsub.f32 %v27534_v58, %v13218_v23 }
0x19b7   :  { %23006 = vmatprep.subr.bf16.mxu0 %v28179_v40 }
0x19ba   :  { %23008 = vmatpush3.bf16.msra.mxu0 %v23007_v46  ;;  %v13225_v46 = vand.u32 4294901760, %v27536_v14 }
0x19bb   :  { %23009 = vmatprep.subr.bf16.mxu0 %v28179_v40 }
0x19bc   :  { %v13226_v19 = vsub.f32 %v27536_v14, %v13225_v46 }
0x19be   :  { %23011 = vmatpush3.bf16.msra.mxu0 %v23010_v48  ;;  %v13232_v48 = vand.u32 4294901760, %v27538_v13  ;;  %v13227_v18 = vand.u32 4294901760, %v13226_v19  ;;  %v28150_v19 = vand.u32 4294901760, %v27679_v6 }
0x19bf   :  { %23012 = vmatprep.subr.bf16.mxu0 %v28179_v40 }
0x19c0   :  { %v13233_v8 = vsub.f32 %v27538_v13, %v13232_v48 }
0x19c2   :  { %23014 = vmatpush3.bf16.msra.mxu0 %v23013_v30  ;;  %v13220_v30 = vand.u32 4294901760, %v13219_v61  ;;  %v13234_v3 = vand.u32 4294901760, %v13233_v8 }
0x19c3   :  { %23015 = vmatprep.subr.bf16.mxu0 %v28179_v40 }
0x19c6   :  { %23017 = vmatpush3.bf16.msra.mxu0 %v23016_v43  ;;  %v27705_v43 = vpack.c.bf16 %v13220_v30, %v13213_v11  ;;  %v28151_v30 = vand.u32 4294901760, %v27677_v17 }
0x19c7   :  { %23018 = vmatprep.subr.bf16.mxu0 %v28179_v40 }
0x19ca   :  { %23020 = vmatpush3.bf16.msra.mxu0 %v23019_v12 }
0x19cb   :  { %23021 = vmatprep.subr.bf16.mxu0 %v28179_v40 }
0x19cd   :  { %19966 = vmatmul.mubr.f32.vlgmr.msra.gmra.mrb[24].mxu0 %v27505_v22 }
0x19ce   :  { %23023 = vmatpush3.bf16.msra.mxu0 %v27356_v51  ;;  %20000 = vmatprep.mubr.msk.f32.mxu0 %vm23712_vm0, %v28198_v52  ;;  %v13098_v51 = vld [vmem:[#allocation15 + $0x20] sm:$0xff] }
0x19cf   :  { %23024 = vmatprep.subr.bf16.mxu0 %v28179_v40 }
0x19d2   :  { %23026 = vmatpush3.bf16.msra.mxu0 %v27360_v36  ;;  %v13099_v36 = vld [vmem:[#allocation15 + $0x28] sm:$0xff] }
0x19d3   :  { %23027 = vmatprep.subr.bf16.mxu0 %v28179_v40 }
0x19d6   :  { %23029 = vmatpush3.bf16.msra.mxu0 %v27364_v5  ;;  %v13130_v5 = vand.u32 4294901760, %v13098_v51 }
0x19d7   :  { %23030 = vmatprep.subr.bf16.mxu0 %v28179_v40 }
0x19d8   :  { %v27659_v21 = vsub.f32 %v13098_v51, %v13130_v5 }
0x19da   :  { %23032 = vmatpush3.bf16.msra.mxu0 %v27368_v53  ;;  %v13133_v53 = vand.u32 4294901760, %v13099_v36  ;;  %v13239_v12 = vand.u32 4294901760, %v27659_v21 }
0x19db   :  { %23033 = vmatprep.subr.bf16.mxu0 %v28179_v40 }
0x19dc   :  { %v27641_v28 = vpack.c.bf16 %v13133_v53, %v13130_v5  ;;  %v27661_v10 = vsub.f32 %v13099_v36, %v13133_v53  ;;  %v27709_v36 = vpack.c.bf16 %v13234_v3, %v13227_v18  ;;  %v13240_v5 = vsub.f32 %v27659_v21, %v13239_v12 }
0x19dd   :  { %v13296_v18 = vsub.f32 %v27677_v17, %v28151_v30  ;;  %v13303_v3 = vsub.f32 %v27679_v6, %v28150_v19 }
0x19de   :  { %23035 = vmatpush3.bf16.msra.mxu0 %v27372_v24  ;;  %v13100_v24 = vld [vmem:[#allocation15 + $0x30] sm:$0xff]  ;;  %23053 = vmatpush3.bf16.msra.mxu1 %v27641_v28  ;;  %v13246_v51 = vand.u32 4294901760, %v27661_v10 }
0x19df   :  { %23036 = vmatprep.subr.bf16.mxu0 %v28179_v40  ;;  %23054 = vmatprep.subr.bf16.mxu1 %v28179_v40 }
0x19e0   :  { %v13247_v53 = vsub.f32 %v27661_v10, %v13246_v51 }
0x19e2   :  { %23038 = vmatpush3.bf16.msra.mxu0 %v27376_v26  ;;  %v13136_v26 = vand.u32 4294901760, %v13100_v24 }
0x19e3   :  { %23039 = vmatprep.subr.bf16.mxu0 %v28179_v40 }
0x19e4   :  { %v27663_v47 = vsub.f32 %v13100_v24, %v13136_v26  ;;  %v13241_v24 = vand.u32 4294901760, %v13240_v5  ;;  %v13297_v5 = vand.u32 4294901760, %v13296_v18  ;;  %v23112_v18 = vpack.c.bf16 %v27679_v6, %v27677_v17 }
0x19e6   :  { %23041 = vmatpush3.bf16.msra.mxu0 %v27404_v38  ;;  %v27645_v38 = vpack.c.bf16 %v13139_v4, %v13136_v26  ;;  %v13253_v45 = vand.u32 4294901760, %v27663_v47  ;;  %v13260_v26 = vand.u32 4294901760, %v27665_v55  ;;  %v13248_v4 = vand.u32 4294901760, %v13247_v53 }
0x19e7   :  { %23042 = vmatprep.subr.bf16.mxu0 %v28179_v40  ;;  %v13304_v53 = vand.u32 4294901760, %v13303_v3 }
0x19e8   :  { %23056 = vmatpush3.bf16.msra.mxu1 %v27645_v38  ;;  %v13254_v41 = vsub.f32 %v27663_v47, %v13253_v45 }
0x19e9   :  { %23057 = vmatprep.subr.bf16.mxu1 %v28179_v40 }
0x19ea   :  { %23044 = vmatpush3.bf16.msra.mxu0 %v27416_v49  ;;  %v13145_v49 = vand.u32 4294901760, %v13103_v2 }
0x19ec   :  { %v27649_v20 = vpack.c.bf16 %v13145_v49, %v13142_v33  ;;  %v27670_v35 = vsub.f32 %v13103_v2, %v13145_v49  ;;  %v13261_v2 = vsub.f32 %v27665_v55, %v13260_v26  ;;  %v23076_v33 = vpack.c.bf16 %v13248_v4, %v13241_v24 }
0x19ed   :  { %20001 = vmatmul.mubr.f32.vlgmr.msra.gmra.mrb[24].mxu0 %v27505_v22  ;;  %v13109_v22 = vld [vmem:[#allocation15 + $0x78] sm:$0xff]  ;;  %v13255_v49 = vand.u32 4294901760, %v13254_v41  ;;  %v28149_v24 = vand.u32 4294901760, %v27685_v60  ;;  %v23088_v41 = vpack.c.bf16 %v13304_v53, %v13297_v5  ;;  %v13779_v5 = vld [vmem:[%s27904_s8] ss:$0 sm:$0xff] }
0x19ee   :  { %23059 = vmatpush3.bf16.msra.mxu1 %v27649_v20  ;;  %v13163_v0 = vand.u32 4294901760, %v13109_v22  ;;  %v13262_v57 = vand.u32 4294901760, %v13261_v2  ;;  %v13274_v62 = vand.u32 4294901760, %v27670_v35 }
0x19ef   :  { %23060 = vmatprep.subr.bf16.mxu1 %v28179_v40  ;;  %v13310_v2 = vsub.f32 %v27685_v60, %v28149_v24 }
0x19f0   :  { %v27683_v25 = vpack.c.bf16 %v13163_v0, %v13160_v16  ;;  %v27687_v37 = vsub.f32 %v13109_v22, %v13163_v0  ;;  %v23079_v31 = vpack.c.bf16 %v13262_v57, %v13255_v49  ;;  %v13275_v42 = vsub.f32 %v27670_v35, %v13274_v62 }
0x19f1   :  { %v13288_v22 = vand.u32 4294901760, %v27674_v29  ;;  %v13282_v0 = vsub.f32 %v27672_v1, %v13281_v15  ;;  %v13311_v57 = vand.u32 4294901760, %v13310_v2 }
0x19f2   :  { %23062 = vmatpush3.bf16.msra.mxu1 %v27653_v9  ;;  %v13276_v34 = vand.u32 4294901760, %v13275_v42  ;;  %v28148_v4 = vand.u32 4294901760, %v27687_v37  ;;  %v23115_v3 = vpack.c.bf16 %v27687_v37, %v27685_v60 }
0x19f3   :  { %23063 = vmatprep.subr.bf16.mxu1 %v28179_v40  ;;  %v13289_v39 = vsub.f32 %v27674_v29, %v13288_v22  ;;  %v13283_v61 = vand.u32 4294901760, %v13282_v0  ;;  %v23100_v0 = vpack.c.bf16 %v27661_v10, %v27659_v21  ;;  %v28436_v21 = vand.u32 4294901760, %v27677_v17 }
0x19f4   :  { %v23082_v16 = vpack.c.bf16 %v13276_v34, %v13269_v32  ;;  %v13317_v49 = vsub.f32 %v27687_v37, %v28148_v4  ;;  %v23094_v32 = vpack.c.bf16 %v27534_v58, %v27532_v63  ;;  %v23097_v34 = vpack.c.bf16 %v27538_v13, %v27536_v14 }
0x19f5   :  { %v13290_v11 = vand.u32 4294901760, %v13289_v39  ;;  %v23103_v39 = vpack.c.bf16 %v27665_v55, %v27663_v47  ;;  %v23148_v63 = vpack.c.bf16 %v13246_v51, %v13239_v12  ;;  %v23151_v58 = vpack.c.bf16 %v13260_v26, %v13253_v45 }
0x19f6   :  { %23065 = vmatpush3.bf16.msra.mxu1 %v27657_v59  ;;  %v13318_v27 = vand.u32 4294901760, %v13317_v49  ;;  %v23154_v14 = vpack.c.bf16 %v13274_v62, %v13267_v56  ;;  %v23157_v13 = vpack.c.bf16 %v13288_v22, %v13281_v15  ;;  %v28437_v10 = vand.u32 4294901760, %v27679_v6 }
0x19f7   :  { %23066 = vmatprep.subr.bf16.mxu1 %v28179_v40  ;;  %v23085_v8 = vpack.c.bf16 %v13290_v11, %v13283_v61  ;;  %v23106_v61 = vpack.c.bf16 %v27670_v35, %v27668_v50  ;;  %v23109_v11 = vpack.c.bf16 %v27674_v29, %v27672_v1  ;;  %v28438_v55 = vand.u32 4294901760, %v27685_v60 }
0x19f8   :  { %v23091_v42 = vpack.c.bf16 %v13318_v27, %v13311_v57  ;;  %v23160_v47 = vpack.c.bf16 %v28437_v10, %v28436_v21  ;;  %v28439_v50 = vand.u32 4294901760, %v27687_v37 }
0x19fa   :  { %23068 = vmatpush3.bf16.msra.mxu1 %v27683_v25  ;;  %v23163_v35 = vpack.c.bf16 %v28439_v50, %v28438_v55 }
0x19fb   :  { %23069 = vmatprep.subr.bf16.mxu1 %v28179_v40 }
0x1ac0   :  { %v13089_v53 = vpop.f32.mrb[24].mxu0 }
0x1ac1   :  { %v23205_v2 = vadd.f32 %v13779_v5, %v13089_v53  ;;  %v20002_v49 = vpop.f32.mrb[25].mxu0 }
0x1ac3   :  { %23514 = vtanh.f32 %v23205_v2 }
0x1acd   :  { %v23515_v57 = vpop.eup %23514 }
0x1ace   :  { %v27776_v27 = vand.u32 4294901760, %v23515_v57 }
0x1ad0   :  { %v13199_v4 = vsub.f32 %v23515_v57, %v27776_v27 }
0x1ad2   :  { %v13200_v24 = vand.u32 4294901760, %v13199_v4 }
0x1ad4   :  { %v13201_v19 = vsub.f32 %v13199_v4, %v13200_v24 }
0x1ad6   :  { %v13202_v30 = vand.u32 4294901760, %v13201_v19 }
0x1ad8   :  { %20036 = vmatmul.mubr.f32.vlgmr.msra.gmra.mrb[24].mxu1 %v13202_v30 }
0x1ad9   :  { %23071 = vmatpush3.bf16.msra.mxu1 %v27705_v43  ;;  %20070 = vmatprep.mubr.msk.f32.mxu1 %vm23712_vm0, %v28198_v52  ;;  %v23142_v43 = vpack.c.bf16 %v13218_v23, %v13211_v7 }
0x1ada   :  { %23072 = vmatprep.subr.bf16.mxu1 %v28179_v40 }
0x1add   :  { %23074 = vmatpush3.bf16.msra.mxu1 %v27709_v36  ;;  %v23145_v36 = vpack.c.bf16 %v13232_v48, %v13225_v46 }
0x1ade   :  { %23075 = vmatprep.subr.bf16.mxu1 %v28179_v40 }
0x1ae1   :  { %23077 = vmatpush3.bf16.msra.mxu1 %v23076_v33 }
0x1ae2   :  { %23078 = vmatprep.subr.bf16.mxu1 %v28179_v40 }
0x1ae5   :  { %23080 = vmatpush3.bf16.msra.mxu1 %v23079_v31 }
0x1ae6   :  { %23081 = vmatprep.subr.bf16.mxu1 %v28179_v40 }
0x1ae9   :  { %23083 = vmatpush3.bf16.msra.mxu1 %v23082_v16 }
0x1aea   :  { %23084 = vmatprep.subr.bf16.mxu1 %v28179_v40 }
0x1aed   :  { %23086 = vmatpush3.bf16.msra.mxu1 %v23085_v8 }
0x1aee   :  { %23087 = vmatprep.subr.bf16.mxu1 %v28179_v40 }
0x1af1   :  { %23089 = vmatpush3.bf16.msra.mxu1 %v23088_v41 }
0x1af2   :  { %23090 = vmatprep.subr.bf16.mxu1 %v28179_v40 }
0x1af5   :  { %23092 = vmatpush3.bf16.msra.mxu1 %v23091_v42 }
0x1af6   :  { %23093 = vmatprep.subr.bf16.mxu1 %v28179_v40 }
0x1af8   :  { %20071 = vmatmul.mubr.f32.vlgmr.msra.gmra.mrb[24].mxu1 %v27776_v27 }
0x1af9   :  { %23095 = vmatpush3.bf16.msra.mxu1 %v23094_v32  ;;  %20105 = vmatprep.mubr.msk.f32.mxu1 %vm23712_vm0, %v28198_v52 }
0x1afa   :  { %23096 = vmatprep.subr.bf16.mxu1 %v28179_v40 }
0x1afd   :  { %23098 = vmatpush3.bf16.msra.mxu1 %v23097_v34 }
0x1afe   :  { %23099 = vmatprep.subr.bf16.mxu1 %v28179_v40 }
0x1b01   :  { %23101 = vmatpush3.bf16.msra.mxu1 %v23100_v0 }
0x1b02   :  { %23102 = vmatprep.subr.bf16.mxu1 %v28179_v40 }
0x1b05   :  { %23104 = vmatpush3.bf16.msra.mxu1 %v23103_v39 }
0x1b06   :  { %23105 = vmatprep.subr.bf16.mxu1 %v28179_v40 }
0x1b09   :  { %23107 = vmatpush3.bf16.msra.mxu1 %v23106_v61 }
0x1b0a   :  { %23108 = vmatprep.subr.bf16.mxu1 %v28179_v40 }
0x1b0d   :  { %23110 = vmatpush3.bf16.msra.mxu1 %v23109_v11 }
0x1b0e   :  { %23111 = vmatprep.subr.bf16.mxu1 %v28179_v40 }
0x1b11   :  { %23113 = vmatpush3.bf16.msra.mxu1 %v23112_v18 }
0x1b12   :  { %23114 = vmatprep.subr.bf16.mxu1 %v28179_v40 }
0x1b15   :  { %23116 = vmatpush3.bf16.msra.mxu1 %v23115_v3 }
0x1b16   :  { %23117 = vmatprep.subr.bf16.mxu1 %v28179_v40 }
0x1b18   :  { %20106 = vmatmul.mubr.f32.vlgmr.msra.gmra.mrb[24].mxu1 %v13199_v4 }
0x1b19   :  { %23119 = vmatpush3.bf16.msra.mxu1 %v27530_v54  ;;  %20140 = vmatprep.mubr.msk.f32.mxu1 %vm23712_vm0, %v28198_v52 }
0x1b1a   :  { %23120 = vmatprep.subr.bf16.mxu1 %v28179_v40 }
0x1b1d   :  { %23122 = vmatpush3.bf16.msra.mxu1 %v27541_v44 }
0x1b1e   :  { %23123 = vmatprep.subr.bf16.mxu1 %v28179_v40 }
0x1b21   :  { %23125 = vmatpush3.bf16.msra.mxu1 %v27641_v28 }
0x1b22   :  { %23126 = vmatprep.subr.bf16.mxu1 %v28179_v40 }
0x1b25   :  { %23128 = vmatpush3.bf16.msra.mxu1 %v27645_v38 }
0x1b26   :  { %23129 = vmatprep.subr.bf16.mxu1 %v28179_v40 }
0x1b29   :  { %23131 = vmatpush3.bf16.msra.mxu1 %v27649_v20 }
0x1b2a   :  { %23132 = vmatprep.subr.bf16.mxu1 %v28179_v40 }
0x1b2d   :  { %23134 = vmatpush3.bf16.msra.mxu1 %v27653_v9 }
0x1b2e   :  { %23135 = vmatprep.subr.bf16.mxu1 %v28179_v40 }
0x1b31   :  { %23137 = vmatpush3.bf16.msra.mxu1 %v27657_v59 }
0x1b32   :  { %23138 = vmatprep.subr.bf16.mxu1 %v28179_v40 }
0x1b35   :  { %23140 = vmatpush3.bf16.msra.mxu1 %v27683_v25 }
0x1b36   :  { %23141 = vmatprep.subr.bf16.mxu1 %v28179_v40 }
0x1b38   :  { %20141 = vmatmul.mubr.f32.vlgmr.msra.gmra.mrb[24].mxu1 %v13200_v24 }
0x1b39   :  { %23143 = vmatpush3.bf16.msra.mxu1 %v23142_v43  ;;  %20175 = vmatprep.mubr.msk.f32.mxu1 %vm23712_vm0, %v28198_v52 }
0x1b3a   :  { %23144 = vmatprep.subr.bf16.mxu1 %v28179_v40 }
0x1b3d   :  { %23146 = vmatpush3.bf16.msra.mxu1 %v23145_v36 }
0x1b3e   :  { %23147 = vmatprep.subr.bf16.mxu1 %v28179_v40 }
0x1b41   :  { %23149 = vmatpush3.bf16.msra.mxu1 %v23148_v63 }
0x1b42   :  { %23150 = vmatprep.subr.bf16.mxu1 %v28179_v40 }
0x1b45   :  { %23152 = vmatpush3.bf16.msra.mxu1 %v23151_v58 }
0x1b46   :  { %23153 = vmatprep.subr.bf16.mxu1 %v28179_v40 }
0x1b49   :  { %23155 = vmatpush3.bf16.msra.mxu1 %v23154_v14 }
0x1b4a   :  { %23156 = vmatprep.subr.bf16.mxu1 %v28179_v40 }
0x1b4d   :  { %23158 = vmatpush3.bf16.msra.mxu1 %v23157_v13 }
0x1b4e   :  { %23159 = vmatprep.subr.bf16.mxu1 %v28179_v40 }
0x1b51   :  { %23161 = vmatpush3.bf16.msra.mxu1 %v23160_v47 }
0x1b52   :  { %23162 = vmatprep.subr.bf16.mxu1 %v28179_v40 }
0x1b55   :  { %23164 = vmatpush3.bf16.msra.mxu1 %v23163_v35 }
0x1b56   :  { %23165 = vmatprep.subr.bf16.mxu1 %v28179_v40 }
0x1b58   :  { %20176 = vmatmul.mubr.f32.vlgmr.msra.gmra.mrb[24].mxu1 %v27776_v27 }
0x1b59   :  { %23167 = vmatpush3.bf16.msra.mxu1 %v27530_v54  ;;  %20210 = vmatprep.mubr.msk.f32.mxu1 %vm23712_vm0, %v28198_v52  ;;  %v13780_v52 = vld [vmem:[%s27906_s10] ss:$0 sm:$0xff] }
0x1b5a   :  { %23168 = vmatprep.subr.bf16.mxu1 %v28179_v40 }
0x1b5d   :  { %23170 = vmatpush3.bf16.msra.mxu1 %v27541_v44 }
0x1b5e   :  { %23171 = vmatprep.subr.bf16.mxu1 %v28179_v40 }
0x1b61   :  { %23173 = vmatpush3.bf16.msra.mxu1 %v27641_v28 }
0x1b62   :  { %23174 = vmatprep.subr.bf16.mxu1 %v28179_v40 }
0x1b65   :  { %23176 = vmatpush3.bf16.msra.mxu1 %v27645_v38 }
0x1b66   :  { %23177 = vmatprep.subr.bf16.mxu1 %v28179_v40 }
0x1b69   :  { %23179 = vmatpush3.bf16.msra.mxu1 %v27649_v20 }
0x1b6a   :  { %23180 = vmatprep.subr.bf16.mxu1 %v28179_v40 }
0x1b6d   :  { %23182 = vmatpush3.bf16.msra.mxu1 %v27653_v9 }
0x1b6e   :  { %23183 = vmatprep.subr.bf16.mxu1 %v28179_v40 }
0x1b71   :  { %23185 = vmatpush3.bf16.msra.mxu1 %v27657_v59 }
0x1b72   :  { %23186 = vmatprep.subr.bf16.mxu1 %v28179_v40 }
0x1b75   :  { %23188 = vmatpush3.bf16.msra.mxu1 %v27683_v25 }
0x1b78   :  { %20211 = vmatmul.mubr.f32.vlgmr.msra.gmra.mrb[24].mxu1 %v27776_v27 }
0x1c4b   :  { %v13754_v54 = vpop.f32.mrb[24].mxu1 }
0x1c4c   :  { %v23206_v44 = vadd.f32 %v13780_v52, %v13754_v54  ;;  %v20212_v28 = vpop.f32.mrb[25].mxu1 }
0x1c4e   :  { %13758 = vst [vmem:[#allocation16] sm:$0xff] %v23206_v44 }
0x1c4f   :  { %23681 = shalt.err (!%p23678_p4)
}
0x1c50   :  { %s23682_s25 = scalar_lea.hbm %s27907_s11, 128 }
0x1c51   :  { %p23683_p5 = scmp.ne.s32.totalorder %s27907_s11, %s23682_s25  ;;  %p23686_p6 = scmp.lt.u32.totalorder %s23682_s25, %s27907_s11 }
0x1c53   :  { %p23688_p7 = pnand %p23686_p6, %p23683_p5 }
0x1c55   :  { %23691 = shalt.err (!%p23688_p7)
}
0x1c56   :  { %13768 = dma.vmem_to_hbm [thread:$0]  %s13766_s24, 128, %s27907_s11, [#allocation6]  }
0x1c57   :  { %23700 = dma.done.wait [#allocation6], 128  }
0x1c58   :  { %23701 = vsyncadd [#allocation6], 4294967168 }
0x1c59   :  { %13772 = vsyncpa [#allocation5], 1 }
0x1c5a   :  { %13773 = vsyncpa [#allocation8], 1 }
0x1c5b   :  { %13774 = vsyncpa [#allocation11], 1 }
0x1c5c   :  { %13775 = vsyncpa [#allocation14], 1 }
0x1c5d   :  { %13776 = vsyncpa [#allocation6], 1 }

</bundles_post_ra>
